<compile_context>
chip_gen: v7x
topology: tpu7x:2x2x1
jax: 0.10.0
libtpu: 0.0.40
codegen_flags: <defaults>
</compile_context>

<pallas_src>
import numpy as np
import jax
import jax.numpy as jnp
from jax import lax
from jax.experimental import pallas as pl
from jax.experimental.pallas import tpu as pltpu

BN_EPS = 1e-5


def _round_up(x, m):
    return (x + m - 1) // m * m


# ---------------------------------------------------------------------------
# Static geometry for the 16x16 / [3 -> 64 -> 128 -> 256] FeatureExtractor.
# Activations are kept as flattened zero-padded images: the (H+2, W+2) padded
# image stored row-major as (rows, channels).
# ---------------------------------------------------------------------------
H0 = W0 = 16
C_IN, C_INP = 3, 8                       # real input channels / zero-padded lanes
C1, C2, C3 = 64, 128, 256

WP1, WP2, WP3 = W0 + 2, W0 // 2 + 2, W0 // 4 + 2   # padded widths: 18, 10, 6
R1 = H0 * WP1                                      # 288 conv-1 output rows (padded grid)
R2 = (H0 // 2) * WP2                               # 80  conv-2 output rows
R3 = (H0 // 4) * WP3                               # 24  conv-3 output rows

RIN1 = (H0 + 3) * WP1                              # 342 >= R1 + 2*WP1 + 2 (slab bound)
RP2 = _round_up(R2 + 2 * WP2 + 2, 8)               # 104 rows: padded layer-2 activation
RP3 = _round_up(R3 + 2 * WP3 + 2, 8)               # 40  rows: padded layer-3 activation
HO = WO = H0 // 8                                  # 2 x 2 final spatial
ROUT = HO * WO                                     # 4


def _pool_select(h_in, w_in, rows_dst, wp_dst, to_interior):
    """0/1 matrices S_q: `S_q @ conv_out` gathers pool-quadrant q (dropping the junk
    columns of the padded grid) and places it into the next layer's padded-flat layout
    (border/tail rows stay exactly 0)."""
    wp = w_in + 2
    ho, wo = h_in // 2, w_in // 2
    s = np.zeros((4, rows_dst, h_in * wp), np.float32)
    for q, (dy, dx) in enumerate(((0, 0), (0, 1), (1, 0), (1, 1))):
        for i in range(ho):
            for j in range(wo):
                src = (2 * i + dy) * wp + (2 * j + dx)
                dst = (i + 1) * wp_dst + (j + 1) if to_interior else i * wo + j
                s[q, dst, src] = 1.0
    return s


S1_NP = _pool_select(H0, W0, RP2, WP2, True)            # (4, 104, 288)
S2_NP = _pool_select(H0 // 2, W0 // 2, RP3, WP3, True)  # (4, 40, 80)
S3_NP = _pool_select(H0 // 4, W0 // 4, ROUT, 0, False)  # (4, 4, 24)


# ---------------------------------------------------------------------------
# Fused Pallas kernel: all three conv+BN+ReLU+pool stages, one batch element
# per grid step, activations resident in VMEM.
# ---------------------------------------------------------------------------
def fused_kernel(x_ref, w1_ref, b1_ref, s1_ref, w2_ref, b2_ref, s2_ref,
                 w3_ref, b3_ref, s3_ref, o_ref, pad2_ref, pad3_ref):

    def conv3x3(src_ref, w_ref, rows, wp, cin):
        # 3x3 conv on a flattened zero-padded image: 9 contiguous row-slab matmuls,
        # bf16 operands, f32 accumulation.
        acc = jnp.zeros((rows, w_ref.shape[1]), jnp.float32)
        for t in range(9):
            ky, kx = divmod(t, 3)
            tap = src_ref[pl.ds(ky * wp + kx, rows), :].astype(jnp.bfloat16)
            acc += jnp.dot(tap, w_ref[pl.ds(t * cin, cin), :],
                           preferred_element_type=jnp.float32)
        return acc

    def pool_place(z, s_ref):
        # Max over the 4 pool quadrants via exact 0/1 selection matmuls; the result is
        # already laid out as the next layer's padded-flat input (borders stay 0).
        p = jnp.dot(s_ref[0], z, preferred_element_type=jnp.float32)
        for q in range(1, 4):
            p = jnp.maximum(p, jnp.dot(s_ref[q], z,
                                       preferred_element_type=jnp.float32))
        return p

    # layer 1: conv(3->64) + BN + ReLU + pool -> padded activation for layer 2
    z1 = jnp.maximum(conv3x3(x_ref, w1_ref, R1, WP1, C_INP) + b1_ref[...], 0.0)
    pad2_ref[...] = pool_place(z1, s1_ref)

    # layer 2: conv(64->128) + BN + ReLU + pool -> padded activation for layer 3
    z2 = jnp.maximum(conv3x3(pad2_ref, w2_ref, R2, WP2, C1) + b2_ref[...], 0.0)
    pad3_ref[...] = pool_place(z2, s2_ref)

    # layer 3: conv(128->256) + BN + ReLU + pool -> (2*2, 256) output
    z3 = jnp.maximum(conv3x3(pad3_ref, w3_ref, R3, WP3, C2) + b3_ref[...], 0.0)
    o_ref[...] = pool_place(z3, s3_ref)


# ---------------------------------------------------------------------------
# One-time parameter preparation (hoisted out of the forward path):
# fold BN(eval) into weights/bias, flatten to (9*Cin, Cout), cast to bf16.
# ---------------------------------------------------------------------------
def prepare_params(all_params):
    cins = (C_INP, C1, C2)
    prepped = []
    for li, p in enumerate(all_params):
        scale = p["gamma"] / jnp.sqrt(p["var"] + BN_EPS)                 # (Cout,)
        bias = (p["beta"] + (p["b"] - p["mean"]) * scale).reshape(1, -1)  # (1, Cout)
        w = p["w"] * scale                                                # (3,3,Cin,Cout)
        if li == 0:                                                       # pad Cin 3 -> 8
            w = jnp.pad(w, ((0, 0), (0, 0), (0, C_INP - C_IN), (0, 0)))
        wflat = w.reshape(9 * cins[li], w.shape[-1]).astype(jnp.bfloat16)
        prepped += [wflat, bias.astype(jnp.float32)]
    return tuple(prepped) + (jnp.asarray(S1_NP), jnp.asarray(S2_NP), jnp.asarray(S3_NP))


def feature_extractor(x_nhwc, prepped):
    """x_nhwc: (N, 16, 16, 3) f32 -> (N, 2, 2, 256) f32.  Dropout(0.5) = identity (eval)."""
    w1, b1, w2, b2, w3, b3, s1, s2, s3 = prepped
    n = x_nhwc.shape[0]

    # Flattened zero-padded layer-1 input: pad spatially (+1 extra bottom row so the last
    # conv row-slab stays in bounds) and pad channels 3 -> 8.  Only wrapper glue needed.
    xpad = jnp.pad(x_nhwc, ((0, 0), (1, 2), (1, 1), (0, C_INP - C_IN)))
    xflat = xpad.reshape(n, RIN1, C_INP)

    out = pl.pallas_call(
        fused_kernel,
        out_shape=jax.ShapeDtypeStruct((n, ROUT, C3), jnp.float32),
        grid=(n,),
        in_specs=[
            pl.BlockSpec((None, RIN1, C_INP), lambda i: (i, 0, 0)),   # x (per batch elem)
            pl.BlockSpec((9 * C_INP, C1), lambda i: (0, 0)),          # w1 (folded, bf16)
            pl.BlockSpec((1, C1), lambda i: (0, 0)),                  # b1
            pl.BlockSpec((4, RP2, R1), lambda i: (0, 0, 0)),          # S1 pool/placement
            pl.BlockSpec((9 * C1, C2), lambda i: (0, 0)),             # w2
            pl.BlockSpec((1, C2), lambda i: (0, 0)),                  # b2
            pl.BlockSpec((4, RP3, R2), lambda i: (0, 0, 0)),          # S2
            pl.BlockSpec((9 * C2, C3), lambda i: (0, 0)),             # w3
            pl.BlockSpec((1, C3), lambda i: (0, 0)),                  # b3
            pl.BlockSpec((4, ROUT, R3), lambda i: (0, 0, 0)),         # S3
        ],
        out_specs=pl.BlockSpec((None, ROUT, C3), lambda i: (i, 0, 0)),
        scratch_shapes=[pltpu.VMEM((RP2, C1), jnp.float32),           # padded act, layer 2
                        pltpu.VMEM((RP3, C2), jnp.float32)],          # padded act, layer 3
        compiler_params=pltpu.CompilerParams(
            dimension_semantics=("parallel",)),        # one batch element per TC on v7x
    )(xflat, w1, b1, s1, w2, b2, s2, w3, b3, s3)

    return out.reshape(n, HO, WO, C3)


# ---------------------------------------------------------------------------
# Deterministic parameter init (synthetic; matches module shapes)
# ---------------------------------------------------------------------------
def init_params(key, input_channels=3):
    chans = [input_channels, C1, C2, C3]
    all_params = []
    for i in range(3):
        cin, cout = chans[i], chans[i + 1]
        key, k1, k2, k3, k4, k5, k6 = jax.random.split(key, 7)
        all_params.append(dict(
            w=jax.random.normal(k1, (3, 3, cin, cout), jnp.float32) * 0.05,
            b=jax.random.normal(k2, (cout,), jnp.float32) * 0.05,
            gamma=1.0 + 0.1 * jax.random.normal(k3, (cout,), jnp.float32),
            beta=0.1 * jax.random.normal(k4, (cout,), jnp.float32),
            mean=0.1 * jax.random.normal(k5, (cout,), jnp.float32),
            var=jnp.abs(jax.random.normal(k6, (cout,), jnp.float32)) * 0.1 + 0.9,
        ))
    return all_params


# ---------------------------------------------------------------------------
# Pure-JAX f32 reference for correctness
# ---------------------------------------------------------------------------
def reference(x_nhwc, all_params):
    y = x_nhwc
    for p in all_params:
        y = lax.conv_general_dilated(
            y, p["w"], window_strides=(1, 1), padding="SAME",
            dimension_numbers=("NHWC", "HWIO", "NHWC")) + p["b"]
        y = (y - p["mean"]) / jnp.sqrt(p["var"] + BN_EPS) * p["gamma"] + p["beta"]
        y = jnp.maximum(y, 0.0)
        y = lax.reduce_window(y, -jnp.inf, lax.max,
                              (1, 2, 2, 1), (1, 2, 2, 1), "VALID")
    return y


if __name__ == "__main__":
    key = jax.random.PRNGKey(0)
    key, kx = jax.random.split(key)

    # PyTorch-convention input: NCHW (batch=2, channels=3, 16x16 spatial).
    x_nchw = jax.random.normal(kx, (2, 3, 16, 16), jnp.float32)
    x_nhwc = jnp.transpose(x_nchw, (0, 2, 3, 1))          # kernel layout: NHWC

    all_params = init_params(key)
    prepped = prepare_params(all_params)                  # BN fold + flatten + bf16, once

    fwd = jax.jit(feature_extractor)
    out_nhwc = fwd(x_nhwc, prepped)                       # (2, 2, 2, 256)
    out_nchw = jnp.transpose(out_nhwc, (0, 3, 1, 2))      # (2, 256, 2, 2)
    jax.block_until_ready(out_nchw)

    ref = jnp.transpose(reference(x_nhwc, all_params), (0, 3, 1, 2))
    assert out_nchw.shape == (2, 256, 2, 2), out_nchw.shape
    # Tolerance sized for bf16 matmul operands (f32 accumulation) vs f32 reference.
    assert jnp.allclose(out_nchw, ref, rtol=5e-2, atol=5e-2), "mismatch vs reference"

    print("KERNEL_OK")
</pallas_src>

<mosaic_0001>
module attributes {stable_mosaic.version = 11 : i64} {
  func.func @fused_kernel(%arg0: i32, %arg1: memref<1x342x8xf32, #tpu.memory_space<vmem>>, %arg2: memref<72x64xbf16, #tpu.memory_space<vmem>>, %arg3: memref<1x64xf32, #tpu.memory_space<vmem>>, %arg4: memref<4x104x288xf32, #tpu.memory_space<vmem>>, %arg5: memref<576x128xbf16, #tpu.memory_space<vmem>>, %arg6: memref<1x128xf32, #tpu.memory_space<vmem>>, %arg7: memref<4x40x80xf32, #tpu.memory_space<vmem>>, %arg8: memref<1152x256xbf16, #tpu.memory_space<vmem>>, %arg9: memref<1x256xf32, #tpu.memory_space<vmem>>, %arg10: memref<4x4x24xf32, #tpu.memory_space<vmem>>, %arg11: memref<1x4x256xf32, #tpu.memory_space<vmem>>, %arg12: memref<104x64xf32, #tpu.memory_space<vmem>>, %arg13: memref<40x128xf32, #tpu.memory_space<vmem>>) attributes {dimension_semantics = [#tpu.dimension_semantics<parallel>], iteration_bounds = array<i64: 2>, scalar_prefetch = 0 : i64, scratch_operands = 2 : i64, tpu.core_type = #tpu.core_type<tc>, window_params = [{transform_indices = @transform_0, window_bounds = array<i64: 1, 342, 8>}, {pipeline_mode = #tpu.pipeline_mode<synchronous>, transform_indices = @transform_1, window_bounds = array<i64: 72, 64>}, {pipeline_mode = #tpu.pipeline_mode<synchronous>, transform_indices = @transform_2, window_bounds = array<i64: 1, 64>}, {pipeline_mode = #tpu.pipeline_mode<synchronous>, transform_indices = @transform_3, window_bounds = array<i64: 4, 104, 288>}, {pipeline_mode = #tpu.pipeline_mode<synchronous>, transform_indices = @transform_4, window_bounds = array<i64: 576, 128>}, {pipeline_mode = #tpu.pipeline_mode<synchronous>, transform_indices = @transform_5, window_bounds = array<i64: 1, 128>}, {pipeline_mode = #tpu.pipeline_mode<synchronous>, transform_indices = @transform_6, window_bounds = array<i64: 4, 40, 80>}, {pipeline_mode = #tpu.pipeline_mode<synchronous>, transform_indices = @transform_7, window_bounds = array<i64: 1152, 256>}, {pipeline_mode = #tpu.pipeline_mode<synchronous>, transform_indices = @transform_8, window_bounds = array<i64: 1, 256>}, {pipeline_mode = #tpu.pipeline_mode<synchronous>, transform_indices = @transform_9, window_bounds = array<i64: 4, 4, 24>}, {transform_indices = @transform_10, window_bounds = array<i64: 1, 4, 256>}]} {
    %cst = arith.constant 0.000000e+00 : f32
    %0 = vector.broadcast %cst : f32 to vector<288x64xf32>
    %c0 = arith.constant 0 : index
    %c0_0 = arith.constant 0 : index
    %c0_1 = arith.constant 0 : index
    %1 = vector.load %arg1[%c0, %c0_0, %c0_1] : memref<1x342x8xf32, #tpu.memory_space<vmem>>, vector<1x288x8xf32>
    %2 = vector.shape_cast %1 : vector<1x288x8xf32> to vector<288x8xf32>
    %3 = arith.truncf %2 : vector<288x8xf32> to vector<288x8xbf16>
    %c0_2 = arith.constant 0 : index
    %c0_3 = arith.constant 0 : index
    %4 = vector.load %arg2[%c0_2, %c0_3] : memref<72x64xbf16, #tpu.memory_space<vmem>>, vector<8x64xbf16>
    %cst_4 = arith.constant dense<0.000000e+00> : vector<288x64xf32>
    %5 = tpu.matmul %3, %4, %cst_4 {dimension_numbers = #tpu.dot_dimension_numbers<[1], [0], [0], [1], [0, 0, 1, 1], [], []>} : vector<288x8xbf16>, vector<8x64xbf16>, vector<288x64xf32> -> vector<288x64xf32>
    %6 = arith.addf %0, %5 : vector<288x64xf32>
    %c0_5 = arith.constant 0 : index
    %c1 = arith.constant 1 : index
    %c0_6 = arith.constant 0 : index
    %7 = vector.load %arg1[%c0_5, %c1, %c0_6] : memref<1x342x8xf32, #tpu.memory_space<vmem>>, vector<1x288x8xf32>
    %8 = vector.shape_cast %7 : vector<1x288x8xf32> to vector<288x8xf32>
    %9 = arith.truncf %8 : vector<288x8xf32> to vector<288x8xbf16>
    %c8 = arith.constant 8 : index
    %c0_7 = arith.constant 0 : index
    %10 = vector.load %arg2[%c8, %c0_7] : memref<72x64xbf16, #tpu.memory_space<vmem>>, vector<8x64xbf16>
    %cst_8 = arith.constant dense<0.000000e+00> : vector<288x64xf32>
    %11 = tpu.matmul %9, %10, %cst_8 {dimension_numbers = #tpu.dot_dimension_numbers<[1], [0], [0], [1], [0, 0, 1, 1], [], []>} : vector<288x8xbf16>, vector<8x64xbf16>, vector<288x64xf32> -> vector<288x64xf32>
    %12 = arith.addf %6, %11 : vector<288x64xf32>
    %c0_9 = arith.constant 0 : index
    %c2 = arith.constant 2 : index
    %c0_10 = arith.constant 0 : index
    %13 = vector.load %arg1[%c0_9, %c2, %c0_10] : memref<1x342x8xf32, #tpu.memory_space<vmem>>, vector<1x288x8xf32>
    %14 = vector.shape_cast %13 : vector<1x288x8xf32> to vector<288x8xf32>
    %15 = arith.truncf %14 : vector<288x8xf32> to vector<288x8xbf16>
    %c16 = arith.constant 16 : index
    %c0_11 = arith.constant 0 : index
    %16 = vector.load %arg2[%c16, %c0_11] : memref<72x64xbf16, #tpu.memory_space<vmem>>, vector<8x64xbf16>
    %cst_12 = arith.constant dense<0.000000e+00> : vector<288x64xf32>
    %17 = tpu.matmul %15, %16, %cst_12 {dimension_numbers = #tpu.dot_dimension_numbers<[1], [0], [0], [1], [0, 0, 1, 1], [], []>} : vector<288x8xbf16>, vector<8x64xbf16>, vector<288x64xf32> -> vector<288x64xf32>
    %18 = arith.addf %12, %17 : vector<288x64xf32>
    %c0_13 = arith.constant 0 : index
    %c18 = arith.constant 18 : index
    %c0_14 = arith.constant 0 : index
    %19 = vector.load %arg1[%c0_13, %c18, %c0_14] : memref<1x342x8xf32, #tpu.memory_space<vmem>>, vector<1x288x8xf32>
    %20 = vector.shape_cast %19 : vector<1x288x8xf32> to vector<288x8xf32>
    %21 = arith.truncf %20 : vector<288x8xf32> to vector<288x8xbf16>
    %c24 = arith.constant 24 : index
    %c0_15 = arith.constant 0 : index
    %22 = vector.load %arg2[%c24, %c0_15] : memref<72x64xbf16, #tpu.memory_space<vmem>>, vector<8x64xbf16>
    %cst_16 = arith.constant dense<0.000000e+00> : vector<288x64xf32>
    %23 = tpu.matmul %21, %22, %cst_16 {dimension_numbers = #tpu.dot_dimension_numbers<[1], [0], [0], [1], [0, 0, 1, 1], [], []>} : vector<288x8xbf16>, vector<8x64xbf16>, vector<288x64xf32> -> vector<288x64xf32>
    %24 = arith.addf %18, %23 : vector<288x64xf32>
    %c0_17 = arith.constant 0 : index
    %c19 = arith.constant 19 : index
    %c0_18 = arith.constant 0 : index
    %25 = vector.load %arg1[%c0_17, %c19, %c0_18] : memref<1x342x8xf32, #tpu.memory_space<vmem>>, vector<1x288x8xf32>
    %26 = vector.shape_cast %25 : vector<1x288x8xf32> to vector<288x8xf32>
    %27 = arith.truncf %26 : vector<288x8xf32> to vector<288x8xbf16>
    %c32 = arith.constant 32 : index
    %c0_19 = arith.constant 0 : index
    %28 = vector.load %arg2[%c32, %c0_19] : memref<72x64xbf16, #tpu.memory_space<vmem>>, vector<8x64xbf16>
    %cst_20 = arith.constant dense<0.000000e+00> : vector<288x64xf32>
    %29 = tpu.matmul %27, %28, %cst_20 {dimension_numbers = #tpu.dot_dimension_numbers<[1], [0], [0], [1], [0, 0, 1, 1], [], []>} : vector<288x8xbf16>, vector<8x64xbf16>, vector<288x64xf32> -> vector<288x64xf32>
    %30 = arith.addf %24, %29 : vector<288x64xf32>
    %c0_21 = arith.constant 0 : index
    %c20 = arith.constant 20 : index
    %c0_22 = arith.constant 0 : index
    %31 = vector.load %arg1[%c0_21, %c20, %c0_22] : memref<1x342x8xf32, #tpu.memory_space<vmem>>, vector<1x288x8xf32>
    %32 = vector.shape_cast %31 : vector<1x288x8xf32> to vector<288x8xf32>
    %33 = arith.truncf %32 : vector<288x8xf32> to vector<288x8xbf16>
    %c40 = arith.constant 40 : index
    %c0_23 = arith.constant 0 : index
    %34 = vector.load %arg2[%c40, %c0_23] : memref<72x64xbf16, #tpu.memory_space<vmem>>, vector<8x64xbf16>
    %cst_24 = arith.constant dense<0.000000e+00> : vector<288x64xf32>
    %35 = tpu.matmul %33, %34, %cst_24 {dimension_numbers = #tpu.dot_dimension_numbers<[1], [0], [0], [1], [0, 0, 1, 1], [], []>} : vector<288x8xbf16>, vector<8x64xbf16>, vector<288x64xf32> -> vector<288x64xf32>
    %36 = arith.addf %30, %35 : vector<288x64xf32>
    %c0_25 = arith.constant 0 : index
    %c36 = arith.constant 36 : index
    %c0_26 = arith.constant 0 : index
    %37 = vector.load %arg1[%c0_25, %c36, %c0_26] : memref<1x342x8xf32, #tpu.memory_space<vmem>>, vector<1x288x8xf32>
    %38 = vector.shape_cast %37 : vector<1x288x8xf32> to vector<288x8xf32>
    %39 = arith.truncf %38 : vector<288x8xf32> to vector<288x8xbf16>
    %c48 = arith.constant 48 : index
    %c0_27 = arith.constant 0 : index
    %40 = vector.load %arg2[%c48, %c0_27] : memref<72x64xbf16, #tpu.memory_space<vmem>>, vector<8x64xbf16>
    %cst_28 = arith.constant dense<0.000000e+00> : vector<288x64xf32>
    %41 = tpu.matmul %39, %40, %cst_28 {dimension_numbers = #tpu.dot_dimension_numbers<[1], [0], [0], [1], [0, 0, 1, 1], [], []>} : vector<288x8xbf16>, vector<8x64xbf16>, vector<288x64xf32> -> vector<288x64xf32>
    %42 = arith.addf %36, %41 : vector<288x64xf32>
    %c0_29 = arith.constant 0 : index
    %c37 = arith.constant 37 : index
    %c0_30 = arith.constant 0 : index
    %43 = vector.load %arg1[%c0_29, %c37, %c0_30] : memref<1x342x8xf32, #tpu.memory_space<vmem>>, vector<1x288x8xf32>
    %44 = vector.shape_cast %43 : vector<1x288x8xf32> to vector<288x8xf32>
    %45 = arith.truncf %44 : vector<288x8xf32> to vector<288x8xbf16>
    %c56 = arith.constant 56 : index
    %c0_31 = arith.constant 0 : index
    %46 = vector.load %arg2[%c56, %c0_31] : memref<72x64xbf16, #tpu.memory_space<vmem>>, vector<8x64xbf16>
    %cst_32 = arith.constant dense<0.000000e+00> : vector<288x64xf32>
    %47 = tpu.matmul %45, %46, %cst_32 {dimension_numbers = #tpu.dot_dimension_numbers<[1], [0], [0], [1], [0, 0, 1, 1], [], []>} : vector<288x8xbf16>, vector<8x64xbf16>, vector<288x64xf32> -> vector<288x64xf32>
    %48 = arith.addf %42, %47 : vector<288x64xf32>
    %c0_33 = arith.constant 0 : index
    %c38 = arith.constant 38 : index
    %c0_34 = arith.constant 0 : index
    %49 = vector.load %arg1[%c0_33, %c38, %c0_34] : memref<1x342x8xf32, #tpu.memory_space<vmem>>, vector<1x288x8xf32>
    %50 = vector.shape_cast %49 : vector<1x288x8xf32> to vector<288x8xf32>
    %51 = arith.truncf %50 : vector<288x8xf32> to vector<288x8xbf16>
    %c64 = arith.constant 64 : index
    %c0_35 = arith.constant 0 : index
    %52 = vector.load %arg2[%c64, %c0_35] : memref<72x64xbf16, #tpu.memory_space<vmem>>, vector<8x64xbf16>
    %cst_36 = arith.constant dense<0.000000e+00> : vector<288x64xf32>
    %53 = tpu.matmul %51, %52, %cst_36 {dimension_numbers = #tpu.dot_dimension_numbers<[1], [0], [0], [1], [0, 0, 1, 1], [], []>} : vector<288x8xbf16>, vector<8x64xbf16>, vector<288x64xf32> -> vector<288x64xf32>
    %54 = arith.addf %48, %53 : vector<288x64xf32>
    %c0_37 = arith.constant 0 : index
    %c0_38 = arith.constant 0 : index
    %55 = vector.load %arg3[%c0_37, %c0_38] : memref<1x64xf32, #tpu.memory_space<vmem>>, vector<1x64xf32>
    %56 = vector.broadcast %55 : vector<1x64xf32> to vector<288x64xf32>
    %57 = arith.addf %54, %56 : vector<288x64xf32>
    %cst_39 = arith.constant 0.000000e+00 : f32
    %58 = vector.broadcast %cst_39 : f32 to vector<288x64xf32>
    %59 = arith.maximumf %57, %58 : vector<288x64xf32>
    %c0_40 = arith.constant 0 : index
    %c0_41 = arith.constant 0 : index
    %c0_42 = arith.constant 0 : index
    %60 = vector.load %arg4[%c0_40, %c0_41, %c0_42] : memref<4x104x288xf32, #tpu.memory_space<vmem>>, vector<1x104x288xf32>
    %61 = vector.shape_cast %60 : vector<1x104x288xf32> to vector<104x288xf32>
    %cst_43 = arith.constant dense<0.000000e+00> : vector<104x64xf32>
    %62 = tpu.matmul %61, %59, %cst_43 {dimension_numbers = #tpu.dot_dimension_numbers<[1], [0], [0], [1], [0, 0, 1, 1], [], []>} : vector<104x288xf32>, vector<288x64xf32>, vector<104x64xf32> -> vector<104x64xf32>
    %c1_44 = arith.constant 1 : index
    %c0_45 = arith.constant 0 : index
    %c0_46 = arith.constant 0 : index
    %63 = vector.load %arg4[%c1_44, %c0_45, %c0_46] : memref<4x104x288xf32, #tpu.memory_space<vmem>>, vector<1x104x288xf32>
    %64 = vector.shape_cast %63 : vector<1x104x288xf32> to vector<104x288xf32>
    %cst_47 = arith.constant dense<0.000000e+00> : vector<104x64xf32>
    %65 = tpu.matmul %64, %59, %cst_47 {dimension_numbers = #tpu.dot_dimension_numbers<[1], [0], [0], [1], [0, 0, 1, 1], [], []>} : vector<104x288xf32>, vector<288x64xf32>, vector<104x64xf32> -> vector<104x64xf32>
    %66 = arith.maximumf %62, %65 : vector<104x64xf32>
    %c2_48 = arith.constant 2 : index
    %c0_49 = arith.constant 0 : index
    %c0_50 = arith.constant 0 : index
    %67 = vector.load %arg4[%c2_48, %c0_49, %c0_50] : memref<4x104x288xf32, #tpu.memory_space<vmem>>, vector<1x104x288xf32>
    %68 = vector.shape_cast %67 : vector<1x104x288xf32> to vector<104x288xf32>
    %cst_51 = arith.constant dense<0.000000e+00> : vector<104x64xf32>
    %69 = tpu.matmul %68, %59, %cst_51 {dimension_numbers = #tpu.dot_dimension_numbers<[1], [0], [0], [1], [0, 0, 1, 1], [], []>} : vector<104x288xf32>, vector<288x64xf32>, vector<104x64xf32> -> vector<104x64xf32>
    %70 = arith.maximumf %66, %69 : vector<104x64xf32>
    %c3 = arith.constant 3 : index
    %c0_52 = arith.constant 0 : index
    %c0_53 = arith.constant 0 : index
    %71 = vector.load %arg4[%c3, %c0_52, %c0_53] : memref<4x104x288xf32, #tpu.memory_space<vmem>>, vector<1x104x288xf32>
    %72 = vector.shape_cast %71 : vector<1x104x288xf32> to vector<104x288xf32>
    %cst_54 = arith.constant dense<0.000000e+00> : vector<104x64xf32>
    %73 = tpu.matmul %72, %59, %cst_54 {dimension_numbers = #tpu.dot_dimension_numbers<[1], [0], [0], [1], [0, 0, 1, 1], [], []>} : vector<104x288xf32>, vector<288x64xf32>, vector<104x64xf32> -> vector<104x64xf32>
    %74 = arith.maximumf %70, %73 : vector<104x64xf32>
    %c0_55 = arith.constant 0 : index
    %c0_56 = arith.constant 0 : index
    %75 = vector.load %arg12[%c0_55, %c0_56] : memref<104x64xf32, #tpu.memory_space<vmem>>, vector<104x64xf32>
    tpu.vector_store %arg12[%c0_55, %c0_56], %74 {strides = array<i32>} : memref<104x64xf32, #tpu.memory_space<vmem>>, vector<104x64xf32>,
    %cst_57 = arith.constant 0.000000e+00 : f32
    %76 = vector.broadcast %cst_57 : f32 to vector<80x128xf32>
    %c0_58 = arith.constant 0 : index
    %c0_59 = arith.constant 0 : index
    %77 = vector.load %arg12[%c0_58, %c0_59] : memref<104x64xf32, #tpu.memory_space<vmem>>, vector<80x64xf32>
    %78 = arith.truncf %77 : vector<80x64xf32> to vector<80x64xbf16>
    %c0_60 = arith.constant 0 : index
    %c0_61 = arith.constant 0 : index
    %79 = vector.load %arg5[%c0_60, %c0_61] : memref<576x128xbf16, #tpu.memory_space<vmem>>, vector<64x128xbf16>
    %cst_62 = arith.constant dense<0.000000e+00> : vector<80x128xf32>
    %80 = tpu.matmul %78, %79, %cst_62 {dimension_numbers = #tpu.dot_dimension_numbers<[1], [0], [0], [1], [0, 0, 1, 1], [], []>} : vector<80x64xbf16>, vector<64x128xbf16>, vector<80x128xf32> -> vector<80x128xf32>
    %81 = arith.addf %76, %80 : vector<80x128xf32>
    %c1_63 = arith.constant 1 : index
    %c0_64 = arith.constant 0 : index
    %82 = vector.load %arg12[%c1_63, %c0_64] : memref<104x64xf32, #tpu.memory_space<vmem>>, vector<80x64xf32>
    %83 = arith.truncf %82 : vector<80x64xf32> to vector<80x64xbf16>
    %c64_65 = arith.constant 64 : index
    %c0_66 = arith.constant 0 : index
    %84 = vector.load %arg5[%c64_65, %c0_66] : memref<576x128xbf16, #tpu.memory_space<vmem>>, vector<64x128xbf16>
    %cst_67 = arith.constant dense<0.000000e+00> : vector<80x128xf32>
    %85 = tpu.matmul %83, %84, %cst_67 {dimension_numbers = #tpu.dot_dimension_numbers<[1], [0], [0], [1], [0, 0, 1, 1], [], []>} : vector<80x64xbf16>, vector<64x128xbf16>, vector<80x128xf32> -> vector<80x128xf32>
    %86 = arith.addf %81, %85 : vector<80x128xf32>
    %c2_68 = arith.constant 2 : index
    %c0_69 = arith.constant 0 : index
    %87 = vector.load %arg12[%c2_68, %c0_69] : memref<104x64xf32, #tpu.memory_space<vmem>>, vector<80x64xf32>
    %88 = arith.truncf %87 : vector<80x64xf32> to vector<80x64xbf16>
    %c128 = arith.constant 128 : index
    %c0_70 = arith.constant 0 : index
    %89 = vector.load %arg5[%c128, %c0_70] : memref<576x128xbf16, #tpu.memory_space<vmem>>, vector<64x128xbf16>
    %cst_71 = arith.constant dense<0.000000e+00> : vector<80x128xf32>
    %90 = tpu.matmul %88, %89, %cst_71 {dimension_numbers = #tpu.dot_dimension_numbers<[1], [0], [0], [1], [0, 0, 1, 1], [], []>} : vector<80x64xbf16>, vector<64x128xbf16>, vector<80x128xf32> -> vector<80x128xf32>
    %91 = arith.addf %86, %90 : vector<80x128xf32>
    %c10 = arith.constant 10 : index
    %c0_72 = arith.constant 0 : index
    %92 = vector.load %arg12[%c10, %c0_72] : memref<104x64xf32, #tpu.memory_space<vmem>>, vector<80x64xf32>
    %93 = arith.truncf %92 : vector<80x64xf32> to vector<80x64xbf16>
    %c192 = arith.constant 192 : index
    %c0_73 = arith.constant 0 : index
    %94 = vector.load %arg5[%c192, %c0_73] : memref<576x128xbf16, #tpu.memory_space<vmem>>, vector<64x128xbf16>
    %cst_74 = arith.constant dense<0.000000e+00> : vector<80x128xf32>
    %95 = tpu.matmul %93, %94, %cst_74 {dimension_numbers = #tpu.dot_dimension_numbers<[1], [0], [0], [1], [0, 0, 1, 1], [], []>} : vector<80x64xbf16>, vector<64x128xbf16>, vector<80x128xf32> -> vector<80x128xf32>
    %96 = arith.addf %91, %95 : vector<80x128xf32>
    %c11 = arith.constant 11 : index
    %c0_75 = arith.constant 0 : index
    %97 = vector.load %arg12[%c11, %c0_75] : memref<104x64xf32, #tpu.memory_space<vmem>>, vector<80x64xf32>
    %98 = arith.truncf %97 : vector<80x64xf32> to vector<80x64xbf16>
    %c256 = arith.constant 256 : index
    %c0_76 = arith.constant 0 : index
    %99 = vector.load %arg5[%c256, %c0_76] : memref<576x128xbf16, #tpu.memory_space<vmem>>, vector<64x128xbf16>
    %cst_77 = arith.constant dense<0.000000e+00> : vector<80x128xf32>
    %100 = tpu.matmul %98, %99, %cst_77 {dimension_numbers = #tpu.dot_dimension_numbers<[1], [0], [0], [1], [0, 0, 1, 1], [], []>} : vector<80x64xbf16>, vector<64x128xbf16>, vector<80x128xf32> -> vector<80x128xf32>
    %101 = arith.addf %96, %100 : vector<80x128xf32>
    %c12 = arith.constant 12 : index
    %c0_78 = arith.constant 0 : index
    %102 = vector.load %arg12[%c12, %c0_78] : memref<104x64xf32, #tpu.memory_space<vmem>>, vector<80x64xf32>
    %103 = arith.truncf %102 : vector<80x64xf32> to vector<80x64xbf16>
    %c320 = arith.constant 320 : index
    %c0_79 = arith.constant 0 : index
    %104 = vector.load %arg5[%c320, %c0_79] : memref<576x128xbf16, #tpu.memory_space<vmem>>, vector<64x128xbf16>
    %cst_80 = arith.constant dense<0.000000e+00> : vector<80x128xf32>
    %105 = tpu.matmul %103, %104, %cst_80 {dimension_numbers = #tpu.dot_dimension_numbers<[1], [0], [0], [1], [0, 0, 1, 1], [], []>} : vector<80x64xbf16>, vector<64x128xbf16>, vector<80x128xf32> -> vector<80x128xf32>
    %106 = arith.addf %101, %105 : vector<80x128xf32>
    %c20_81 = arith.constant 20 : index
    %c0_82 = arith.constant 0 : index
    %107 = vector.load %arg12[%c20_81, %c0_82] : memref<104x64xf32, #tpu.memory_space<vmem>>, vector<80x64xf32>
    %108 = arith.truncf %107 : vector<80x64xf32> to vector<80x64xbf16>
    %c384 = arith.constant 384 : index
    %c0_83 = arith.constant 0 : index
    %109 = vector.load %arg5[%c384, %c0_83] : memref<576x128xbf16, #tpu.memory_space<vmem>>, vector<64x128xbf16>
    %cst_84 = arith.constant dense<0.000000e+00> : vector<80x128xf32>
    %110 = tpu.matmul %108, %109, %cst_84 {dimension_numbers = #tpu.dot_dimension_numbers<[1], [0], [0], [1], [0, 0, 1, 1], [], []>} : vector<80x64xbf16>, vector<64x128xbf16>, vector<80x128xf32> -> vector<80x128xf32>
    %111 = arith.addf %106, %110 : vector<80x128xf32>
    %c21 = arith.constant 21 : index
    %c0_85 = arith.constant 0 : index
    %112 = vector.load %arg12[%c21, %c0_85] : memref<104x64xf32, #tpu.memory_space<vmem>>, vector<80x64xf32>
    %113 = arith.truncf %112 : vector<80x64xf32> to vector<80x64xbf16>
    %c448 = arith.constant 448 : index
    %c0_86 = arith.constant 0 : index
    %114 = vector.load %arg5[%c448, %c0_86] : memref<576x128xbf16, #tpu.memory_space<vmem>>, vector<64x128xbf16>
    %cst_87 = arith.constant dense<0.000000e+00> : vector<80x128xf32>
    %115 = tpu.matmul %113, %114, %cst_87 {dimension_numbers = #tpu.dot_dimension_numbers<[1], [0], [0], [1], [0, 0, 1, 1], [], []>} : vector<80x64xbf16>, vector<64x128xbf16>, vector<80x128xf32> -> vector<80x128xf32>
    %116 = arith.addf %111, %115 : vector<80x128xf32>
    %c22 = arith.constant 22 : index
    %c0_88 = arith.constant 0 : index
    %117 = vector.load %arg12[%c22, %c0_88] : memref<104x64xf32, #tpu.memory_space<vmem>>, vector<80x64xf32>
    %118 = arith.truncf %117 : vector<80x64xf32> to vector<80x64xbf16>
    %c512 = arith.constant 512 : index
    %c0_89 = arith.constant 0 : index
    %119 = vector.load %arg5[%c512, %c0_89] : memref<576x128xbf16, #tpu.memory_space<vmem>>, vector<64x128xbf16>
    %cst_90 = arith.constant dense<0.000000e+00> : vector<80x128xf32>
    %120 = tpu.matmul %118, %119, %cst_90 {dimension_numbers = #tpu.dot_dimension_numbers<[1], [0], [0], [1], [0, 0, 1, 1], [], []>} : vector<80x64xbf16>, vector<64x128xbf16>, vector<80x128xf32> -> vector<80x128xf32>
    %121 = arith.addf %116, %120 : vector<80x128xf32>
    %c0_91 = arith.constant 0 : index
    %c0_92 = arith.constant 0 : index
    %122 = vector.load %arg6[%c0_91, %c0_92] : memref<1x128xf32, #tpu.memory_space<vmem>>, vector<1x128xf32>
    %123 = vector.broadcast %122 : vector<1x128xf32> to vector<80x128xf32>
    %124 = arith.addf %121, %123 : vector<80x128xf32>
    %cst_93 = arith.constant 0.000000e+00 : f32
    %125 = vector.broadcast %cst_93 : f32 to vector<80x128xf32>
    %126 = arith.maximumf %124, %125 : vector<80x128xf32>
    %c0_94 = arith.constant 0 : index
    %c0_95 = arith.constant 0 : index
    %c0_96 = arith.constant 0 : index
    %127 = vector.load %arg7[%c0_94, %c0_95, %c0_96] : memref<4x40x80xf32, #tpu.memory_space<vmem>>, vector<1x40x80xf32>
    %128 = vector.shape_cast %127 : vector<1x40x80xf32> to vector<40x80xf32>
    %cst_97 = arith.constant dense<0.000000e+00> : vector<40x128xf32>
    %129 = tpu.matmul %128, %126, %cst_97 {dimension_numbers = #tpu.dot_dimension_numbers<[1], [0], [0], [1], [0, 0, 1, 1], [], []>} : vector<40x80xf32>, vector<80x128xf32>, vector<40x128xf32> -> vector<40x128xf32>
    %c1_98 = arith.constant 1 : index
    %c0_99 = arith.constant 0 : index
    %c0_100 = arith.constant 0 : index
    %130 = vector.load %arg7[%c1_98, %c0_99, %c0_100] : memref<4x40x80xf32, #tpu.memory_space<vmem>>, vector<1x40x80xf32>
    %131 = vector.shape_cast %130 : vector<1x40x80xf32> to vector<40x80xf32>
    %cst_101 = arith.constant dense<0.000000e+00> : vector<40x128xf32>
    %132 = tpu.matmul %131, %126, %cst_101 {dimension_numbers = #tpu.dot_dimension_numbers<[1], [0], [0], [1], [0, 0, 1, 1], [], []>} : vector<40x80xf32>, vector<80x128xf32>, vector<40x128xf32> -> vector<40x128xf32>
    %133 = arith.maximumf %129, %132 : vector<40x128xf32>
    %c2_102 = arith.constant 2 : index
    %c0_103 = arith.constant 0 : index
    %c0_104 = arith.constant 0 : index
    %134 = vector.load %arg7[%c2_102, %c0_103, %c0_104] : memref<4x40x80xf32, #tpu.memory_space<vmem>>, vector<1x40x80xf32>
    %135 = vector.shape_cast %134 : vector<1x40x80xf32> to vector<40x80xf32>
    %cst_105 = arith.constant dense<0.000000e+00> : vector<40x128xf32>
    %136 = tpu.matmul %135, %126, %cst_105 {dimension_numbers = #tpu.dot_dimension_numbers<[1], [0], [0], [1], [0, 0, 1, 1], [], []>} : vector<40x80xf32>, vector<80x128xf32>, vector<40x128xf32> -> vector<40x128xf32>
    %137 = arith.maximumf %133, %136 : vector<40x128xf32>
    %c3_106 = arith.constant 3 : index
    %c0_107 = arith.constant 0 : index
    %c0_108 = arith.constant 0 : index
    %138 = vector.load %arg7[%c3_106, %c0_107, %c0_108] : memref<4x40x80xf32, #tpu.memory_space<vmem>>, vector<1x40x80xf32>
    %139 = vector.shape_cast %138 : vector<1x40x80xf32> to vector<40x80xf32>
    %cst_109 = arith.constant dense<0.000000e+00> : vector<40x128xf32>
    %140 = tpu.matmul %139, %126, %cst_109 {dimension_numbers = #tpu.dot_dimension_numbers<[1], [0], [0], [1], [0, 0, 1, 1], [], []>} : vector<40x80xf32>, vector<80x128xf32>, vector<40x128xf32> -> vector<40x128xf32>
    %141 = arith.maximumf %137, %140 : vector<40x128xf32>
    %c0_110 = arith.constant 0 : index
    %c0_111 = arith.constant 0 : index
    %142 = vector.load %arg13[%c0_110, %c0_111] : memref<40x128xf32, #tpu.memory_space<vmem>>, vector<40x128xf32>
    tpu.vector_store %arg13[%c0_110, %c0_111], %141 {strides = array<i32>} : memref<40x128xf32, #tpu.memory_space<vmem>>, vector<40x128xf32>,
    %cst_112 = arith.constant 0.000000e+00 : f32
    %143 = vector.broadcast %cst_112 : f32 to vector<24x256xf32>
    %c0_113 = arith.constant 0 : index
    %c0_114 = arith.constant 0 : index
    %144 = vector.load %arg13[%c0_113, %c0_114] : memref<40x128xf32, #tpu.memory_space<vmem>>, vector<24x128xf32>
    %145 = arith.truncf %144 : vector<24x128xf32> to vector<24x128xbf16>
    %c0_115 = arith.constant 0 : index
    %c0_116 = arith.constant 0 : index
    %146 = vector.load %arg8[%c0_115, %c0_116] : memref<1152x256xbf16, #tpu.memory_space<vmem>>, vector<128x256xbf16>
    %cst_117 = arith.constant dense<0.000000e+00> : vector<24x256xf32>
    %147 = tpu.matmul %145, %146, %cst_117 {dimension_numbers = #tpu.dot_dimension_numbers<[1], [0], [0], [1], [0, 0, 1, 1], [], []>} : vector<24x128xbf16>, vector<128x256xbf16>, vector<24x256xf32> -> vector<24x256xf32>
    %148 = arith.addf %143, %147 : vector<24x256xf32>
    %c1_118 = arith.constant 1 : index
    %c0_119 = arith.constant 0 : index
    %149 = vector.load %arg13[%c1_118, %c0_119] : memref<40x128xf32, #tpu.memory_space<vmem>>, vector<24x128xf32>
    %150 = arith.truncf %149 : vector<24x128xf32> to vector<24x128xbf16>
    %c128_120 = arith.constant 128 : index
    %c0_121 = arith.constant 0 : index
    %151 = vector.load %arg8[%c128_120, %c0_121] : memref<1152x256xbf16, #tpu.memory_space<vmem>>, vector<128x256xbf16>
    %cst_122 = arith.constant dense<0.000000e+00> : vector<24x256xf32>
    %152 = tpu.matmul %150, %151, %cst_122 {dimension_numbers = #tpu.dot_dimension_numbers<[1], [0], [0], [1], [0, 0, 1, 1], [], []>} : vector<24x128xbf16>, vector<128x256xbf16>, vector<24x256xf32> -> vector<24x256xf32>
    %153 = arith.addf %148, %152 : vector<24x256xf32>
    %c2_123 = arith.constant 2 : index
    %c0_124 = arith.constant 0 : index
    %154 = vector.load %arg13[%c2_123, %c0_124] : memref<40x128xf32, #tpu.memory_space<vmem>>, vector<24x128xf32>
    %155 = arith.truncf %154 : vector<24x128xf32> to vector<24x128xbf16>
    %c256_125 = arith.constant 256 : index
    %c0_126 = arith.constant 0 : index
    %156 = vector.load %arg8[%c256_125, %c0_126] : memref<1152x256xbf16, #tpu.memory_space<vmem>>, vector<128x256xbf16>
    %cst_127 = arith.constant dense<0.000000e+00> : vector<24x256xf32>
    %157 = tpu.matmul %155, %156, %cst_127 {dimension_numbers = #tpu.dot_dimension_numbers<[1], [0], [0], [1], [0, 0, 1, 1], [], []>} : vector<24x128xbf16>, vector<128x256xbf16>, vector<24x256xf32> -> vector<24x256xf32>
    %158 = arith.addf %153, %157 : vector<24x256xf32>
    %c6 = arith.constant 6 : index
    %c0_128 = arith.constant 0 : index
    %159 = vector.load %arg13[%c6, %c0_128] : memref<40x128xf32, #tpu.memory_space<vmem>>, vector<24x128xf32>
    %160 = arith.truncf %159 : vector<24x128xf32> to vector<24x128xbf16>
    %c384_129 = arith.constant 384 : index
    %c0_130 = arith.constant 0 : index
    %161 = vector.load %arg8[%c384_129, %c0_130] : memref<1152x256xbf16, #tpu.memory_space<vmem>>, vector<128x256xbf16>
    %cst_131 = arith.constant dense<0.000000e+00> : vector<24x256xf32>
    %162 = tpu.matmul %160, %161, %cst_131 {dimension_numbers = #tpu.dot_dimension_numbers<[1], [0], [0], [1], [0, 0, 1, 1], [], []>} : vector<24x128xbf16>, vector<128x256xbf16>, vector<24x256xf32> -> vector<24x256xf32>
    %163 = arith.addf %158, %162 : vector<24x256xf32>
    %c7 = arith.constant 7 : index
    %c0_132 = arith.constant 0 : index
    %164 = vector.load %arg13[%c7, %c0_132] : memref<40x128xf32, #tpu.memory_space<vmem>>, vector<24x128xf32>
    %165 = arith.truncf %164 : vector<24x128xf32> to vector<24x128xbf16>
    %c512_133 = arith.constant 512 : index
    %c0_134 = arith.constant 0 : index
    %166 = vector.load %arg8[%c512_133, %c0_134] : memref<1152x256xbf16, #tpu.memory_space<vmem>>, vector<128x256xbf16>
    %cst_135 = arith.constant dense<0.000000e+00> : vector<24x256xf32>
    %167 = tpu.matmul %165, %166, %cst_135 {dimension_numbers = #tpu.dot_dimension_numbers<[1], [0], [0], [1], [0, 0, 1, 1], [], []>} : vector<24x128xbf16>, vector<128x256xbf16>, vector<24x256xf32> -> vector<24x256xf32>
    %168 = arith.addf %163, %167 : vector<24x256xf32>
    %c8_136 = arith.constant 8 : index
    %c0_137 = arith.constant 0 : index
    %169 = vector.load %arg13[%c8_136, %c0_137] : memref<40x128xf32, #tpu.memory_space<vmem>>, vector<24x128xf32>
    %170 = arith.truncf %169 : vector<24x128xf32> to vector<24x128xbf16>
    %c640 = arith.constant 640 : index
    %c0_138 = arith.constant 0 : index
    %171 = vector.load %arg8[%c640, %c0_138] : memref<1152x256xbf16, #tpu.memory_space<vmem>>, vector<128x256xbf16>
    %cst_139 = arith.constant dense<0.000000e+00> : vector<24x256xf32>
    %172 = tpu.matmul %170, %171, %cst_139 {dimension_numbers = #tpu.dot_dimension_numbers<[1], [0], [0], [1], [0, 0, 1, 1], [], []>} : vector<24x128xbf16>, vector<128x256xbf16>, vector<24x256xf32> -> vector<24x256xf32>
    %173 = arith.addf %168, %172 : vector<24x256xf32>
    %c12_140 = arith.constant 12 : index
    %c0_141 = arith.constant 0 : index
    %174 = vector.load %arg13[%c12_140, %c0_141] : memref<40x128xf32, #tpu.memory_space<vmem>>, vector<24x128xf32>
    %175 = arith.truncf %174 : vector<24x128xf32> to vector<24x128xbf16>
    %c768 = arith.constant 768 : index
    %c0_142 = arith.constant 0 : index
    %176 = vector.load %arg8[%c768, %c0_142] : memref<1152x256xbf16, #tpu.memory_space<vmem>>, vector<128x256xbf16>
    %cst_143 = arith.constant dense<0.000000e+00> : vector<24x256xf32>
    %177 = tpu.matmul %175, %176, %cst_143 {dimension_numbers = #tpu.dot_dimension_numbers<[1], [0], [0], [1], [0, 0, 1, 1], [], []>} : vector<24x128xbf16>, vector<128x256xbf16>, vector<24x256xf32> -> vector<24x256xf32>
    %178 = arith.addf %173, %177 : vector<24x256xf32>
    %c13 = arith.constant 13 : index
    %c0_144 = arith.constant 0 : index
    %179 = vector.load %arg13[%c13, %c0_144] : memref<40x128xf32, #tpu.memory_space<vmem>>, vector<24x128xf32>
    %180 = arith.truncf %179 : vector<24x128xf32> to vector<24x128xbf16>
    %c896 = arith.constant 896 : index
    %c0_145 = arith.constant 0 : index
    %181 = vector.load %arg8[%c896, %c0_145] : memref<1152x256xbf16, #tpu.memory_space<vmem>>, vector<128x256xbf16>
    %cst_146 = arith.constant dense<0.000000e+00> : vector<24x256xf32>
    %182 = tpu.matmul %180, %181, %cst_146 {dimension_numbers = #tpu.dot_dimension_numbers<[1], [0], [0], [1], [0, 0, 1, 1], [], []>} : vector<24x128xbf16>, vector<128x256xbf16>, vector<24x256xf32> -> vector<24x256xf32>
    %183 = arith.addf %178, %182 : vector<24x256xf32>
    %c14 = arith.constant 14 : index
    %c0_147 = arith.constant 0 : index
    %184 = vector.load %arg13[%c14, %c0_147] : memref<40x128xf32, #tpu.memory_space<vmem>>, vector<24x128xf32>
    %185 = arith.truncf %184 : vector<24x128xf32> to vector<24x128xbf16>
    %c1024 = arith.constant 1024 : index
    %c0_148 = arith.constant 0 : index
    %186 = vector.load %arg8[%c1024, %c0_148] : memref<1152x256xbf16, #tpu.memory_space<vmem>>, vector<128x256xbf16>
    %cst_149 = arith.constant dense<0.000000e+00> : vector<24x256xf32>
    %187 = tpu.matmul %185, %186, %cst_149 {dimension_numbers = #tpu.dot_dimension_numbers<[1], [0], [0], [1], [0, 0, 1, 1], [], []>} : vector<24x128xbf16>, vector<128x256xbf16>, vector<24x256xf32> -> vector<24x256xf32>
    %188 = arith.addf %183, %187 : vector<24x256xf32>
    %c0_150 = arith.constant 0 : index
    %c0_151 = arith.constant 0 : index
    %189 = vector.load %arg9[%c0_150, %c0_151] : memref<1x256xf32, #tpu.memory_space<vmem>>, vector<1x256xf32>
    %190 = vector.broadcast %189 : vector<1x256xf32> to vector<24x256xf32>
    %191 = arith.addf %188, %190 : vector<24x256xf32>
    %cst_152 = arith.constant 0.000000e+00 : f32
    %192 = vector.broadcast %cst_152 : f32 to vector<24x256xf32>
    %193 = arith.maximumf %191, %192 : vector<24x256xf32>
    %c0_153 = arith.constant 0 : index
    %c0_154 = arith.constant 0 : index
    %c0_155 = arith.constant 0 : index
    %194 = vector.load %arg10[%c0_153, %c0_154, %c0_155] : memref<4x4x24xf32, #tpu.memory_space<vmem>>, vector<1x4x24xf32>
    %195 = vector.shape_cast %194 : vector<1x4x24xf32> to vector<4x24xf32>
    %cst_156 = arith.constant dense<0.000000e+00> : vector<4x256xf32>
    %196 = tpu.matmul %195, %193, %cst_156 {dimension_numbers = #tpu.dot_dimension_numbers<[1], [0], [0], [1], [0, 0, 1, 1], [], []>} : vector<4x24xf32>, vector<24x256xf32>, vector<4x256xf32> -> vector<4x256xf32>
    %c1_157 = arith.constant 1 : index
    %c0_158 = arith.constant 0 : index
    %c0_159 = arith.constant 0 : index
    %197 = vector.load %arg10[%c1_157, %c0_158, %c0_159] : memref<4x4x24xf32, #tpu.memory_space<vmem>>, vector<1x4x24xf32>
    %198 = vector.shape_cast %197 : vector<1x4x24xf32> to vector<4x24xf32>
    %cst_160 = arith.constant dense<0.000000e+00> : vector<4x256xf32>
    %199 = tpu.matmul %198, %193, %cst_160 {dimension_numbers = #tpu.dot_dimension_numbers<[1], [0], [0], [1], [0, 0, 1, 1], [], []>} : vector<4x24xf32>, vector<24x256xf32>, vector<4x256xf32> -> vector<4x256xf32>
    %200 = arith.maximumf %196, %199 : vector<4x256xf32>
    %c2_161 = arith.constant 2 : index
    %c0_162 = arith.constant 0 : index
    %c0_163 = arith.constant 0 : index
    %201 = vector.load %arg10[%c2_161, %c0_162, %c0_163] : memref<4x4x24xf32, #tpu.memory_space<vmem>>, vector<1x4x24xf32>
    %202 = vector.shape_cast %201 : vector<1x4x24xf32> to vector<4x24xf32>
    %cst_164 = arith.constant dense<0.000000e+00> : vector<4x256xf32>
    %203 = tpu.matmul %202, %193, %cst_164 {dimension_numbers = #tpu.dot_dimension_numbers<[1], [0], [0], [1], [0, 0, 1, 1], [], []>} : vector<4x24xf32>, vector<24x256xf32>, vector<4x256xf32> -> vector<4x256xf32>
    %204 = arith.maximumf %200, %203 : vector<4x256xf32>
    %c3_165 = arith.constant 3 : index
    %c0_166 = arith.constant 0 : index
    %c0_167 = arith.constant 0 : index
    %205 = vector.load %arg10[%c3_165, %c0_166, %c0_167] : memref<4x4x24xf32, #tpu.memory_space<vmem>>, vector<1x4x24xf32>
    %206 = vector.shape_cast %205 : vector<1x4x24xf32> to vector<4x24xf32>
    %cst_168 = arith.constant dense<0.000000e+00> : vector<4x256xf32>
    %207 = tpu.matmul %206, %193, %cst_168 {dimension_numbers = #tpu.dot_dimension_numbers<[1], [0], [0], [1], [0, 0, 1, 1], [], []>} : vector<4x24xf32>, vector<24x256xf32>, vector<4x256xf32> -> vector<4x256xf32>
    %208 = arith.maximumf %204, %207 : vector<4x256xf32>
    %c0_169 = arith.constant 0 : index
    %c0_170 = arith.constant 0 : index
    %c0_171 = arith.constant 0 : index
    %209 = vector.load %arg11[%c0_169, %c0_170, %c0_171] : memref<1x4x256xf32, #tpu.memory_space<vmem>>, vector<1x4x256xf32>
    %210 = vector.shape_cast %209 : vector<1x4x256xf32> to vector<4x256xf32>
    %211 = vector.shape_cast %208 : vector<4x256xf32> to vector<1x4x256xf32>
    tpu.vector_store %arg11[%c0_169, %c0_170, %c0_171], %211 {strides = array<i32>} : memref<1x4x256xf32, #tpu.memory_space<vmem>>, vector<1x4x256xf32>,
    return
  }
  func.func @transform_0(%arg0: i32) -> (i32, i32, i32) {
    %c0_i32 = arith.constant 0 : i32
    %c0_i32_0 = arith.constant 0 : i32
    %c0_i32_1 = arith.constant 0 : i32
    return %arg0, %c0_i32, %c0_i32_0 : i32, i32, i32
  }
  func.func @transform_1(%arg0: i32) -> (i32, i32) {
    %c0_i32 = arith.constant 0 : i32
    %c0_i32_0 = arith.constant 0 : i32
    %c0_i32_1 = arith.constant 0 : i32
    return %c0_i32, %c0_i32_0 : i32, i32
  }
  func.func @transform_2(%arg0: i32) -> (i32, i32) {
    %c0_i32 = arith.constant 0 : i32
    %c0_i32_0 = arith.constant 0 : i32
    %c0_i32_1 = arith.constant 0 : i32
    return %c0_i32, %c0_i32_0 : i32, i32
  }
  func.func @transform_3(%arg0: i32) -> (i32, i32, i32) {
    %c0_i32 = arith.constant 0 : i32
    %c0_i32_0 = arith.constant 0 : i32
    %c0_i32_1 = arith.constant 0 : i32
    %c0_i32_2 = arith.constant 0 : i32
    return %c0_i32, %c0_i32_0, %c0_i32_1 : i32, i32, i32
  }
  func.func @transform_4(%arg0: i32) -> (i32, i32) {
    %c0_i32 = arith.constant 0 : i32
    %c0_i32_0 = arith.constant 0 : i32
    %c0_i32_1 = arith.constant 0 : i32
    return %c0_i32, %c0_i32_0 : i32, i32
  }
  func.func @transform_5(%arg0: i32) -> (i32, i32) {
    %c0_i32 = arith.constant 0 : i32
    %c0_i32_0 = arith.constant 0 : i32
    %c0_i32_1 = arith.constant 0 : i32
    return %c0_i32, %c0_i32_0 : i32, i32
  }
  func.func @transform_6(%arg0: i32) -> (i32, i32, i32) {
    %c0_i32 = arith.constant 0 : i32
    %c0_i32_0 = arith.constant 0 : i32
    %c0_i32_1 = arith.constant 0 : i32
    %c0_i32_2 = arith.constant 0 : i32
    return %c0_i32, %c0_i32_0, %c0_i32_1 : i32, i32, i32
  }
  func.func @transform_7(%arg0: i32) -> (i32, i32) {
    %c0_i32 = arith.constant 0 : i32
    %c0_i32_0 = arith.constant 0 : i32
    %c0_i32_1 = arith.constant 0 : i32
    return %c0_i32, %c0_i32_0 : i32, i32
  }
  func.func @transform_8(%arg0: i32) -> (i32, i32) {
    %c0_i32 = arith.constant 0 : i32
    %c0_i32_0 = arith.constant 0 : i32
    %c0_i32_1 = arith.constant 0 : i32
    return %c0_i32, %c0_i32_0 : i32, i32
  }
  func.func @transform_9(%arg0: i32) -> (i32, i32, i32) {
    %c0_i32 = arith.constant 0 : i32
    %c0_i32_0 = arith.constant 0 : i32
    %c0_i32_1 = arith.constant 0 : i32
    %c0_i32_2 = arith.constant 0 : i32
    return %c0_i32, %c0_i32_0, %c0_i32_1 : i32, i32, i32
  }
  func.func @transform_10(%arg0: i32) -> (i32, i32, i32) {
    %c0_i32 = arith.constant 0 : i32
    %c0_i32_0 = arith.constant 0 : i32
    %c0_i32_1 = arith.constant 0 : i32
    return %arg0, %c0_i32, %c0_i32_0 : i32, i32, i32
  }
}

</mosaic_0001>

<bundles_post_ra>
// kernel: feature_extractor.1
= control target key start
LH: loop header
LB: loop body
LE: loop exit
PB: predicated region body
PF: predicated region fallthrough
CT: control target
= control target key end

     0   :  { %s11378_s13 = smov 0   ;;  %s14013_s0 = inlined_call_operand.vmem [shape: f32[2,342,8], index: 0, kind: input, shape index: {}]   ;;  %s14014_s1 = inlined_call_operand.vmem [shape: bf16[72,64], index: 1, kind: input, shape index: {}]   ;;  %s14015_s2 = inlined_call_operand.vmem [shape: f32[1,64], index: 2, kind: input, shape index: {}]   ;;  %s14016_s3 = inlined_call_operand.vmem [shape: f32[4,104,288], index: 3, kind: input, shape index: {}]   ;;  %s14017_s4 = inlined_call_operand.vmem [shape: bf16[576,128], index: 4, kind: input, shape index: {}]   ;;  %s14018_s5 = inlined_call_operand.vmem [shape: f32[1,128], index: 5, kind: input, shape index: {}]   ;;  %s14019_s6 = inlined_call_operand.vmem [shape: f32[4,40,80], index: 6, kind: input, shape index: {}]   ;;  %s14020_s7 = inlined_call_operand.vmem [shape: bf16[1152,256], index: 7, kind: input, shape index: {}]   ;;  %s14021_s8 = inlined_call_operand.vmem [shape: f32[1,256], index: 8, kind: input, shape index: {}]   ;;  %s14022_s9 = inlined_call_operand.vmem [shape: f32[4,4,24], index: 9, kind: input, shape index: {}]   ;;  %s14023_s10 = inlined_call_operand.vmem [shape: f32[2,4,256], index: 10, kind: output, shape index: {}]  }
   0x1 LB: > { %s8284_s14 = sadd.s32 4294967295, %s11317_s13   ;;  %p8288_p0 = scmp.ge.s32.totalorder %s11317_s13, 1  ;;  %s11317_s13 = sphi %s11378_s13, %s20_s13  }
   0x2   : > { %p312_p1 = scmp.lt.s32.totalorder %s11317_s13, 3 }
   0x4   : > { %p313_p2 = pnand %p8288_p0, %p312_p1 }
   0x5   : > { %v470_v0 = vld [vmem:[%s14014_s1 + $0x4] sm:$0xf] (!%p313_p2)  ;;  %vm526_vm0 = vcmask (!%p313_p2), 1043456   ;;  %p350_p3 = scmp.lt.s32.totalorder (!%p313_p2), %s8284_s14, 1  ;;  %v415_v2 = vld [vmem:[%s14014_s1] sm:$0xf] (!%p313_p2) }
   0x6   : > { %316 = sbr.rel (%p313_p2) target bundleno = 2835 (0xb13), region = 60  ;;  %11037 = vmatprep.subr.msk.bf16.mxu0 (!%p313_p2), %vm526_vm0, %v470_v0  ;;  %v528_v1 = vsel (!%p313_p2), %vm526_vm0, %v470_v0, 0  ;;  %vm471_vm1 = vcmask (!%p313_p2), 64512   ;;  %v762_v12 = vsel (!%p313_p2), %vm526_vm0, %v415_v2, 0  ;;  %v11414_v13 = vld [vmem:[%s14014_s1 + $0x8] sm:$0xf] (!%p313_p2) }
   0x7   : > { %9560 = vmatpush3.bf16.msra.mxu0 (!%p313_p2), %v528_v1  ;;  %vm11320_vm2 = vmmov (!%p313_p2), 0   ;;  %vm3334_vm3 = vcmask (!%p313_p2), 261120   ;;  %vm4690_vm4 = vcmask (!%p313_p2), 523264   ;;  %vm6021_vm5 = vcmask (!%p313_p2), 654336  }
   0x8   : > { %11038 = vmatprep.subr.msk.bf16.mxu0 (!%p313_p2), %vm526_vm0, %v415_v2  ;;  %vm7915_vm6 = vcmask (!%p313_p2), 195584  }
   0xd   : > { %s14025_s14 = smov (!%p350_p3, %s8284_s14), 1 }
   0xe   : > { %s11046_s19 = smul.u32 344, %s14025_s14  ;;  %s8894_s25 = sshll.u32 %s14025_s14, 3 }
   0xf   : > { %s359_s28 = scalar_lea.vmem %s14023_s10, %s8894_s25 }
  0x10   : > { %s11401_s22 = scalar_lea.vmem %s14013_s0, %s11046_s19 }
  0x11   : > { %v416_v3 = vld [vmem:[%s11401_s22 + $0x1] sm:$0xff]  ;;  %v417_v4 = vld [vmem:[%s11401_s22 + $0x9] sm:$0xff]  ;;  %v418_v5 = vld [vmem:[%s11401_s22 + $0x11] sm:$0xff] }
  0x12   : > { %v452_v6 = vpack.c.bf16 %v417_v4, %v416_v3  ;;  %v419_v7 = vld [vmem:[%s11401_s22 + $0x19] sm:$0xff]  ;;  %v420_v8 = vld [vmem:[%s11401_s22 + $0x21] sm:$0xff]  ;;  %v421_v9 = vld [vmem:[%s11401_s22 + $0x29] sm:$0xff] }
  0x13   : > { %v453_v10 = vpack.c.bf16 %v419_v7, %v418_v5  ;;  %v454_v11 = vpack.c.bf16 %v421_v9, %v420_v8  ;;  %v422_v14 = vld [vmem:[%s11401_s22 + $0x31] sm:$0xff]  ;;  %v423_v15 = vld [vmem:[%s11401_s22 + $0x39] sm:$0xff]  ;;  %v424_v16 = vld [vmem:[%s11401_s22 + $0x41] sm:$0xff]  ;;  %v1051_v5 = vsel %vm526_vm0, %v11414_v13, 0 }
  0x14   : > { %9561 = vmatprep.mubr.msk.bf16.mxu0 %vm471_vm1, %v452_v6  ;;  %v425_v17 = vld [vmem:[%s11401_s22 + $0x49] sm:$0xff]  ;;  %v455_v18 = vpack.c.bf16 %v423_v15, %v422_v14  ;;  %v426_v20 = vld [vmem:[%s11401_s22 + $0x51] sm:$0xff]  ;;  %v427_v21 = vld [vmem:[%s11401_s22 + $0x59] sm:$0xff] }
  0x15   : > { %9562 = vmatmul.mubr.msk.bf16.vlgmr.msra.gmra.mrb[0].mxu0 %vm471_vm1, %v453_v10  ;;  %v456_v19 = vpack.c.bf16 %v425_v17, %v424_v16  ;;  %v428_v22 = vld [vmem:[%s11401_s22 + $0x61] sm:$0xff]  ;;  %v429_v23 = vld [vmem:[%s11401_s22 + $0x69] sm:$0xff]  ;;  %v457_v24 = vpack.c.bf16 %v427_v21, %v426_v20  ;;  %v430_v26 = vld [vmem:[%s11401_s22 + $0x71] sm:$0xff] }
  0x16   : > { %9565 = vmatprep.mubr.msk.bf16.mxu0 %vm471_vm1, %v454_v11  ;;  %9598 = vmatpush3.bf16.msra.mxu0 %v762_v12  ;;  %v458_v25 = vpack.c.bf16 %v429_v23, %v428_v22  ;;  %v431_v27 = vld [vmem:[%s11401_s22 + $0x79] sm:$0xff]  ;;  %v432_v28 = vld [vmem:[%s11401_s22 + $0x81] sm:$0xff]  ;;  %v433_v29 = vld [vmem:[%s11401_s22 + $0x89] sm:$0xff] }
  0x17   : > { %11039 = vmatprep.subr.msk.bf16.mxu0 %vm526_vm0, %v11414_v13  ;;  %v459_v30 = vpack.c.bf16 %v431_v27, %v430_v26  ;;  %v460_v31 = vpack.c.bf16 %v433_v29, %v432_v28  ;;  %v434_v32 = vld [vmem:[%s11401_s22 + $0x91] sm:$0xff]  ;;  %v435_v33 = vld [vmem:[%s11401_s22 + $0x99] sm:$0xff]  ;;  %v436_v34 = vld [vmem:[%s11401_s22 + $0xa1] sm:$0xff] }
  0x18   : > { %v437_v35 = vld [vmem:[%s11401_s22 + $0xa9] sm:$0xff]  ;;  %v461_v36 = vpack.c.bf16 %v435_v33, %v434_v32  ;;  %v438_v38 = vld [vmem:[%s11401_s22 + $0xb1] sm:$0xff]  ;;  %v439_v39 = vld [vmem:[%s11401_s22 + $0xb9] sm:$0xff] }
  0x19   : > { %v462_v37 = vpack.c.bf16 %v437_v35, %v436_v34  ;;  %v440_v40 = vld [vmem:[%s11401_s22 + $0xc1] sm:$0xff]  ;;  %v441_v41 = vld [vmem:[%s11401_s22 + $0xc9] sm:$0xff]  ;;  %v463_v42 = vpack.c.bf16 %v439_v39, %v438_v38  ;;  %v442_v44 = vld [vmem:[%s11401_s22 + $0xd1] sm:$0xff] }
  0x1a   : > { %v464_v43 = vpack.c.bf16 %v441_v41, %v440_v40  ;;  %v443_v45 = vld [vmem:[%s11401_s22 + $0xd9] sm:$0xff]  ;;  %v444_v46 = vld [vmem:[%s11401_s22 + $0xe1] sm:$0xff]  ;;  %v445_v47 = vld [vmem:[%s11401_s22 + $0xe9] sm:$0xff] }
  0x1b   : > { %v465_v48 = vpack.c.bf16 %v443_v45, %v442_v44  ;;  %v466_v49 = vpack.c.bf16 %v445_v47, %v444_v46  ;;  %v446_v50 = vld [vmem:[%s11401_s22 + $0xf1] sm:$0xff]  ;;  %v447_v51 = vld [vmem:[%s11401_s22 + $0xf9] sm:$0xff]  ;;  %v448_v52 = vld [vmem:[%s11401_s22 + $0x101] sm:$0xff] }
  0x1c   : > { %v449_v53 = vld [vmem:[%s11401_s22 + $0x109] sm:$0xff]  ;;  %v467_v54 = vpack.c.bf16 %v447_v51, %v446_v50  ;;  %v450_v56 = vld [vmem:[%s11401_s22 + $0x111] sm:$0xff]  ;;  %v451_v57 = vld [vmem:[%s11401_s22 + $0x119] sm:$0xff] }
  0x1d   : > { %9566 = vmatmul.mubr.msk.bf16.gmra.mrb[4].mxu0 %vm471_vm1, %v455_v18  ;;  %v468_v55 = vpack.c.bf16 %v449_v53, %v448_v52  ;;  %v361_v58 = vld [vmem:[%s11401_s22] sm:$0xff]  ;;  %v362_v59 = vld [vmem:[%s11401_s22 + $0x8] sm:$0xff]  ;;  %v469_v60 = vpack.c.bf16 %v451_v57, %v450_v56  ;;  %v363_v62 = vld [vmem:[%s11401_s22 + $0x10] sm:$0xff] }
  0x1e   : > { %9569 = vmatprep.mubr.msk.bf16.mxu0 %vm471_vm1, %v456_v19  ;;  %v397_v61 = vpack.c.bf16 %v362_v59, %v361_v58  ;;  %v364_v63 = vld [vmem:[%s11401_s22 + $0x18] sm:$0xff]  ;;  %v365_v0 = vld [vmem:[%s11401_s22 + $0x20] sm:$0xff]  ;;  %v366_v1 = vld [vmem:[%s11401_s22 + $0x28] sm:$0xff] }
  0x1f   : > { %v398_v2 = vpack.c.bf16 %v364_v63, %v363_v62  ;;  %v399_v3 = vpack.c.bf16 %v366_v1, %v365_v0  ;;  %v11475_v4 = vld [vmem:[%s14014_s1 + $0xc] sm:$0xf]  ;;  %v367_v6 = vld [vmem:[%s11401_s22 + $0x30] sm:$0xff]  ;;  %v368_v7 = vld [vmem:[%s11401_s22 + $0x38] sm:$0xff] }
  0x20   : > { %v369_v8 = vld [vmem:[%s11401_s22 + $0x40] sm:$0xff]  ;;  %v370_v9 = vld [vmem:[%s11401_s22 + $0x48] sm:$0xff]  ;;  %v400_v10 = vpack.c.bf16 %v368_v7, %v367_v6  ;;  %v371_v12 = vld [vmem:[%s11401_s22 + $0x50] sm:$0xff] }
  0x21   : > { %v401_v11 = vpack.c.bf16 %v370_v9, %v369_v8  ;;  %v372_v13 = vld [vmem:[%s11401_s22 + $0x58] sm:$0xff]  ;;  %v373_v14 = vld [vmem:[%s11401_s22 + $0x60] sm:$0xff]  ;;  %v374_v15 = vld [vmem:[%s11401_s22 + $0x68] sm:$0xff] }
  0x22   : > { %v402_v16 = vpack.c.bf16 %v372_v13, %v371_v12  ;;  %v403_v17 = vpack.c.bf16 %v374_v15, %v373_v14  ;;  %v375_v18 = vld [vmem:[%s11401_s22 + $0x70] sm:$0xff]  ;;  %v376_v19 = vld [vmem:[%s11401_s22 + $0x78] sm:$0xff]  ;;  %v377_v20 = vld [vmem:[%s11401_s22 + $0x80] sm:$0xff] }
  0x23   : > { %v378_v21 = vld [vmem:[%s11401_s22 + $0x88] sm:$0xff]  ;;  %v404_v22 = vpack.c.bf16 %v376_v19, %v375_v18  ;;  %v381_v26 = vld [vmem:[%s11401_s22 + $0xa0] sm:$0xff]  ;;  %v947_v62 = vld [vmem:[%s11401_s22 + $0x32] sm:$0xff] }
  0x24   : > { %v405_v23 = vpack.c.bf16 %v378_v21, %v377_v20  ;;  %v382_v27 = vld [vmem:[%s11401_s22 + $0xa8] sm:$0xff]  ;;  %v385_v32 = vld [vmem:[%s11401_s22 + $0xc0] sm:$0xff] }
  0x25   : > { %9570 = vmatmul.mubr.msk.bf16.gmra.mrb[8].mxu0 %vm471_vm1, %v457_v24  ;;  %v379_v24 = vld [vmem:[%s11401_s22 + $0x90] sm:$0xff]  ;;  %v407_v29 = vpack.c.bf16 %v382_v27, %v381_v26  ;;  %v386_v33 = vld [vmem:[%s11401_s22 + $0xc8] sm:$0xff]  ;;  %v389_v38 = vld [vmem:[%s11401_s22 + $0xe0] sm:$0xff] }
  0x26   : > { %9573 = vmatprep.mubr.msk.bf16.mxu0 %vm471_vm1, %v458_v25  ;;  %v380_v25 = vld [vmem:[%s11401_s22 + $0x98] sm:$0xff]  ;;  %v409_v35 = vpack.c.bf16 %v386_v33, %v385_v32  ;;  %v390_v39 = vld [vmem:[%s11401_s22 + $0xe8] sm:$0xff]  ;;  %v393_v44 = vld [vmem:[%s11401_s22 + $0x100] sm:$0xff] }
  0x27   : > { %v406_v28 = vpack.c.bf16 %v380_v25, %v379_v24  ;;  %v411_v41 = vpack.c.bf16 %v390_v39, %v389_v38  ;;  %v394_v45 = vld [vmem:[%s11401_s22 + $0x108] sm:$0xff]  ;;  %v948_v63 = vld [vmem:[%s11401_s22 + $0x3a] sm:$0xff] }
  0x28   : > { %v413_v47 = vpack.c.bf16 %v394_v45, %v393_v44  ;;  %v941_v50 = vld [vmem:[%s11401_s22 + $0x2] sm:$0xff]  ;;  %v942_v51 = vld [vmem:[%s11401_s22 + $0xa] sm:$0xff]  ;;  %v1970_v44 = vld [vmem:[%s14014_s1 + $0x14] sm:$0xf] }
  0x29   : > { %v977_v53 = vpack.c.bf16 %v942_v51, %v941_v50  ;;  %v945_v56 = vld [vmem:[%s11401_s22 + $0x22] sm:$0xff]  ;;  %v946_v57 = vld [vmem:[%s11401_s22 + $0x2a] sm:$0xff] }
  0x2a   : > { %v11537_v59 = vpack.c.bf16 %v946_v57, %v945_v56  ;;  %v949_v0 = vld [vmem:[%s11401_s22 + $0x42] sm:$0xff]  ;;  %v950_v1 = vld [vmem:[%s11401_s22 + $0x4a] sm:$0xff]  ;;  %v2026_v57 = vsel %vm526_vm0, %v1970_v44, 0 }
  0x2b   : > { %v953_v6 = vld [vmem:[%s11401_s22 + $0x62] sm:$0xff]  ;;  %v954_v7 = vld [vmem:[%s11401_s22 + $0x6a] sm:$0xff] }
  0x2c   : > { %v983_v9 = vpack.c.bf16 %v954_v7, %v953_v6  ;;  %v957_v12 = vld [vmem:[%s11401_s22 + $0x82] sm:$0xff]  ;;  %v958_v13 = vld [vmem:[%s11401_s22 + $0x8a] sm:$0xff] }
  0x2d   : > { %9574 = vmatmul.mubr.msk.bf16.gmra.mrb[12].mxu0 %vm471_vm1, %v459_v30  ;;  %v383_v30 = vld [vmem:[%s11401_s22 + $0xb0] sm:$0xff]  ;;  %v985_v15 = vpack.c.bf16 %v958_v13, %v957_v12  ;;  %v961_v18 = vld [vmem:[%s11401_s22 + $0xa2] sm:$0xff] }
  0x2e   : > { %9577 = vmatprep.mubr.msk.bf16.mxu0 %vm471_vm1, %v460_v31  ;;  %v384_v31 = vld [vmem:[%s11401_s22 + $0xb8] sm:$0xff]  ;;  %v962_v19 = vld [vmem:[%s11401_s22 + $0xaa] sm:$0xff]  ;;  %v965_v24 = vld [vmem:[%s11401_s22 + $0xc2] sm:$0xff] }
  0x2f   : > { %v408_v34 = vpack.c.bf16 %v384_v31, %v383_v30  ;;  %v987_v21 = vpack.c.bf16 %v962_v19, %v961_v18  ;;  %v966_v25 = vld [vmem:[%s11401_s22 + $0xca] sm:$0xff]  ;;  %v969_v30 = vld [vmem:[%s11401_s22 + $0xe2] sm:$0xff] }
  0x30   : > { %v989_v27 = vpack.c.bf16 %v966_v25, %v965_v24  ;;  %v970_v31 = vld [vmem:[%s11401_s22 + $0xea] sm:$0xff]  ;;  %v1300_v45 = vld [vmem:[%s11401_s22 + $0x122] sm:$0xff] }
  0x31   : > { %v991_v33 = vpack.c.bf16 %v970_v31, %v969_v30  ;;  %v1593_v51 = vld [vmem:[%s11401_s22 + $0x23] sm:$0xff] }
  0x32   : > { %v1605_v7 = vld [vmem:[%s11401_s22 + $0x83] sm:$0xff] }
  0x33   : > { %v1609_v13 = vld [vmem:[%s11401_s22 + $0xa3] sm:$0xff] }
  0x34   : > { %v1613_v19 = vld [vmem:[%s11401_s22 + $0xc3] sm:$0xff] }
  0x35   : > { %9578 = vmatmul.mubr.msk.bf16.gmra.mrb[16].mxu0 %vm471_vm1, %v461_v36  ;;  %v387_v36 = vld [vmem:[%s11401_s22 + $0xd0] sm:$0xff]  ;;  %v1617_v25 = vld [vmem:[%s11401_s22 + $0xe3] sm:$0xff] }
  0x36   : > { %9581 = vmatprep.mubr.msk.bf16.mxu0 %vm471_vm1, %v462_v37  ;;  %v388_v37 = vld [vmem:[%s11401_s22 + $0xd8] sm:$0xff]  ;;  %v1621_v31 = vld [vmem:[%s11401_s22 + $0x103] sm:$0xff] }
  0x37   : > { %v410_v40 = vpack.c.bf16 %v388_v37, %v387_v36  ;;  %v973_v36 = vld [vmem:[%s11401_s22 + $0x102] sm:$0xff]  ;;  %v974_v37 = vld [vmem:[%s11401_s22 + $0x10a] sm:$0xff] }
  0x38   : > { %v993_v39 = vpack.c.bf16 %v974_v37, %v973_v36  ;;  %v1625_v37 = vld [vmem:[%s11401_s22 + $0x123] sm:$0xff] }
  0x3d   : > { %9582 = vmatmul.mubr.msk.bf16.gmra.mrb[20].mxu0 %vm471_vm1, %v463_v42  ;;  %v391_v42 = vld [vmem:[%s11401_s22 + $0xf0] sm:$0xff] }
  0x3e   : > { %9585 = vmatprep.mubr.msk.bf16.mxu0 %vm471_vm1, %v464_v43  ;;  %v392_v43 = vld [vmem:[%s11401_s22 + $0xf8] sm:$0xff] }
  0x3f   : > { %v412_v46 = vpack.c.bf16 %v392_v43, %v391_v42 }
  0x45   : > { %9586 = vmatmul.mubr.msk.bf16.gmra.mrb[24].mxu0 %vm471_vm1, %v465_v48  ;;  %v395_v48 = vld [vmem:[%s11401_s22 + $0x110] sm:$0xff] }
  0x46   : > { %9589 = vmatprep.mubr.msk.bf16.mxu0 %vm471_vm1, %v466_v49  ;;  %v396_v49 = vld [vmem:[%s11401_s22 + $0x118] sm:$0xff] }
  0x47   : > { %v414_v52 = vpack.c.bf16 %v396_v49, %v395_v48  ;;  %v1592_v48 = vld [vmem:[%s11401_s22 + $0x1b] sm:$0xff] }
  0x4d   : > { %9590 = vmatmul.mubr.msk.bf16.gmra.mrb[28].mxu0 %vm471_vm1, %v467_v54  ;;  %v943_v54 = vld [vmem:[%s11401_s22 + $0x12] sm:$0xff] }
  0x4e   : > { %9593 = vmatprep.mubr.msk.bf16.mxu0 %vm471_vm1, %v468_v55  ;;  %v944_v55 = vld [vmem:[%s11401_s22 + $0x1a] sm:$0xff] }
  0x4f   : > { %v11535_v58 = vpack.c.bf16 %v944_v55, %v943_v54  ;;  %v1596_v54 = vld [vmem:[%s11401_s22 + $0x3b] sm:$0xff] }
  0x55   : > { %9594 = vmatmul.mubr.msk.bf16.gmra.mrb[32].mxu0 %vm471_vm1, %v469_v60  ;;  %v1376_v60 = vsel %vm526_vm0, %v11475_v4, 0 }
  0x56   : > { %9599 = vmatprep.mubr.msk.bf16.mxu0 %vm471_vm1, %v397_v61  ;;  %v11544_v61 = vld [vmem:[%s14014_s1 + $0x10] sm:$0xf] }
  0x57   : > { %v1701_v43 = vsel %vm526_vm0, %v11544_v61, 0 }
  0x5d   : > { %9600 = vmatmul.mubr.msk.bf16.vlgmr.msra.gmra.mrb[0].mxu0 %vm471_vm1, %v398_v2  ;;  %v980_v2 = vpack.c.bf16 %v948_v63, %v947_v62  ;;  %v1600_v62 = vld [vmem:[%s11401_s22 + $0x5b] sm:$0xff] }
  0x5e   : > { %9603 = vmatprep.mubr.msk.bf16.mxu0 %vm471_vm1, %v399_v3  ;;  %9636 = vmatpush3.bf16.msra.mxu0 %v1051_v5  ;;  %v981_v3 = vpack.c.bf16 %v950_v1, %v949_v0  ;;  %v952_v5 = vld [vmem:[%s11401_s22 + $0x5a] sm:$0xff]  ;;  %v1601_v1 = vld [vmem:[%s11401_s22 + $0x63] sm:$0xff] }
  0x5f   : > { %11040 = vmatprep.subr.msk.bf16.mxu0 %vm526_vm0, %v11475_v4  ;;  %v951_v4 = vld [vmem:[%s11401_s22 + $0x52] sm:$0xff] }
  0x60   : > { %v982_v8 = vpack.c.bf16 %v952_v5, %v951_v4  ;;  %v1604_v4 = vld [vmem:[%s11401_s22 + $0x7b] sm:$0xff] }
  0x65   : > { %9604 = vmatmul.mubr.msk.bf16.gmra.mrb[4].mxu0 %vm471_vm1, %v400_v10  ;;  %v955_v10 = vld [vmem:[%s11401_s22 + $0x72] sm:$0xff] }
  0x66   : > { %9607 = vmatprep.mubr.msk.bf16.mxu0 %vm471_vm1, %v401_v11  ;;  %v956_v11 = vld [vmem:[%s11401_s22 + $0x7a] sm:$0xff] }
  0x67   : > { %v984_v14 = vpack.c.bf16 %v956_v11, %v955_v10  ;;  %v1608_v10 = vld [vmem:[%s11401_s22 + $0x9b] sm:$0xff] }
  0x6d   : > { %9608 = vmatmul.mubr.msk.bf16.gmra.mrb[8].mxu0 %vm471_vm1, %v402_v16  ;;  %v959_v16 = vld [vmem:[%s11401_s22 + $0x92] sm:$0xff] }
  0x6e   : > { %9611 = vmatprep.mubr.msk.bf16.mxu0 %vm471_vm1, %v403_v17  ;;  %v960_v17 = vld [vmem:[%s11401_s22 + $0x9a] sm:$0xff] }
  0x6f   : > { %v986_v20 = vpack.c.bf16 %v960_v17, %v959_v16  ;;  %v1612_v16 = vld [vmem:[%s11401_s22 + $0xbb] sm:$0xff] }
  0x75   : > { %9612 = vmatmul.mubr.msk.bf16.gmra.mrb[12].mxu0 %vm471_vm1, %v404_v22  ;;  %v963_v22 = vld [vmem:[%s11401_s22 + $0xb2] sm:$0xff] }
  0x76   : > { %9615 = vmatprep.mubr.msk.bf16.mxu0 %vm471_vm1, %v405_v23  ;;  %v964_v23 = vld [vmem:[%s11401_s22 + $0xba] sm:$0xff] }
  0x77   : > { %v988_v26 = vpack.c.bf16 %v964_v23, %v963_v22  ;;  %v1616_v22 = vld [vmem:[%s11401_s22 + $0xdb] sm:$0xff] }
  0x7d   : > { %9616 = vmatmul.mubr.msk.bf16.gmra.mrb[16].mxu0 %vm471_vm1, %v406_v28  ;;  %v967_v28 = vld [vmem:[%s11401_s22 + $0xd2] sm:$0xff] }
  0x7e   : > { %9619 = vmatprep.mubr.msk.bf16.mxu0 %vm471_vm1, %v407_v29  ;;  %v968_v29 = vld [vmem:[%s11401_s22 + $0xda] sm:$0xff] }
  0x7f   : > { %v990_v32 = vpack.c.bf16 %v968_v29, %v967_v28  ;;  %v1620_v28 = vld [vmem:[%s11401_s22 + $0xfb] sm:$0xff] }
  0x85   : > { %9620 = vmatmul.mubr.msk.bf16.gmra.mrb[20].mxu0 %vm471_vm1, %v408_v34  ;;  %v971_v34 = vld [vmem:[%s11401_s22 + $0xf2] sm:$0xff] }
  0x86   : > { %9623 = vmatprep.mubr.msk.bf16.mxu0 %vm471_vm1, %v409_v35  ;;  %v972_v35 = vld [vmem:[%s11401_s22 + $0xfa] sm:$0xff] }
  0x87   : > { %v992_v38 = vpack.c.bf16 %v972_v35, %v971_v34  ;;  %v1624_v34 = vld [vmem:[%s11401_s22 + $0x11b] sm:$0xff] }
  0x8d   : > { %9624 = vmatmul.mubr.msk.bf16.gmra.mrb[24].mxu0 %vm471_vm1, %v410_v40  ;;  %v975_v40 = vld [vmem:[%s11401_s22 + $0x112] sm:$0xff] }
  0x8e   : > { %9627 = vmatprep.mubr.msk.bf16.mxu0 %vm471_vm1, %v411_v41  ;;  %v976_v41 = vld [vmem:[%s11401_s22 + $0x11a] sm:$0xff] }
  0x8f   : > { %v994_v42 = vpack.c.bf16 %v976_v41, %v975_v40  ;;  %v1917_v40 = vld [vmem:[%s11401_s22 + $0x1c] sm:$0xff] }
  0x95   : > { %9628 = vmatmul.mubr.msk.bf16.gmra.mrb[28].mxu0 %vm471_vm1, %v412_v46  ;;  %v1301_v46 = vld [vmem:[%s11401_s22 + $0x12a] sm:$0xff] }
  0x96   : > { %9631 = vmatprep.mubr.msk.bf16.mxu0 %vm471_vm1, %v413_v47  ;;  %v1591_v47 = vld [vmem:[%s11401_s22 + $0x13] sm:$0xff]  ;;  %v1319_v49 = vpack.c.bf16 %v1301_v46, %v1300_v45  ;;  %v1921_v46 = vld [vmem:[%s11401_s22 + $0x3c] sm:$0xff] }
  0x97   : > { %v1627_v50 = vpack.c.bf16 %v1592_v48, %v1591_v47  ;;  %v1920_v45 = vld [vmem:[%s11401_s22 + $0x34] sm:$0xff] }
  0x98   : > { %v11696_v48 = vpack.c.bf16 %v1921_v46, %v1920_v45 }
  0x9d   : > { %9632 = vmatmul.mubr.msk.bf16.gmra.mrb[32].mxu0 %vm471_vm1, %v414_v52  ;;  %v1594_v52 = vld [vmem:[%s11401_s22 + $0x2b] sm:$0xff] }
  0x9e   : > { %9637 = vmatprep.mubr.msk.bf16.mxu0 %vm471_vm1, %v977_v53  ;;  %v1595_v53 = vld [vmem:[%s11401_s22 + $0x33] sm:$0xff]  ;;  %v1628_v55 = vpack.c.bf16 %v1594_v52, %v1593_v51  ;;  %v1922_v51 = vld [vmem:[%s11401_s22 + $0x44] sm:$0xff] }
  0x9f   : > { %v1629_v56 = vpack.c.bf16 %v1596_v54, %v1595_v53  ;;  %v1923_v52 = vld [vmem:[%s11401_s22 + $0x4c] sm:$0xff]  ;;  %v1924_v53 = vld [vmem:[%s11401_s22 + $0x54] sm:$0xff]  ;;  %v1925_v54 = vld [vmem:[%s11401_s22 + $0x5c] sm:$0xff] }
  0xa5   : > { %9638 = vmatmul.mubr.msk.bf16.vlgmr.msra.gmra.mrb[0].mxu0 %vm471_vm1, %v11535_v58 }
  0xa6   : > { %9641 = vmatprep.mubr.msk.bf16.mxu0 %vm471_vm1, %v11537_v59  ;;  %9674 = vmatpush3.bf16.msra.mxu0 %v1376_v60  ;;  %v1598_v60 = vld [vmem:[%s11401_s22 + $0x4b] sm:$0xff] }
  0xa7   : > { %11041 = vmatprep.subr.msk.bf16.mxu0 %vm526_vm0, %v11544_v61  ;;  %v1599_v61 = vld [vmem:[%s11401_s22 + $0x53] sm:$0xff] }
  0xa8   : > { %v1631_v0 = vpack.c.bf16 %v1600_v62, %v1599_v61 }
  0xad   : > { %9642 = vmatmul.mubr.msk.bf16.gmra.mrb[4].mxu0 %vm471_vm1, %v980_v2 }
  0xae   : > { %9645 = vmatprep.mubr.msk.bf16.mxu0 %vm471_vm1, %v981_v3 }
  0xb5   : > { %9646 = vmatmul.mubr.msk.bf16.gmra.mrb[8].mxu0 %vm471_vm1, %v982_v8 }
  0xb6   : > { %9649 = vmatprep.mubr.msk.bf16.mxu0 %vm471_vm1, %v983_v9 }
  0xbd   : > { %9650 = vmatmul.mubr.msk.bf16.gmra.mrb[12].mxu0 %vm471_vm1, %v984_v14 }
  0xbe   : > { %9653 = vmatprep.mubr.msk.bf16.mxu0 %vm471_vm1, %v985_v15 }
  0xc5   : > { %9654 = vmatmul.mubr.msk.bf16.gmra.mrb[16].mxu0 %vm471_vm1, %v986_v20 }
  0xc6   : > { %9657 = vmatprep.mubr.msk.bf16.mxu0 %vm471_vm1, %v987_v21 }
  0xcd   : > { %9658 = vmatmul.mubr.msk.bf16.gmra.mrb[20].mxu0 %vm471_vm1, %v988_v26 }
  0xce   : > { %9661 = vmatprep.mubr.msk.bf16.mxu0 %vm471_vm1, %v989_v27 }
  0xd5   : > { %9662 = vmatmul.mubr.msk.bf16.gmra.mrb[24].mxu0 %vm471_vm1, %v990_v32 }
  0xd6   : > { %9665 = vmatprep.mubr.msk.bf16.mxu0 %vm471_vm1, %v991_v33 }
  0xdd   : > { %9666 = vmatmul.mubr.msk.bf16.gmra.mrb[28].mxu0 %vm471_vm1, %v992_v38 }
  0xde   : > { %9669 = vmatprep.mubr.msk.bf16.mxu0 %vm471_vm1, %v993_v39 }
  0xe5   : > { %9670 = vmatmul.mubr.msk.bf16.gmra.mrb[32].mxu0 %vm471_vm1, %v994_v42 }
  0xe6   : > { %9675 = vmatprep.mubr.msk.bf16.mxu0 %vm471_vm1, %v11535_v58  ;;  %v11636_v58 = vld [vmem:[%s14014_s1 + $0x18] sm:$0xf] }
  0xed   : > { %9676 = vmatmul.mubr.msk.bf16.vlgmr.msra.gmra.mrb[0].mxu0 %vm471_vm1, %v11537_v59  ;;  %v1597_v59 = vld [vmem:[%s11401_s22 + $0x43] sm:$0xff] }
  0xee   : > { %9679 = vmatprep.mubr.msk.bf16.mxu0 %vm471_vm1, %v980_v2  ;;  %9712 = vmatpush3.bf16.msra.mxu0 %v1701_v43  ;;  %v1630_v63 = vpack.c.bf16 %v1598_v60, %v1597_v59  ;;  %v1602_v2 = vld [vmem:[%s11401_s22 + $0x6b] sm:$0xff]  ;;  %v1928_v59 = vld [vmem:[%s11401_s22 + $0x74] sm:$0xff]  ;;  %v1929_v60 = vld [vmem:[%s11401_s22 + $0x7c] sm:$0xff] }
  0xef   : > { %11042 = vmatprep.subr.msk.bf16.mxu0 %vm526_vm0, %v1970_v44  ;;  %v1632_v5 = vpack.c.bf16 %v1602_v2, %v1601_v1  ;;  %v1918_v43 = vld [vmem:[%s11401_s22 + $0x24] sm:$0xff]  ;;  %v1919_v44 = vld [vmem:[%s11401_s22 + $0x2c] sm:$0xff]  ;;  %v1958_v62 = vpack.c.bf16 %v1929_v60, %v1928_v59  ;;  %v1932_v1 = vld [vmem:[%s11401_s22 + $0x94] sm:$0xff] }
  0xf0   : > { %v11694_v47 = vpack.c.bf16 %v1919_v44, %v1918_v43  ;;  %v1933_v2 = vld [vmem:[%s11401_s22 + $0x9c] sm:$0xff]  ;;  %v2571_v43 = vld [vmem:[%s11401_s22 + $0x4d] sm:$0xff] }
  0xf1   : > { %v2580_v59 = vld [vmem:[%s11401_s22 + $0x95] sm:$0xff]  ;;  %v2581_v60 = vld [vmem:[%s11401_s22 + $0x9d] sm:$0xff] }
  0xf5   : > { %9680 = vmatmul.mubr.msk.bf16.gmra.mrb[4].mxu0 %vm471_vm1, %v981_v3  ;;  %v1603_v3 = vld [vmem:[%s11401_s22 + $0x73] sm:$0xff] }
  0xf6   : > { %9683 = vmatprep.mubr.msk.bf16.mxu0 %vm471_vm1, %v982_v8  ;;  %v1633_v6 = vpack.c.bf16 %v1604_v4, %v1603_v3  ;;  %v1606_v8 = vld [vmem:[%s11401_s22 + $0x8b] sm:$0xff]  ;;  %v1960_v4 = vpack.c.bf16 %v1933_v2, %v1932_v1  ;;  %v2584_v1 = vld [vmem:[%s11401_s22 + $0xb5] sm:$0xff]  ;;  %v2585_v2 = vld [vmem:[%s11401_s22 + $0xbd] sm:$0xff] }
  0xf7   : > { %v1634_v11 = vpack.c.bf16 %v1606_v8, %v1605_v7  ;;  %v1936_v7 = vld [vmem:[%s11401_s22 + $0xb4] sm:$0xff]  ;;  %v1937_v8 = vld [vmem:[%s11401_s22 + $0xbc] sm:$0xff] }
  0xfd   : > { %9684 = vmatmul.mubr.msk.bf16.gmra.mrb[8].mxu0 %vm471_vm1, %v983_v9  ;;  %v1607_v9 = vld [vmem:[%s11401_s22 + $0x93] sm:$0xff] }
  0xfe   : > { %9687 = vmatprep.mubr.msk.bf16.mxu0 %vm471_vm1, %v984_v14  ;;  %v1635_v12 = vpack.c.bf16 %v1608_v10, %v1607_v9  ;;  %v1610_v14 = vld [vmem:[%s11401_s22 + $0xab] sm:$0xff]  ;;  %v1962_v10 = vpack.c.bf16 %v1937_v8, %v1936_v7  ;;  %v2588_v7 = vld [vmem:[%s11401_s22 + $0xd5] sm:$0xff]  ;;  %v2589_v8 = vld [vmem:[%s11401_s22 + $0xdd] sm:$0xff] }
  0xff   : > { %v1636_v17 = vpack.c.bf16 %v1610_v14, %v1609_v13  ;;  %v1940_v13 = vld [vmem:[%s11401_s22 + $0xd4] sm:$0xff]  ;;  %v1941_v14 = vld [vmem:[%s11401_s22 + $0xdc] sm:$0xff] }
 0x105   : > { %9688 = vmatmul.mubr.msk.bf16.gmra.mrb[12].mxu0 %vm471_vm1, %v985_v15  ;;  %v1611_v15 = vld [vmem:[%s11401_s22 + $0xb3] sm:$0xff] }
 0x106   : > { %9691 = vmatprep.mubr.msk.bf16.mxu0 %vm471_vm1, %v986_v20  ;;  %v1637_v18 = vpack.c.bf16 %v1612_v16, %v1611_v15  ;;  %v1614_v20 = vld [vmem:[%s11401_s22 + $0xcb] sm:$0xff]  ;;  %v1964_v16 = vpack.c.bf16 %v1941_v14, %v1940_v13  ;;  %v2592_v13 = vld [vmem:[%s11401_s22 + $0xf5] sm:$0xff]  ;;  %v2593_v14 = vld [vmem:[%s11401_s22 + $0xfd] sm:$0xff] }
 0x107   : > { %v1638_v23 = vpack.c.bf16 %v1614_v20, %v1613_v19  ;;  %v1944_v19 = vld [vmem:[%s11401_s22 + $0xf4] sm:$0xff]  ;;  %v1945_v20 = vld [vmem:[%s11401_s22 + $0xfc] sm:$0xff] }
 0x10d   : > { %9692 = vmatmul.mubr.msk.bf16.gmra.mrb[16].mxu0 %vm471_vm1, %v987_v21  ;;  %v1615_v21 = vld [vmem:[%s11401_s22 + $0xd3] sm:$0xff] }
 0x10e   : > { %9695 = vmatprep.mubr.msk.bf16.mxu0 %vm471_vm1, %v988_v26  ;;  %v1639_v24 = vpack.c.bf16 %v1616_v22, %v1615_v21  ;;  %v1618_v26 = vld [vmem:[%s11401_s22 + $0xeb] sm:$0xff]  ;;  %v1966_v22 = vpack.c.bf16 %v1945_v20, %v1944_v19  ;;  %v2596_v19 = vld [vmem:[%s11401_s22 + $0x115] sm:$0xff]  ;;  %v2597_v20 = vld [vmem:[%s11401_s22 + $0x11d] sm:$0xff] }
 0x10f   : > { %v1640_v29 = vpack.c.bf16 %v1618_v26, %v1617_v25  ;;  %v1948_v25 = vld [vmem:[%s11401_s22 + $0x114] sm:$0xff]  ;;  %v1949_v26 = vld [vmem:[%s11401_s22 + $0x11c] sm:$0xff] }
 0x115   : > { %9696 = vmatmul.mubr.msk.bf16.gmra.mrb[20].mxu0 %vm471_vm1, %v989_v27  ;;  %v1619_v27 = vld [vmem:[%s11401_s22 + $0xf3] sm:$0xff] }
 0x116   : > { %9699 = vmatprep.mubr.msk.bf16.mxu0 %vm471_vm1, %v990_v32  ;;  %v1641_v30 = vpack.c.bf16 %v1620_v28, %v1619_v27  ;;  %v1622_v32 = vld [vmem:[%s11401_s22 + $0x10b] sm:$0xff]  ;;  %v1968_v28 = vpack.c.bf16 %v1949_v26, %v1948_v25  ;;  %v2600_v25 = vld [vmem:[%s11401_s22 + $0x135] sm:$0xff]  ;;  %v2601_v26 = vld [vmem:[%s11401_s22 + $0x13d] sm:$0xff] }
 0x117   : > { %v1642_v35 = vpack.c.bf16 %v1622_v32, %v1621_v31 }
 0x11d   : > { %9700 = vmatmul.mubr.msk.bf16.gmra.mrb[24].mxu0 %vm471_vm1, %v991_v33  ;;  %v1623_v33 = vld [vmem:[%s11401_s22 + $0x113] sm:$0xff] }
 0x11e   : > { %9703 = vmatprep.mubr.msk.bf16.mxu0 %vm471_vm1, %v992_v38  ;;  %v1643_v36 = vpack.c.bf16 %v1624_v34, %v1623_v33  ;;  %v1626_v38 = vld [vmem:[%s11401_s22 + $0x12b] sm:$0xff]  ;;  %v2945_v33 = vld [vmem:[%s14014_s1 + $0x20] sm:$0xf]  ;;  %v2275_v34 = vld [vmem:[%s11401_s22 + $0x134] sm:$0xff] }
 0x11f   : > { %v1644_v41 = vpack.c.bf16 %v1626_v38, %v1625_v37  ;;  %v2567_v37 = vld [vmem:[%s11401_s22 + $0x2d] sm:$0xff]  ;;  %v3001_v46 = vsel %vm526_vm0, %v2945_v33, 0 }
 0x125   : > { %9704 = vmatmul.mubr.msk.bf16.gmra.mrb[28].mxu0 %vm471_vm1, %v993_v39  ;;  %v1916_v39 = vld [vmem:[%s11401_s22 + $0x14] sm:$0xff] }
 0x126   : > { %9707 = vmatprep.mubr.msk.bf16.mxu0 %vm471_vm1, %v994_v42  ;;  %v1952_v42 = vpack.c.bf16 %v1917_v40, %v1916_v39  ;;  %v2568_v40 = vld [vmem:[%s11401_s22 + $0x35] sm:$0xff] }
 0x12d   : > { %9708 = vmatmul.mubr.msk.bf16.gmra.mrb[32].mxu0 %vm471_vm1, %v1319_v49  ;;  %v2351_v49 = vsel %vm526_vm0, %v11636_v58, 0 }
 0x12e   : > { %9713 = vmatprep.mubr.msk.bf16.mxu0 %vm471_vm1, %v1627_v50  ;;  %v11703_v50 = vld [vmem:[%s14014_s1 + $0x1c] sm:$0xf] }
 0x12f   : > { %v2676_v32 = vsel %vm526_vm0, %v11703_v50, 0 }
 0x135   : > { %9714 = vmatmul.mubr.msk.bf16.vlgmr.msra.gmra.mrb[0].mxu0 %vm471_vm1, %v1628_v55  ;;  %v1955_v55 = vpack.c.bf16 %v1923_v52, %v1922_v51 }
 0x136   : > { %9717 = vmatprep.mubr.msk.bf16.mxu0 %vm471_vm1, %v1629_v56  ;;  %9750 = vmatpush3.bf16.msra.mxu0 %v2026_v57  ;;  %v1956_v56 = vpack.c.bf16 %v1925_v54, %v1924_v53  ;;  %v1926_v57 = vld [vmem:[%s11401_s22 + $0x64] sm:$0xff]  ;;  %v2576_v53 = vld [vmem:[%s11401_s22 + $0x75] sm:$0xff] }
 0x137   : > { %11043 = vmatprep.subr.msk.bf16.mxu0 %vm526_vm0, %v11636_v58  ;;  %v1927_v58 = vld [vmem:[%s11401_s22 + $0x6c] sm:$0xff]  ;;  %v2577_v54 = vld [vmem:[%s11401_s22 + $0x7d] sm:$0xff] }
 0x138   : > { %v1957_v61 = vpack.c.bf16 %v1927_v58, %v1926_v57  ;;  %v2607_v57 = vpack.c.bf16 %v2577_v54, %v2576_v53 }
 0x13d   : > { %9718 = vmatmul.mubr.msk.bf16.gmra.mrb[4].mxu0 %vm471_vm1, %v1630_v63  ;;  %v1930_v63 = vld [vmem:[%s11401_s22 + $0x84] sm:$0xff] }
 0x13e   : > { %9721 = vmatprep.mubr.msk.bf16.mxu0 %vm471_vm1, %v1631_v0  ;;  %v1931_v0 = vld [vmem:[%s11401_s22 + $0x8c] sm:$0xff] }
 0x13f   : > { %v1959_v3 = vpack.c.bf16 %v1931_v0, %v1930_v63  ;;  %v2609_v63 = vpack.c.bf16 %v2581_v60, %v2580_v59 }
 0x145   : > { %9722 = vmatmul.mubr.msk.bf16.gmra.mrb[8].mxu0 %vm471_vm1, %v1632_v5  ;;  %v1934_v5 = vld [vmem:[%s11401_s22 + $0xa4] sm:$0xff] }
 0x146   : > { %9725 = vmatprep.mubr.msk.bf16.mxu0 %vm471_vm1, %v1633_v6  ;;  %v1935_v6 = vld [vmem:[%s11401_s22 + $0xac] sm:$0xff] }
 0x147   : > { %v1961_v9 = vpack.c.bf16 %v1935_v6, %v1934_v5  ;;  %v2611_v5 = vpack.c.bf16 %v2585_v2, %v2584_v1 }
 0x14d   : > { %9726 = vmatmul.mubr.msk.bf16.gmra.mrb[12].mxu0 %vm471_vm1, %v1634_v11  ;;  %v1938_v11 = vld [vmem:[%s11401_s22 + $0xc4] sm:$0xff] }
 0x14e   : > { %9729 = vmatprep.mubr.msk.bf16.mxu0 %vm471_vm1, %v1635_v12  ;;  %v1939_v12 = vld [vmem:[%s11401_s22 + $0xcc] sm:$0xff] }
 0x14f   : > { %v1963_v15 = vpack.c.bf16 %v1939_v12, %v1938_v11  ;;  %v2613_v11 = vpack.c.bf16 %v2589_v8, %v2588_v7 }
 0x155   : > { %9730 = vmatmul.mubr.msk.bf16.gmra.mrb[16].mxu0 %vm471_vm1, %v1636_v17  ;;  %v1942_v17 = vld [vmem:[%s11401_s22 + $0xe4] sm:$0xff] }
 0x156   : > { %9733 = vmatprep.mubr.msk.bf16.mxu0 %vm471_vm1, %v1637_v18  ;;  %v1943_v18 = vld [vmem:[%s11401_s22 + $0xec] sm:$0xff] }
 0x157   : > { %v1965_v21 = vpack.c.bf16 %v1943_v18, %v1942_v17  ;;  %v2615_v17 = vpack.c.bf16 %v2593_v14, %v2592_v13 }
 0x15d   : > { %9734 = vmatmul.mubr.msk.bf16.gmra.mrb[20].mxu0 %vm471_vm1, %v1638_v23  ;;  %v1946_v23 = vld [vmem:[%s11401_s22 + $0x104] sm:$0xff] }
 0x15e   : > { %9737 = vmatprep.mubr.msk.bf16.mxu0 %vm471_vm1, %v1639_v24  ;;  %v1947_v24 = vld [vmem:[%s11401_s22 + $0x10c] sm:$0xff] }
 0x15f   : > { %v1967_v27 = vpack.c.bf16 %v1947_v24, %v1946_v23  ;;  %v2617_v23 = vpack.c.bf16 %v2597_v20, %v2596_v19  ;;  %v11319_v19 = vmov 0.0|0.0   ;;  %v11321_v20 = vmov 0.0  }
 0x160   : > { %10513 = vmatprep.subr.bf16.mxu1 %v11319_v19  ;;  %9909 = vmatprep.mubr.msk.f32.mxu1 %vm11320_vm2, %v11321_v20 }
 0x165   : > { %9738 = vmatmul.mubr.msk.bf16.gmra.mrb[24].mxu0 %vm471_vm1, %v1640_v29  ;;  %v1950_v29 = vld [vmem:[%s11401_s22 + $0x124] sm:$0xff] }
 0x166   : > { %9741 = vmatprep.mubr.msk.bf16.mxu0 %vm471_vm1, %v1641_v30  ;;  %v1951_v30 = vld [vmem:[%s11401_s22 + $0x12c] sm:$0xff] }
 0x167   : > { %v1969_v31 = vpack.c.bf16 %v1951_v30, %v1950_v29  ;;  %v2619_v29 = vpack.c.bf16 %v2601_v26, %v2600_v25 }
 0x16d   : > { %9742 = vmatmul.mubr.msk.bf16.gmra.mrb[28].mxu0 %vm471_vm1, %v1642_v35  ;;  %v2276_v35 = vld [vmem:[%s11401_s22 + $0x13c] sm:$0xff] }
 0x16e   : > { %9745 = vmatprep.mubr.msk.bf16.mxu0 %vm471_vm1, %v1643_v36  ;;  %v2566_v36 = vld [vmem:[%s11401_s22 + $0x25] sm:$0xff]  ;;  %v2294_v38 = vpack.c.bf16 %v2276_v35, %v2275_v34  ;;  %v2896_v34 = vld [vmem:[%s11401_s22 + $0x4e] sm:$0xff] }
 0x16f   : > { %v2602_v39 = vpack.c.bf16 %v2567_v37, %v2566_v36  ;;  %v2897_v37 = vld [vmem:[%s11401_s22 + $0x56] sm:$0xff] }
 0x175   : > { %9746 = vmatmul.mubr.msk.bf16.gmra.mrb[32].mxu0 %vm471_vm1, %v1644_v41  ;;  %v2569_v41 = vld [vmem:[%s11401_s22 + $0x3d] sm:$0xff] }
 0x176   : > { %9751 = vmatprep.mubr.msk.bf16.mxu0 %vm471_vm1, %v1952_v42  ;;  %v2570_v42 = vld [vmem:[%s11401_s22 + $0x45] sm:$0xff]  ;;  %v2603_v44 = vpack.c.bf16 %v2569_v41, %v2568_v40  ;;  %v2900_v40 = vld [vmem:[%s11401_s22 + $0x6e] sm:$0xff] }
 0x177   : > { %v2604_v45 = vpack.c.bf16 %v2571_v43, %v2570_v42  ;;  %v2901_v43 = vld [vmem:[%s11401_s22 + $0x76] sm:$0xff] }
 0x17d   : > { %9752 = vmatmul.mubr.msk.bf16.vlgmr.msra.gmra.mrb[0].mxu0 %vm471_vm1, %v11694_v47 }
 0x17e   : > { %9755 = vmatprep.mubr.msk.bf16.mxu0 %vm471_vm1, %v11696_v48  ;;  %9788 = vmatpush3.bf16.msra.mxu0 %v2351_v49  ;;  %v2574_v49 = vld [vmem:[%s11401_s22 + $0x65] sm:$0xff] }
 0x17f   : > { %11044 = vmatprep.subr.msk.bf16.mxu0 %vm526_vm0, %v11703_v50  ;;  %v2575_v50 = vld [vmem:[%s11401_s22 + $0x6d] sm:$0xff] }
 0x180   : > { %v2606_v52 = vpack.c.bf16 %v2575_v50, %v2574_v49  ;;  %v2905_v49 = vld [vmem:[%s11401_s22 + $0x96] sm:$0xff]  ;;  %v2906_v50 = vld [vmem:[%s11401_s22 + $0x9e] sm:$0xff] }
 0x181   : > { %v2934_v53 = vpack.c.bf16 %v2906_v50, %v2905_v49 }
 0x185   : > { %9756 = vmatmul.mubr.msk.bf16.gmra.mrb[4].mxu0 %vm471_vm1, %v1955_v55 }
 0x186   : > { %9759 = vmatprep.mubr.msk.bf16.mxu0 %vm471_vm1, %v1956_v56 }
 0x18d   : > { %9760 = vmatmul.mubr.msk.bf16.gmra.mrb[8].mxu0 %vm471_vm1, %v1957_v61 }
 0x18e   : > { %9763 = vmatprep.mubr.msk.bf16.mxu0 %vm471_vm1, %v1958_v62 }
 0x195   : > { %9764 = vmatmul.mubr.msk.bf16.gmra.mrb[12].mxu0 %vm471_vm1, %v1959_v3 }
 0x196   : > { %9767 = vmatprep.mubr.msk.bf16.mxu0 %vm471_vm1, %v1960_v4 }
 0x19d   : > { %9768 = vmatmul.mubr.msk.bf16.gmra.mrb[16].mxu0 %vm471_vm1, %v1961_v9 }
 0x19e   : > { %9771 = vmatprep.mubr.msk.bf16.mxu0 %vm471_vm1, %v1962_v10 }
 0x1a5   : > { %9772 = vmatmul.mubr.msk.bf16.gmra.mrb[20].mxu0 %vm471_vm1, %v1963_v15 }
 0x1a6   : > { %9775 = vmatprep.mubr.msk.bf16.mxu0 %vm471_vm1, %v1964_v16 }
 0x1ad   : > { %9776 = vmatmul.mubr.msk.bf16.gmra.mrb[24].mxu0 %vm471_vm1, %v1965_v21 }
 0x1ae   : > { %9779 = vmatprep.mubr.msk.bf16.mxu0 %vm471_vm1, %v1966_v22 }
 0x1b5   : > { %9780 = vmatmul.mubr.msk.bf16.gmra.mrb[28].mxu0 %vm471_vm1, %v1967_v27 }
 0x1b6   : > { %9783 = vmatprep.mubr.msk.bf16.mxu0 %vm471_vm1, %v1968_v28 }
 0x1bd   : > { %9784 = vmatmul.mubr.msk.bf16.gmra.mrb[32].mxu0 %vm471_vm1, %v1969_v31 }
 0x1be   : > { %9789 = vmatprep.mubr.msk.bf16.mxu0 %vm471_vm1, %v11694_v47  ;;  %v2572_v47 = vld [vmem:[%s11401_s22 + $0x55] sm:$0xff] }
 0x1c5   : > { %9790 = vmatmul.mubr.msk.bf16.vlgmr.msra.gmra.mrb[0].mxu0 %vm471_vm1, %v11696_v48  ;;  %v2573_v48 = vld [vmem:[%s11401_s22 + $0x5d] sm:$0xff] }
 0x1c6   : > { %9793 = vmatprep.mubr.msk.bf16.mxu0 %vm471_vm1, %v1955_v55  ;;  %9826 = vmatpush3.bf16.msra.mxu0 %v2676_v32  ;;  %v2605_v51 = vpack.c.bf16 %v2573_v48, %v2572_v47  ;;  %v2578_v55 = vld [vmem:[%s11401_s22 + $0x85] sm:$0xff] }
 0x1c7   : > { %11045 = vmatprep.subr.msk.bf16.mxu0 %vm526_vm0, %v2945_v33  ;;  %v2894_v32 = vld [vmem:[%s11401_s22 + $0x3e] sm:$0xff]  ;;  %v2895_v33 = vld [vmem:[%s11401_s22 + $0x46] sm:$0xff] }
 0x1c8   : > { %v2929_v36 = vpack.c.bf16 %v2896_v34, %v2895_v33 }
 0x1cd   : > { %9794 = vmatmul.mubr.msk.bf16.gmra.mrb[4].mxu0 %vm471_vm1, %v1956_v56  ;;  %v2579_v56 = vld [vmem:[%s11401_s22 + $0x8d] sm:$0xff] }
 0x1ce   : > { %9797 = vmatprep.mubr.msk.bf16.mxu0 %vm471_vm1, %v1957_v61  ;;  %v2608_v58 = vpack.c.bf16 %v2579_v56, %v2578_v55  ;;  %v2582_v61 = vld [vmem:[%s11401_s22 + $0xa5] sm:$0xff]  ;;  %v2909_v55 = vld [vmem:[%s11401_s22 + $0xb6] sm:$0xff] }
 0x1cf   : > { %v2910_v56 = vld [vmem:[%s11401_s22 + $0xbe] sm:$0xff] }
 0x1d0   : > { %v2936_v59 = vpack.c.bf16 %v2910_v56, %v2909_v55 }
 0x1d5   : > { %9798 = vmatmul.mubr.msk.bf16.gmra.mrb[8].mxu0 %vm471_vm1, %v1958_v62  ;;  %v2583_v62 = vld [vmem:[%s11401_s22 + $0xad] sm:$0xff] }
 0x1d6   : > { %9801 = vmatprep.mubr.msk.bf16.mxu0 %vm471_vm1, %v1959_v3  ;;  %v2610_v0 = vpack.c.bf16 %v2583_v62, %v2582_v61  ;;  %v2586_v3 = vld [vmem:[%s11401_s22 + $0xc5] sm:$0xff]  ;;  %v2913_v61 = vld [vmem:[%s11401_s22 + $0xd6] sm:$0xff] }
 0x1d7   : > { %v2914_v62 = vld [vmem:[%s11401_s22 + $0xde] sm:$0xff] }
 0x1d8   : > { %v2938_v1 = vpack.c.bf16 %v2914_v62, %v2913_v61 }
 0x1dd   : > { %9802 = vmatmul.mubr.msk.bf16.gmra.mrb[12].mxu0 %vm471_vm1, %v1960_v4  ;;  %v2587_v4 = vld [vmem:[%s11401_s22 + $0xcd] sm:$0xff] }
 0x1de   : > { %9805 = vmatprep.mubr.msk.bf16.mxu0 %vm471_vm1, %v1961_v9  ;;  %v2612_v6 = vpack.c.bf16 %v2587_v4, %v2586_v3  ;;  %v2590_v9 = vld [vmem:[%s11401_s22 + $0xe5] sm:$0xff]  ;;  %v2917_v3 = vld [vmem:[%s11401_s22 + $0xf6] sm:$0xff] }
 0x1df   : > { %v2918_v4 = vld [vmem:[%s11401_s22 + $0xfe] sm:$0xff] }
 0x1e0   : > { %v2940_v7 = vpack.c.bf16 %v2918_v4, %v2917_v3 }
 0x1e5   : > { %9806 = vmatmul.mubr.msk.bf16.gmra.mrb[16].mxu0 %vm471_vm1, %v1962_v10  ;;  %v2591_v10 = vld [vmem:[%s11401_s22 + $0xed] sm:$0xff] }
 0x1e6   : > { %9809 = vmatprep.mubr.msk.bf16.mxu0 %vm471_vm1, %v1963_v15  ;;  %v2614_v12 = vpack.c.bf16 %v2591_v10, %v2590_v9  ;;  %v2594_v15 = vld [vmem:[%s11401_s22 + $0x105] sm:$0xff]  ;;  %v2921_v9 = vld [vmem:[%s11401_s22 + $0x116] sm:$0xff] }
 0x1e7   : > { %v2922_v10 = vld [vmem:[%s11401_s22 + $0x11e] sm:$0xff] }
 0x1e8   : > { %v2942_v13 = vpack.c.bf16 %v2922_v10, %v2921_v9 }
 0x1ed   : > { %9810 = vmatmul.mubr.msk.bf16.gmra.mrb[20].mxu0 %vm471_vm1, %v1964_v16  ;;  %v2595_v16 = vld [vmem:[%s11401_s22 + $0x10d] sm:$0xff] }
 0x1ee   : > { %9813 = vmatprep.mubr.msk.bf16.mxu0 %vm471_vm1, %v1965_v21  ;;  %v2616_v18 = vpack.c.bf16 %v2595_v16, %v2594_v15  ;;  %v2598_v21 = vld [vmem:[%s11401_s22 + $0x125] sm:$0xff]  ;;  %v2925_v15 = vld [vmem:[%s11401_s22 + $0x136] sm:$0xff] }
 0x1ef   : > { %v2926_v16 = vld [vmem:[%s11401_s22 + $0x13e] sm:$0xff] }
 0x1f5   : > { %9814 = vmatmul.mubr.msk.bf16.gmra.mrb[24].mxu0 %vm471_vm1, %v1966_v22  ;;  %v2599_v22 = vld [vmem:[%s11401_s22 + $0x12d] sm:$0xff] }
 0x1f6   : > { %9817 = vmatprep.mubr.msk.bf16.mxu0 %vm471_vm1, %v1967_v27  ;;  %v2618_v24 = vpack.c.bf16 %v2599_v22, %v2598_v21  ;;  %v2891_v27 = vld [vmem:[%s11401_s22 + $0x26] sm:$0xff]  ;;  %v11902_v21 = vld [vmem:[%s14015_s2] ss:$0 sm:$0xff] }
 0x1fd   : > { %9818 = vmatmul.mubr.msk.bf16.gmra.mrb[28].mxu0 %vm471_vm1, %v1968_v28  ;;  %v2892_v28 = vld [vmem:[%s11401_s22 + $0x2e] sm:$0xff] }
 0x1fe   : > { %9821 = vmatprep.mubr.msk.bf16.mxu0 %vm471_vm1, %v1969_v31  ;;  %v2927_v30 = vpack.c.bf16 %v2892_v28, %v2891_v27  ;;  %v2893_v31 = vld [vmem:[%s11401_s22 + $0x36] sm:$0xff] }
 0x1ff   : > { %v2928_v35 = vpack.c.bf16 %v2894_v32, %v2893_v31 }
 0x205   : > { %9822 = vmatmul.mubr.msk.bf16.gmra.mrb[32].mxu0 %vm471_vm1, %v2294_v38  ;;  %v2898_v38 = vld [vmem:[%s11401_s22 + $0x5e] sm:$0xff] }
 0x206   : > { %9827 = vmatprep.mubr.msk.bf16.mxu0 %vm471_vm1, %v2602_v39  ;;  %v2899_v39 = vld [vmem:[%s11401_s22 + $0x66] sm:$0xff]  ;;  %v2930_v41 = vpack.c.bf16 %v2898_v38, %v2897_v37 }
 0x207   : > { %v2931_v42 = vpack.c.bf16 %v2900_v40, %v2899_v39 }
 0x20d   : > { %9828 = vmatmul.mubr.msk.bf16.vlgmr.msra.gmra.mrb[0].mxu0 %vm471_vm1, %v2603_v44  ;;  %v2902_v44 = vld [vmem:[%s11401_s22 + $0x7e] sm:$0xff] }
 0x20e   : > { %9831 = vmatprep.mubr.msk.bf16.mxu0 %vm471_vm1, %v2604_v45  ;;  %9864 = vmatpush3.bf16.msra.mxu0 %v3001_v46  ;;  %v2903_v45 = vld [vmem:[%s11401_s22 + $0x86] sm:$0xff]  ;;  %v2904_v46 = vld [vmem:[%s11401_s22 + $0x8e] sm:$0xff]  ;;  %v2932_v47 = vpack.c.bf16 %v2902_v44, %v2901_v43 }
 0x20f   : > { %v2933_v48 = vpack.c.bf16 %v2904_v46, %v2903_v45 }
 0x215   : > { %9832 = vmatmul.mubr.msk.bf16.gmra.mrb[4].mxu0 %vm471_vm1, %v2605_v51  ;;  %v2907_v51 = vld [vmem:[%s11401_s22 + $0xa6] sm:$0xff] }
 0x216   : > { %9835 = vmatprep.mubr.msk.bf16.mxu0 %vm471_vm1, %v2606_v52  ;;  %v2908_v52 = vld [vmem:[%s11401_s22 + $0xae] sm:$0xff] }
 0x217   : > { %v2935_v54 = vpack.c.bf16 %v2908_v52, %v2907_v51 }
 0x21d   : > { %9836 = vmatmul.mubr.msk.bf16.gmra.mrb[8].mxu0 %vm471_vm1, %v2607_v57  ;;  %v2911_v57 = vld [vmem:[%s11401_s22 + $0xc6] sm:$0xff] }
 0x21e   : > { %9839 = vmatprep.mubr.msk.bf16.mxu0 %vm471_vm1, %v2608_v58  ;;  %v2912_v58 = vld [vmem:[%s11401_s22 + $0xce] sm:$0xff] }
 0x21f   : > { %v2937_v60 = vpack.c.bf16 %v2912_v58, %v2911_v57 }
 0x225   : > { %9840 = vmatmul.mubr.msk.bf16.gmra.mrb[12].mxu0 %vm471_vm1, %v2609_v63  ;;  %v2915_v63 = vld [vmem:[%s11401_s22 + $0xe6] sm:$0xff] }
 0x226   : > { %9843 = vmatprep.mubr.msk.bf16.mxu0 %vm471_vm1, %v2610_v0  ;;  %v2916_v0 = vld [vmem:[%s11401_s22 + $0xee] sm:$0xff] }
 0x227   : > { %v2939_v2 = vpack.c.bf16 %v2916_v0, %v2915_v63 }
 0x22d   : > { %9844 = vmatmul.mubr.msk.bf16.gmra.mrb[16].mxu0 %vm471_vm1, %v2611_v5  ;;  %v2919_v5 = vld [vmem:[%s11401_s22 + $0x106] sm:$0xff] }
 0x22e   : > { %9847 = vmatprep.mubr.msk.bf16.mxu0 %vm471_vm1, %v2612_v6  ;;  %v2920_v6 = vld [vmem:[%s11401_s22 + $0x10e] sm:$0xff] }
 0x22f   : > { %v2941_v8 = vpack.c.bf16 %v2920_v6, %v2919_v5 }
 0x235   : > { %9848 = vmatmul.mubr.msk.bf16.gmra.mrb[20].mxu0 %vm471_vm1, %v2613_v11  ;;  %v2923_v11 = vld [vmem:[%s11401_s22 + $0x126] sm:$0xff] }
 0x236   : > { %9851 = vmatprep.mubr.msk.bf16.mxu0 %vm471_vm1, %v2614_v12  ;;  %v2924_v12 = vld [vmem:[%s11401_s22 + $0x12e] sm:$0xff] }
 0x237   : > { %v2943_v14 = vpack.c.bf16 %v2924_v12, %v2923_v11 }
 0x23d   : > { %9852 = vmatmul.mubr.msk.bf16.gmra.mrb[24].mxu0 %vm471_vm1, %v2615_v17  ;;  %v2944_v17 = vpack.c.bf16 %v2926_v16, %v2925_v15 }
 0x23e   : > { %9855 = vmatprep.mubr.msk.bf16.mxu0 %vm471_vm1, %v2616_v18  ;;  %v3296_v18 = vld [vmem:[%s14016_s3 + $0x8] sm:$0xff] }
 0x245   : > { %9856 = vmatmul.mubr.msk.bf16.gmra.mrb[28].mxu0 %vm471_vm1, %v2617_v23 }
 0x246   : > { %9859 = vmatprep.mubr.msk.bf16.mxu0 %vm471_vm1, %v2618_v24 }
 0x24d   : > { %9860 = vmatmul.mubr.msk.bf16.gmra.mrb[32].mxu0 %vm471_vm1, %v2619_v29 }
 0x24e   : > { %9865 = vmatprep.mubr.msk.bf16.mxu0 %vm471_vm1, %v2927_v30 }
 0x255   : > { %9866 = vmatmul.mubr.msk.bf16.vlgmr.msra.gmra.mrb[0].mxu0 %vm471_vm1, %v2928_v35 }
 0x256   : > { %9869 = vmatprep.mubr.msk.bf16.mxu0 %vm471_vm1, %v2929_v36 }
 0x25d   : > { %9870 = vmatmul.mubr.msk.bf16.gmra.mrb[4].mxu0 %vm471_vm1, %v2930_v41 }
 0x25e   : > { %9873 = vmatprep.mubr.msk.bf16.mxu0 %vm471_vm1, %v2931_v42 }
 0x265   : > { %9874 = vmatmul.mubr.msk.bf16.gmra.mrb[8].mxu0 %vm471_vm1, %v2932_v47 }
 0x266   : > { %9877 = vmatprep.mubr.msk.bf16.mxu0 %vm471_vm1, %v2933_v48 }
 0x26d   : > { %9878 = vmatmul.mubr.msk.bf16.gmra.mrb[12].mxu0 %vm471_vm1, %v2934_v53 }
 0x26e   : > { %9881 = vmatprep.mubr.msk.bf16.mxu0 %vm471_vm1, %v2935_v54 }
 0x275   : > { %9882 = vmatmul.mubr.msk.bf16.gmra.mrb[16].mxu0 %vm471_vm1, %v2936_v59 }
 0x276   : > { %9885 = vmatprep.mubr.msk.bf16.mxu0 %vm471_vm1, %v2937_v60 }
 0x27d   : > { %9886 = vmatmul.mubr.msk.bf16.gmra.mrb[20].mxu0 %vm471_vm1, %v2938_v1 }
 0x27e   : > { %9889 = vmatprep.mubr.msk.bf16.mxu0 %vm471_vm1, %v2939_v2 }
 0x285   : > { %9890 = vmatmul.mubr.msk.bf16.gmra.mrb[24].mxu0 %vm471_vm1, %v2940_v7 }
 0x286   : > { %9893 = vmatprep.mubr.msk.bf16.mxu0 %vm471_vm1, %v2941_v8 }
 0x28d   : > { %9894 = vmatmul.mubr.msk.bf16.gmra.mrb[28].mxu0 %vm471_vm1, %v2942_v13 }
 0x28e   : > { %9897 = vmatprep.mubr.msk.bf16.mxu0 %vm471_vm1, %v2943_v14 }
 0x295   : > { %9898 = vmatmul.mubr.msk.bf16.gmra.mrb[32].mxu0 %vm471_vm1, %v2944_v17 }
 0x296   : > { %3438 = vmatprep.mubr.f32.mxu0 %v3296_v18 }
 0x328   : > { %v9867_v22 = vpop.f32.mrb[0].mxu0 }
 0x329   : > { %v3225_v23 = vadd.f32 %v9867_v22, %v11902_v21  ;;  %v3037_v24 = vpop.f32.mrb[1].mxu0 }
 0x32a   : > { %v3223_v25 = vadd.f32 %v11902_v21, %v3037_v24  ;;  %v9868_v26 = vpop.f32.mrb[2].mxu0 }
 0x32b   : > { %v3226_v27 = vadd.f32 %v9868_v26, %v11902_v21  ;;  %v3040_v28 = vpop.f32.mrb[3].mxu0  ;;  %v3261_v30 = vmax.f32 %v3225_v23, 0.0 }
 0x32c   : > { %v3224_v29 = vadd.f32 %v11902_v21, %v3040_v28  ;;  %v3259_v32 = vmax.f32 %v3223_v25, 0.0 }
 0x32d   : > { %v3262_v31 = vmax.f32 %v3226_v27, 0.0 }
 0x32e   : > { %v3260_v33 = vmax.f32 %v3224_v29, 0.0 }
 0x32f   : > { %v11908_v34 = vpack.c.bf16 %v3262_v31, %v3261_v30 }
 0x330   : > { %v11910_v35 = vpack.c.bf16 %v3260_v33, %v3259_v32  ;;  %v9871_v36 = vpop.f32.mrb[4].mxu0 }
 0x331   : > { %v3229_v37 = vadd.f32 %v9871_v36, %v11902_v21  ;;  %v3053_v38 = vpop.f32.mrb[5].mxu0 }
 0x332   : > { %v3227_v39 = vadd.f32 %v11902_v21, %v3053_v38  ;;  %v9872_v40 = vpop.f32.mrb[6].mxu0 }
 0x333   : > { %v3230_v41 = vadd.f32 %v9872_v40, %v11902_v21  ;;  %v3056_v42 = vpop.f32.mrb[7].mxu0  ;;  %v3265_v44 = vmax.f32 %v3229_v37, 0.0 }
 0x334   : > { %v3228_v43 = vadd.f32 %v11902_v21, %v3056_v42  ;;  %v3263_v46 = vmax.f32 %v3227_v39, 0.0 }
 0x335   : > { %v3266_v45 = vmax.f32 %v3230_v41, 0.0 }
 0x336   : > { %v3264_v47 = vmax.f32 %v3228_v43, 0.0 }
 0x337   : > { %v11916_v48 = vpack.c.bf16 %v3266_v45, %v3265_v44 }
 0x338   : > { %v11918_v49 = vpack.c.bf16 %v3264_v47, %v3263_v46  ;;  %v9875_v50 = vpop.f32.mrb[8].mxu0 }
 0x339   : > { %v3233_v51 = vadd.f32 %v9875_v50, %v11902_v21  ;;  %v3069_v52 = vpop.f32.mrb[9].mxu0 }
 0x33a   : > { %v3231_v53 = vadd.f32 %v11902_v21, %v3069_v52  ;;  %v9876_v54 = vpop.f32.mrb[10].mxu0 }
 0x33b   : > { %v3234_v55 = vadd.f32 %v9876_v54, %v11902_v21  ;;  %v3072_v56 = vpop.f32.mrb[11].mxu0  ;;  %v3269_v58 = vmax.f32 %v3233_v51, 0.0 }
 0x33c   : > { %v3232_v57 = vadd.f32 %v11902_v21, %v3072_v56  ;;  %v3267_v60 = vmax.f32 %v3231_v53, 0.0 }
 0x33d   : > { %v3270_v59 = vmax.f32 %v3234_v55, 0.0 }
 0x33e   : > { %v3268_v61 = vmax.f32 %v3232_v57, 0.0 }
 0x33f   : > { %v11924_v62 = vpack.c.bf16 %v3270_v59, %v3269_v58 }
 0x340   : > { %v11926_v63 = vpack.c.bf16 %v3268_v61, %v3267_v60  ;;  %v9879_v0 = vpop.f32.mrb[12].mxu0 }
 0x341   : > { %v3237_v1 = vadd.f32 %v9879_v0, %v11902_v21  ;;  %v3085_v2 = vpop.f32.mrb[13].mxu0 }
 0x342   : > { %v3235_v3 = vadd.f32 %v11902_v21, %v3085_v2  ;;  %v9880_v4 = vpop.f32.mrb[14].mxu0 }
 0x343   : > { %v3238_v5 = vadd.f32 %v9880_v4, %v11902_v21  ;;  %v3088_v6 = vpop.f32.mrb[15].mxu0  ;;  %v3273_v8 = vmax.f32 %v3237_v1, 0.0 }
 0x344   : > { %v3236_v7 = vadd.f32 %v11902_v21, %v3088_v6  ;;  %v3271_v10 = vmax.f32 %v3235_v3, 0.0 }
 0x345   : > { %v3274_v9 = vmax.f32 %v3238_v5, 0.0 }
 0x346   : > { %v3272_v11 = vmax.f32 %v3236_v7, 0.0 }
 0x347   : > { %v11932_v12 = vpack.c.bf16 %v3274_v9, %v3273_v8 }
 0x348   : > { %v11934_v13 = vpack.c.bf16 %v3272_v11, %v3271_v10  ;;  %v9883_v14 = vpop.f32.mrb[16].mxu0 }
 0x349   : > { %v3241_v15 = vadd.f32 %v9883_v14, %v11902_v21  ;;  %v3101_v16 = vpop.f32.mrb[17].mxu0 }
 0x34a   : > { %v3239_v17 = vadd.f32 %v11902_v21, %v3101_v16  ;;  %v9884_v18 = vpop.f32.mrb[18].mxu0 }
 0x34b   : > { %v3242_v22 = vadd.f32 %v9884_v18, %v11902_v21  ;;  %v3104_v23 = vpop.f32.mrb[19].mxu0  ;;  %v3277_v25 = vmax.f32 %v3241_v15, 0.0 }
 0x34c   : > { %v3240_v24 = vadd.f32 %v11902_v21, %v3104_v23  ;;  %v3275_v27 = vmax.f32 %v3239_v17, 0.0 }
 0x34d   : > { %v3278_v26 = vmax.f32 %v3242_v22, 0.0 }
 0x34e   : > { %v3276_v28 = vmax.f32 %v3240_v24, 0.0 }
 0x34f   : > { %v11940_v29 = vpack.c.bf16 %v3278_v26, %v3277_v25 }
 0x350   : > { %v11942_v30 = vpack.c.bf16 %v3276_v28, %v3275_v27  ;;  %v9887_v31 = vpop.f32.mrb[20].mxu0 }
 0x351   : > { %v3245_v32 = vadd.f32 %v9887_v31, %v11902_v21  ;;  %v3117_v33 = vpop.f32.mrb[21].mxu0 }
 0x352   : > { %v3243_v36 = vadd.f32 %v11902_v21, %v3117_v33  ;;  %v9888_v37 = vpop.f32.mrb[22].mxu0  ;;  %10482 = vmatprep.subr.bf16.mxu0 %v11942_v30 }
 0x353   : > { %v3246_v38 = vadd.f32 %v9888_v37, %v11902_v21  ;;  %v3120_v39 = vpop.f32.mrb[23].mxu0  ;;  %10484 = vmatpush3.bf16.msra.mxu0 %v11910_v35  ;;  %v3281_v41 = vmax.f32 %v3245_v32, 0.0  ;;  %v3295_v37 = vld [vmem:[%s14016_s3] sm:$0xff] }
 0x354   : > { %v3244_v40 = vadd.f32 %v11902_v21, %v3120_v39  ;;  %10486 = vmatprep.subr.bf16.mxu0 %v11940_v29  ;;  %v3279_v43 = vmax.f32 %v3243_v36, 0.0  ;;  %v3298_v39 = vld [vmem:[%s14016_s3 + $0x18] sm:$0xff] }
 0x355   : > { %v3282_v42 = vmax.f32 %v3246_v38, 0.0 }
 0x356   : > { %v3280_v44 = vmax.f32 %v3244_v40, 0.0  ;;  %v3302_v40 = vld [vmem:[%s14016_s3 + $0x38] sm:$0xff] }
 0x357   : > { %v11951_v45 = vpack.c.bf16 %v3282_v42, %v3281_v41  ;;  %10488 = vmatpush3.bf16.msra.mxu0 %v11908_v34  ;;  %v3297_v41 = vld [vmem:[%s14016_s3 + $0x10] sm:$0xff] }
 0x358   : > { %v11954_v46 = vpack.c.bf16 %v3280_v44, %v3279_v43  ;;  %v9891_v47 = vpop.f32.mrb[24].mxu0  ;;  %v3301_v42 = vld [vmem:[%s14016_s3 + $0x30] sm:$0xff]  ;;  %v3300_v43 = vld [vmem:[%s14016_s3 + $0x28] sm:$0xff] }
 0x359   : > { %v3249_v50 = vadd.f32 %v9891_v47, %v11902_v21  ;;  %v3133_v51 = vpop.f32.mrb[25].mxu0  ;;  %v3305_v44 = vld [vmem:[%s14016_s3 + $0x50] sm:$0xff]  ;;  %v3304_v47 = vld [vmem:[%s14016_s3 + $0x48] sm:$0xff] }
 0x35a   : > { %v3247_v52 = vadd.f32 %v11902_v21, %v3133_v51  ;;  %v9892_v53 = vpop.f32.mrb[26].mxu0  ;;  %10490 = vmatprep.subr.bf16.mxu0 %v11954_v46  ;;  %v3308_v51 = vld [vmem:[%s14016_s3 + $0x68] sm:$0xff] }
 0x35b   : > { %v3250_v54 = vadd.f32 %v9892_v53, %v11902_v21  ;;  %v3136_v55 = vpop.f32.mrb[27].mxu0  ;;  %10492 = vmatpush3.bf16.msra.mxu0 %v11918_v49  ;;  %v3285_v57 = vmax.f32 %v3249_v50, 0.0  ;;  %v3303_v50 = vld [vmem:[%s14016_s3 + $0x40] sm:$0xff]  ;;  %v3306_v53 = vld [vmem:[%s14016_s3 + $0x58] sm:$0xff] }
 0x35c   : > { %v3248_v56 = vadd.f32 %v11902_v21, %v3136_v55  ;;  %10494 = vmatprep.subr.bf16.mxu0 %v11951_v45  ;;  %v3283_v59 = vmax.f32 %v3247_v52, 0.0  ;;  %v3307_v52 = vld [vmem:[%s14016_s3 + $0x60] sm:$0xff]  ;;  %v3310_v55 = vld [vmem:[%s14016_s3 + $0x78] sm:$0xff] }
 0x35d   : > { %v3286_v58 = vmax.f32 %v3250_v54, 0.0  ;;  %v3311_v54 = vld [vmem:[%s14016_s3 + $0x80] sm:$0xff] }
 0x35e   : > { %v3284_v60 = vmax.f32 %v3248_v56, 0.0  ;;  %v3309_v56 = vld [vmem:[%s14016_s3 + $0x70] sm:$0xff] }
 0x35f   : > { %v11963_v61 = vpack.c.bf16 %v3286_v58, %v3285_v57  ;;  %10496 = vmatpush3.bf16.msra.mxu0 %v11916_v48  ;;  %v3314_v57 = vld [vmem:[%s14016_s3 + $0x98] sm:$0xff]  ;;  %v3313_v58 = vld [vmem:[%s14016_s3 + $0x90] sm:$0xff] }
 0x360   : > { %v11966_v0 = vpack.c.bf16 %v3284_v60, %v3283_v59  ;;  %v9895_v1 = vpop.f32.mrb[28].mxu0  ;;  %v3312_v59 = vld [vmem:[%s14016_s3 + $0x88] sm:$0xff]  ;;  %v3317_v60 = vld [vmem:[%s14016_s3 + $0xb0] sm:$0xff] }
 0x361   : > { %v3253_v2 = vadd.f32 %v9895_v1, %v11902_v21  ;;  %v3149_v3 = vpop.f32.mrb[29].mxu0  ;;  %v3316_v1 = vld [vmem:[%s14016_s3 + $0xa8] sm:$0xff] }
 0x362   : > { %v3251_v4 = vadd.f32 %v11902_v21, %v3149_v3  ;;  %v9896_v5 = vpop.f32.mrb[30].mxu0  ;;  %10498 = vmatprep.subr.bf16.mxu0 %v11966_v0  ;;  %v3320_v3 = vld [vmem:[%s14016_s3 + $0xc8] sm:$0xff] }
 0x363   : > { %v3254_v6 = vadd.f32 %v9896_v5, %v11902_v21  ;;  %v3152_v7 = vpop.f32.mrb[31].mxu0  ;;  %10500 = vmatpush3.bf16.msra.mxu0 %v11926_v63  ;;  %v3289_v9 = vmax.f32 %v3253_v2, 0.0  ;;  %v3315_v2 = vld [vmem:[%s14016_s3 + $0xa0] sm:$0xff]  ;;  %v3318_v5 = vld [vmem:[%s14016_s3 + $0xb8] sm:$0xff] }
 0x364   : > { %v3252_v8 = vadd.f32 %v11902_v21, %v3152_v7  ;;  %10502 = vmatprep.subr.bf16.mxu0 %v11963_v61  ;;  %v3287_v11 = vmax.f32 %v3251_v4, 0.0  ;;  %v3319_v4 = vld [vmem:[%s14016_s3 + $0xc0] sm:$0xff]  ;;  %v3322_v7 = vld [vmem:[%s14016_s3 + $0xd8] sm:$0xff] }
 0x365   : > { %v3290_v10 = vmax.f32 %v3254_v6, 0.0  ;;  %v3323_v6 = vld [vmem:[%s14016_s3 + $0xe0] sm:$0xff] }
 0x366   : > { %v3288_v14 = vmax.f32 %v3252_v8, 0.0  ;;  %v3321_v8 = vld [vmem:[%s14016_s3 + $0xd0] sm:$0xff] }
 0x367   : > { %v11975_v15 = vpack.c.bf16 %v3290_v10, %v3289_v9  ;;  %10504 = vmatpush3.bf16.msra.mxu0 %v11924_v62  ;;  %v3326_v9 = vld [vmem:[%s14016_s3 + $0xf8] sm:$0xff]  ;;  %v3325_v10 = vld [vmem:[%s14016_s3 + $0xf0] sm:$0xff] }
 0x368   : > { %v11978_v16 = vpack.c.bf16 %v3288_v14, %v3287_v11  ;;  %v9899_v17 = vpop.f32.mrb[32].mxu0  ;;  %v3324_v11 = vld [vmem:[%s14016_s3 + $0xe8] sm:$0xff]  ;;  %v3329_v14 = vld [vmem:[%s14016_s3 + $0x110] sm:$0xff] }
 0x369   : > { %v3257_v18 = vadd.f32 %v9899_v17, %v11902_v21  ;;  %v3165_v22 = vpop.f32.mrb[33].mxu0  ;;  %v3328_v17 = vld [vmem:[%s14016_s3 + $0x108] sm:$0xff] }
 0x36a   : > { %v3255_v23 = vadd.f32 %v11902_v21, %v3165_v22  ;;  %v9900_v24 = vpop.f32.mrb[34].mxu0  ;;  %10506 = vmatprep.subr.bf16.mxu0 %v11978_v16  ;;  %v3332_v22 = vld [vmem:[%s14016_s3 + $0x128] sm:$0xff] }
 0x36b   : > { %v3258_v25 = vadd.f32 %v9900_v24, %v11902_v21  ;;  %v3168_v26 = vpop.f32.mrb[35].mxu0  ;;  %10508 = vmatpush3.bf16.msra.mxu0 %v11934_v13  ;;  %v3293_v28 = vmax.f32 %v3257_v18, 0.0  ;;  %v3327_v18 = vld [vmem:[%s14016_s3 + $0x100] sm:$0xff]  ;;  %v3330_v24 = vld [vmem:[%s14016_s3 + $0x118] sm:$0xff] }
 0x36c   : > { %v3256_v27 = vadd.f32 %v11902_v21, %v3168_v26  ;;  %10510 = vmatprep.subr.bf16.mxu0 %v11975_v15  ;;  %v3291_v32 = vmax.f32 %v3255_v23, 0.0  ;;  %v3299_v21 = vld [vmem:[%s14016_s3 + $0x20] sm:$0xff]  ;;  %v8468_v26 = vld [vmem:[%s14016_s3 + $0x138] sm:$0xff] }
 0x36d   : > { %v3294_v31 = vmax.f32 %v3258_v25, 0.0  ;;  %v3331_v23 = vld [vmem:[%s14016_s3 + $0x120] sm:$0xff] }
 0x36e   : > { %v3292_v33 = vmax.f32 %v3256_v27, 0.0  ;;  %v8469_v25 = vld [vmem:[%s14016_s3 + $0x140] sm:$0xff]  ;;  %v3333_v27 = vld [vmem:[%s14016_s3 + $0x130] sm:$0xff] }
 0x36f   : > { %v11987_v36 = vpack.c.bf16 %v3294_v31, %v3293_v28  ;;  %10512 = vmatpush3.bf16.msra.mxu0 %v11932_v12  ;;  %v8472_v28 = vld [vmem:[%s14016_s3 + $0x158] sm:$0xff]  ;;  %v8471_v31 = vld [vmem:[%s14016_s3 + $0x150] sm:$0xff] }
 0x370   : > { %v11993_v38 = vpack.c.bf16 %v3292_v33, %v3291_v32  ;;  %10520 = vmatprep.subr.bf16.mxu0 %v11942_v30  ;;  %v8470_v32 = vld [vmem:[%s14016_s3 + $0x148] sm:$0xff]  ;;  %v8475_v33 = vld [vmem:[%s14016_s3 + $0x170] sm:$0xff] }
 0x372   : > { %10515 = vmatpush3.bf16.msra.mxu1 %v11993_v38  ;;  %3439 = vmatmul.mubr.f32.vlgmr.msra.gmra.mrb[36].mxu0 %v3295_v37  ;;  %v8474_v37 = vld [vmem:[%s14016_s3 + $0x168] sm:$0xff] }
 0x373   : > { %10522 = vmatpush3.bf16.msra.mxu0 %v11910_v35  ;;  %10516 = vmatprep.subr.bf16.mxu1 %v11319_v19 }
 0x374   : > { %10524 = vmatprep.subr.bf16.mxu0 %v11940_v29  ;;  %3443 = vmatprep.mubr.f32.mxu0 %v3299_v21  ;;  %v8473_v21 = vld [vmem:[%s14016_s3 + $0x160] sm:$0xff] }
 0x376   : > { %10518 = vmatpush3.bf16.msra.mxu1 %v11987_v36  ;;  %3444 = vmatmul.mubr.f32.gmra.mrb[38].mxu0 %v3298_v39  ;;  %v8478_v39 = vld [vmem:[%s14016_s3 + $0x188] sm:$0xff] }
 0x377   : > { %10526 = vmatpush3.bf16.msra.mxu0 %v11908_v34  ;;  %10551 = vmatprep.subr.bf16.mxu1 %v11319_v19 }
 0x378   : > { %10528 = vmatprep.subr.bf16.mxu0 %v11954_v46  ;;  %3448 = vmatprep.mubr.f32.mxu0 %v3302_v40  ;;  %v8477_v40 = vld [vmem:[%s14016_s3 + $0x180] sm:$0xff] }
 0x379   : > { %9910 = vmatmul.mubr.msk.f32.vlgmr.msra.gmra.mrb[0].mxu1 %vm3334_vm3, %v3297_v41  ;;  %v8476_v41 = vld [vmem:[%s14016_s3 + $0x178] sm:$0xff] }
 0x37a   : > { %10553 = vmatpush3.bf16.msra.mxu1 %v11993_v38  ;;  %9912 = vmatprep.mubr.msk.f32.mxu1 %vm11320_vm2, %v11321_v20 }
 0x37b   : > { %10530 = vmatpush3.bf16.msra.mxu0 %v11918_v49  ;;  %10554 = vmatprep.subr.bf16.mxu1 %v11319_v19 }
 0x37c   : > { %10532 = vmatprep.subr.bf16.mxu0 %v11951_v45  ;;  %3449 = vmatmul.mubr.f32.gmra.mrb[40].mxu0 %v3301_v42  ;;  %v8481_v42 = vld [vmem:[%s14016_s3 + $0x1a0] sm:$0xff] }
 0x37d   : > { %9913 = vmatmul.mubr.msk.f32.gmra.mrb[2].mxu1 %vm3334_vm3, %v3300_v43  ;;  %3453 = vmatprep.mubr.f32.mxu0 %v3305_v44  ;;  %v8480_v43 = vld [vmem:[%s14016_s3 + $0x198] sm:$0xff]  ;;  %v8479_v44 = vld [vmem:[%s14016_s3 + $0x190] sm:$0xff] }
 0x37e   : > { %10556 = vmatpush3.bf16.msra.mxu1 %v11987_v36  ;;  %9915 = vmatprep.mubr.msk.f32.mxu1 %vm11320_vm2, %v11321_v20 }
 0x37f   : > { %10534 = vmatpush3.bf16.msra.mxu0 %v11916_v48  ;;  %10558 = vmatprep.subr.bf16.mxu1 %v11942_v30 }
 0x380   : > { %10536 = vmatprep.subr.bf16.mxu0 %v11966_v0  ;;  %3454 = vmatmul.mubr.f32.gmra.mrb[42].mxu0 %v3304_v47  ;;  %v8484_v47 = vld [vmem:[%s14016_s3 + $0x1b8] sm:$0xff] }
 0x381   : > { %9916 = vmatmul.mubr.msk.f32.gmra.mrb[4].mxu1 %vm3334_vm3, %v3303_v50  ;;  %3458 = vmatprep.mubr.f32.mxu0 %v3308_v51  ;;  %v8483_v50 = vld [vmem:[%s14016_s3 + $0x1b0] sm:$0xff]  ;;  %v8482_v51 = vld [vmem:[%s14016_s3 + $0x1a8] sm:$0xff] }
 0x382   : > { %9918 = vmatprep.mubr.msk.f32.mxu1 %vm11320_vm2, %v11321_v20 }
 0x383   : > { %10538 = vmatpush3.bf16.msra.mxu0 %v11926_v63 }
 0x384   : > { %10540 = vmatprep.subr.bf16.mxu0 %v11963_v61  ;;  %3459 = vmatmul.mubr.f32.gmra.mrb[44].mxu0 %v3307_v52  ;;  %v8487_v52 = vld [vmem:[%s14016_s3 + $0x1d0] sm:$0xff] }
 0x385   : > { %9919 = vmatmul.mubr.msk.f32.gmra.mrb[6].mxu1 %vm3334_vm3, %v3306_v53  ;;  %3463 = vmatprep.mubr.f32.mxu0 %v3311_v54  ;;  %v8486_v53 = vld [vmem:[%s14016_s3 + $0x1c8] sm:$0xff]  ;;  %v8485_v54 = vld [vmem:[%s14016_s3 + $0x1c0] sm:$0xff] }
 0x386   : > { %9921 = vmatprep.mubr.msk.f32.mxu1 %vm11320_vm2, %v11321_v20 }
 0x387   : > { %10542 = vmatpush3.bf16.msra.mxu0 %v11924_v62 }
 0x388   : > { %10544 = vmatprep.subr.bf16.mxu0 %v11978_v16  ;;  %3464 = vmatmul.mubr.f32.gmra.mrb[46].mxu0 %v3310_v55  ;;  %v8490_v55 = vld [vmem:[%s14016_s3 + $0x1e8] sm:$0xff] }
 0x389   : > { %9922 = vmatmul.mubr.msk.f32.gmra.mrb[8].mxu1 %vm3334_vm3, %v3309_v56  ;;  %3468 = vmatprep.mubr.f32.mxu0 %v3314_v57  ;;  %v8489_v56 = vld [vmem:[%s14016_s3 + $0x1e0] sm:$0xff]  ;;  %v8488_v57 = vld [vmem:[%s14016_s3 + $0x1d8] sm:$0xff] }
 0x38a   : > { %9924 = vmatprep.mubr.msk.f32.mxu1 %vm11320_vm2, %v11321_v20 }
 0x38b   : > { %10546 = vmatpush3.bf16.msra.mxu0 %v11934_v13 }
 0x38c   : > { %10548 = vmatprep.subr.bf16.mxu0 %v11975_v15  ;;  %3469 = vmatmul.mubr.f32.gmra.mrb[48].mxu0 %v3313_v58  ;;  %v8493_v58 = vld [vmem:[%s14016_s3 + $0x200] sm:$0xff] }
 0x38d   : > { %9925 = vmatmul.mubr.msk.f32.gmra.mrb[10].mxu1 %vm3334_vm3, %v3312_v59  ;;  %3473 = vmatprep.mubr.f32.mxu0 %v3317_v60  ;;  %v8492_v59 = vld [vmem:[%s14016_s3 + $0x1f8] sm:$0xff]  ;;  %v8491_v60 = vld [vmem:[%s14016_s3 + $0x1f0] sm:$0xff] }
 0x38e   : > { %9927 = vmatprep.mubr.msk.f32.mxu1 %vm11320_vm2, %v11321_v20 }
 0x38f   : > { %10550 = vmatpush3.bf16.msra.mxu0 %v11932_v12 }
 0x390   : > { %3474 = vmatmul.mubr.f32.gmra.mrb[50].mxu0 %v3316_v1  ;;  %10257 = vmatprep.subr.bf16.mxu0 %v11321_v20  ;;  %v8496_v1 = vld [vmem:[%s14016_s3 + $0x218] sm:$0xff] }
 0x391   : > { %9928 = vmatmul.mubr.msk.f32.gmra.mrb[12].mxu1 %vm3334_vm3, %v3315_v2  ;;  %3478 = vmatprep.mubr.f32.mxu0 %v3320_v3  ;;  %v8495_v2 = vld [vmem:[%s14016_s3 + $0x210] sm:$0xff]  ;;  %v8494_v3 = vld [vmem:[%s14016_s3 + $0x208] sm:$0xff] }
 0x392   : > { %9930 = vmatprep.mubr.msk.f32.mxu1 %vm11320_vm2, %v11321_v20 }
 0x394   : > { %3479 = vmatmul.mubr.f32.gmra.mrb[52].mxu0 %v3319_v4  ;;  %v8499_v4 = vld [vmem:[%s14016_s3 + $0x230] sm:$0xff] }
 0x395   : > { %9931 = vmatmul.mubr.msk.f32.gmra.mrb[14].mxu1 %vm3334_vm3, %v3318_v5  ;;  %3483 = vmatprep.mubr.f32.mxu0 %v3323_v6  ;;  %v8498_v5 = vld [vmem:[%s14016_s3 + $0x228] sm:$0xff]  ;;  %v8497_v6 = vld [vmem:[%s14016_s3 + $0x220] sm:$0xff] }
 0x396   : > { %9933 = vmatprep.mubr.msk.f32.mxu1 %vm11320_vm2, %v11321_v20 }
 0x398   : > { %3484 = vmatmul.mubr.f32.gmra.mrb[54].mxu0 %v3322_v7  ;;  %v8502_v7 = vld [vmem:[%s14016_s3 + $0x248] sm:$0xff] }
 0x399   : > { %9934 = vmatmul.mubr.msk.f32.gmra.mrb[16].mxu1 %vm3334_vm3, %v3321_v8  ;;  %3488 = vmatprep.mubr.f32.mxu0 %v3326_v9  ;;  %v8501_v8 = vld [vmem:[%s14016_s3 + $0x240] sm:$0xff]  ;;  %v8500_v9 = vld [vmem:[%s14016_s3 + $0x238] sm:$0xff] }
 0x39a   : > { %9936 = vmatprep.mubr.msk.f32.mxu1 %vm11320_vm2, %v11321_v20 }
 0x39c   : > { %3489 = vmatmul.mubr.f32.gmra.mrb[56].mxu0 %v3325_v10  ;;  %v8505_v10 = vld [vmem:[%s14016_s3 + $0x260] sm:$0xff] }
 0x39d   : > { %9937 = vmatmul.mubr.msk.f32.gmra.mrb[18].mxu1 %vm3334_vm3, %v3324_v11  ;;  %3493 = vmatprep.mubr.f32.mxu0 %v3329_v14  ;;  %v8504_v11 = vld [vmem:[%s14016_s3 + $0x258] sm:$0xff]  ;;  %v8503_v14 = vld [vmem:[%s14016_s3 + $0x250] sm:$0xff] }
 0x39e   : > { %9939 = vmatprep.mubr.msk.f32.mxu1 %vm11320_vm2, %v11321_v20 }
 0x3a0   : > { %3494 = vmatmul.mubr.f32.gmra.mrb[58].mxu0 %v3328_v17  ;;  %v8506_v17 = vld [vmem:[%s14016_s3 + $0x268] sm:$0xff] }
 0x3a1   : > { %9940 = vmatmul.mubr.msk.f32.gmra.mrb[20].mxu1 %vm3334_vm3, %v3327_v18  ;;  %3498 = vmatprep.mubr.f32.mxu0 %v3332_v22  ;;  %v8521_v18 = vld [vmem:[%s14016_s3 + $0x278] sm:$0xff]  ;;  %v8520_v22 = vld [vmem:[%s14016_s3 + $0x270] sm:$0xff] }
 0x3a2   : > { %9942 = vmatprep.mubr.msk.f32.mxu1 %vm11320_vm2, %v11321_v20 }
 0x3a4   : > { %3499 = vmatmul.mubr.f32.gmra.mrb[60].mxu0 %v3331_v23  ;;  %v8524_v23 = vld [vmem:[%s14016_s3 + $0x290] sm:$0xff] }
 0x3a5   : > { %9943 = vmatmul.mubr.msk.f32.gmra.mrb[22].mxu1 %vm3334_vm3, %v3330_v24  ;;  %3777 = vmatprep.mubr.f32.mxu0 %v8469_v25  ;;  %v8523_v24 = vld [vmem:[%s14016_s3 + $0x288] sm:$0xff] }
 0x3a6   : > { %9945 = vmatprep.mubr.msk.f32.mxu1 %vm11320_vm2, %v11321_v20  ;;  %v8527_v25 = vld [vmem:[%s14016_s3 + $0x2a8] sm:$0xff] }
 0x3a8   : > { %3778 = vmatmul.mubr.f32.vlgmr.msra.gmra.mrb[62].mxu0 %v8468_v26  ;;  %v8526_v26 = vld [vmem:[%s14016_s3 + $0x2a0] sm:$0xff] }
 0x3a9   : > { %9946 = vmatmul.mubr.msk.f32.gmra.mrb[24].mxu1 %vm3334_vm3, %v3333_v27  ;;  %3782 = vmatprep.mubr.f32.mxu0 %v8472_v28  ;;  %v8530_v27 = vld [vmem:[%s14016_s3 + $0x2c0] sm:$0xff]  ;;  %v8529_v28 = vld [vmem:[%s14016_s3 + $0x2b8] sm:$0xff] }
 0x3aa   : > { %9956 = vmatprep.mubr.msk.f32.mxu1 %vm11320_vm2, %v11321_v20 }
 0x3ac   : > { %3783 = vmatmul.mubr.f32.gmra.mrb[64].mxu0 %v8471_v31  ;;  %v8533_v31 = vld [vmem:[%s14016_s3 + $0x2d8] sm:$0xff] }
 0x3ad   : > { %9957 = vmatmul.mubr.msk.f32.vlgmr.msra.gmra.mrb[26].mxu1 %vm3334_vm3, %v8470_v32  ;;  %3787 = vmatprep.mubr.f32.mxu0 %v8475_v33  ;;  %v8536_v32 = vld [vmem:[%s14016_s3 + $0x2f0] sm:$0xff]  ;;  %v8535_v33 = vld [vmem:[%s14016_s3 + $0x2e8] sm:$0xff] }
 0x3ae   : > { %10560 = vmatpush3.bf16.msra.mxu1 %v11910_v35  ;;  %9959 = vmatprep.mubr.msk.f32.mxu1 %vm11320_vm2, %v11321_v20 }
 0x3af   : > { %10562 = vmatprep.subr.bf16.mxu1 %v11940_v29 }
 0x3b0   : > { %3788 = vmatmul.mubr.f32.gmra.mrb[66].mxu0 %v8474_v37  ;;  %v8539_v37 = vld [vmem:[%s14016_s3 + $0x308] sm:$0xff] }
 0x3b1   : > { %9960 = vmatmul.mubr.msk.f32.gmra.mrb[28].mxu1 %vm3334_vm3, %v8473_v21  ;;  %3792 = vmatprep.mubr.f32.mxu0 %v8478_v39  ;;  %v8538_v21 = vld [vmem:[%s14016_s3 + $0x300] sm:$0xff] }
 0x3b2   : > { %10564 = vmatpush3.bf16.msra.mxu1 %v11908_v34  ;;  %9962 = vmatprep.mubr.msk.f32.mxu1 %vm11320_vm2, %v11321_v20  ;;  %v8542_v39 = vld [vmem:[%s14016_s3 + $0x320] sm:$0xff] }
 0x3b3   : > { %10566 = vmatprep.subr.bf16.mxu1 %v11954_v46 }
 0x3b4   : > { %3793 = vmatmul.mubr.f32.gmra.mrb[68].mxu0 %v8477_v40  ;;  %v8541_v40 = vld [vmem:[%s14016_s3 + $0x318] sm:$0xff] }
 0x3b5   : > { %9963 = vmatmul.mubr.msk.f32.gmra.mrb[30].mxu1 %vm3334_vm3, %v8476_v41  ;;  %3797 = vmatprep.mubr.f32.mxu0 %v8481_v42  ;;  %v8545_v41 = vld [vmem:[%s14016_s3 + $0x338] sm:$0xff]  ;;  %v8544_v42 = vld [vmem:[%s14016_s3 + $0x330] sm:$0xff] }
 0x3b6   : > { %10568 = vmatpush3.bf16.msra.mxu1 %v11918_v49  ;;  %9965 = vmatprep.mubr.msk.f32.mxu1 %vm11320_vm2, %v11321_v20 }
 0x3b7   : > { %10570 = vmatprep.subr.bf16.mxu1 %v11951_v45 }
 0x3b8   : > { %3798 = vmatmul.mubr.f32.gmra.mrb[70].mxu0 %v8480_v43  ;;  %v8548_v43 = vld [vmem:[%s14016_s3 + $0x350] sm:$0xff] }
 0x3b9   : > { %9966 = vmatmul.mubr.msk.f32.gmra.mrb[32].mxu1 %vm3334_vm3, %v8479_v44  ;;  %3802 = vmatprep.mubr.f32.mxu0 %v8484_v47  ;;  %v8547_v44 = vld [vmem:[%s14016_s3 + $0x348] sm:$0xff] }
 0x3ba   : > { %10572 = vmatpush3.bf16.msra.mxu1 %v11916_v48  ;;  %9968 = vmatprep.mubr.msk.f32.mxu1 %vm11320_vm2, %v11321_v20  ;;  %v8551_v47 = vld [vmem:[%s14016_s3 + $0x368] sm:$0xff] }
 0x3bb   : > { %10574 = vmatprep.subr.bf16.mxu1 %v11966_v0 }
 0x3bc   : > { %3803 = vmatmul.mubr.f32.gmra.mrb[72].mxu0 %v8483_v50  ;;  %v8550_v50 = vld [vmem:[%s14016_s3 + $0x360] sm:$0xff] }
 0x3bd   : > { %9969 = vmatmul.mubr.msk.f32.gmra.mrb[34].mxu1 %vm3334_vm3, %v8482_v51  ;;  %3807 = vmatprep.mubr.f32.mxu0 %v8487_v52  ;;  %v8554_v51 = vld [vmem:[%s14016_s3 + $0x380] sm:$0xff]  ;;  %v8553_v52 = vld [vmem:[%s14016_s3 + $0x378] sm:$0xff] }
 0x3be   : > { %10576 = vmatpush3.bf16.msra.mxu1 %v11926_v63  ;;  %9971 = vmatprep.mubr.msk.f32.mxu1 %vm11320_vm2, %v11321_v20 }
 0x3bf   : > { %10578 = vmatprep.subr.bf16.mxu1 %v11963_v61 }
 0x3c0   : > { %3808 = vmatmul.mubr.f32.gmra.mrb[74].mxu0 %v8486_v53  ;;  %v8557_v53 = vld [vmem:[%s14016_s3 + $0x398] sm:$0xff] }
 0x3c1   : > { %9972 = vmatmul.mubr.msk.f32.gmra.mrb[36].mxu1 %vm3334_vm3, %v8485_v54  ;;  %3812 = vmatprep.mubr.f32.mxu0 %v8490_v55  ;;  %v8556_v54 = vld [vmem:[%s14016_s3 + $0x390] sm:$0xff]  ;;  %v8522_v55 = vld [vmem:[%s14016_s3 + $0x280] sm:$0xff] }
 0x3c2   : > { %10580 = vmatpush3.bf16.msra.mxu1 %v11924_v62  ;;  %9974 = vmatprep.mubr.msk.f32.mxu1 %vm11320_vm2, %v11321_v20 }
 0x3c3   : > { %10582 = vmatprep.subr.bf16.mxu1 %v11978_v16 }
 0x3c4   : > { %3813 = vmatmul.mubr.f32.gmra.mrb[76].mxu0 %v8489_v56  ;;  %v8525_v56 = vld [vmem:[%s14016_s3 + $0x298] sm:$0xff] }
 0x3c5   : > { %9975 = vmatmul.mubr.msk.f32.gmra.mrb[38].mxu1 %vm3334_vm3, %v8488_v57  ;;  %3817 = vmatprep.mubr.f32.mxu0 %v8493_v58  ;;  %v8576_v58 = vld [vmem:[%s14016_s3 + $0x3c8] sm:$0xff] }
 0x3c6   : > { %10584 = vmatpush3.bf16.msra.mxu1 %v11934_v13  ;;  %9977 = vmatprep.mubr.msk.f32.mxu1 %vm11320_vm2, %v11321_v20 }
 0x3c7   : > { %10586 = vmatprep.subr.bf16.mxu1 %v11975_v15 }
 0x3c8   : > { %3818 = vmatmul.mubr.f32.gmra.mrb[78].mxu0 %v8492_v59 }
 0x3c9   : > { %9978 = vmatmul.mubr.msk.f32.gmra.mrb[40].mxu1 %vm3334_vm3, %v8491_v60  ;;  %3822 = vmatprep.mubr.f32.mxu0 %v8496_v1  ;;  %v8575_v60 = vld [vmem:[%s14016_s3 + $0x3c0] sm:$0xff] }
 0x3ca   : > { %10588 = vmatpush3.bf16.msra.mxu1 %v11932_v12  ;;  %9980 = vmatprep.mubr.msk.f32.mxu1 %vm11320_vm2, %v11321_v20 }
 0x3cb   : > { %10589 = vmatprep.subr.bf16.mxu1 %v11319_v19 }
 0x3cc   : > { %3823 = vmatmul.mubr.f32.gmra.mrb[80].mxu0 %v8495_v2 }
 0x3cd   : > { %9981 = vmatmul.mubr.msk.f32.gmra.mrb[42].mxu1 %vm3334_vm3, %v8494_v3  ;;  %3827 = vmatprep.mubr.f32.mxu0 %v8499_v4  ;;  %v8579_v3 = vld [vmem:[%s14016_s3 + $0x3e0] sm:$0xff] }
 0x3ce   : > { %9983 = vmatprep.mubr.msk.f32.mxu1 %vm11320_vm2, %v11321_v20 }
 0x3d0   : > { %3828 = vmatmul.mubr.f32.gmra.mrb[82].mxu0 %v8498_v5 }
 0x3d1   : > { %9984 = vmatmul.mubr.msk.f32.gmra.mrb[44].mxu1 %vm3334_vm3, %v8497_v6  ;;  %3832 = vmatprep.mubr.f32.mxu0 %v8502_v7 }
 0x3d2   : > { %9986 = vmatprep.mubr.msk.f32.mxu1 %vm11320_vm2, %v11321_v20 }
 0x3d4   : > { %3833 = vmatmul.mubr.f32.gmra.mrb[84].mxu0 %v8501_v8  ;;  %v8582_v8 = vld [vmem:[%s14016_s3 + $0x3f8] sm:$0xff] }
 0x3d5   : > { %9987 = vmatmul.mubr.msk.f32.gmra.mrb[46].mxu1 %vm3334_vm3, %v8500_v9  ;;  %3837 = vmatprep.mubr.f32.mxu0 %v8505_v10 }
 0x3d6   : > { %9989 = vmatprep.mubr.msk.f32.mxu1 %vm11320_vm2, %v11321_v20 }
 0x3d8   : > { %3838 = vmatmul.mubr.f32.gmra.mrb[86].mxu0 %v8504_v11 }
 0x3d9   : > { %9990 = vmatmul.mubr.msk.f32.gmra.mrb[48].mxu1 %vm3334_vm3, %v8503_v14  ;;  %10265 = vmatprep.mubr.msk.bf16.mxu0 %vm11320_vm2, %v11321_v20 }
 0x3da   : > { %9992 = vmatprep.mubr.msk.f32.mxu1 %vm11320_vm2, %v11321_v20 }
 0x3dd   : > { %9993 = vmatmul.mubr.msk.f32.gmra.mrb[50].mxu1 %vm3334_vm3, %v8506_v17 }
 0x3de   : > { %4129 = vmatprep.mubr.f32.mxu1 %v8521_v18 }
 0x3e1   : > { %4130 = vmatmul.mubr.f32.vlgmr.msra.gmra.mrb[52].mxu1 %v8520_v22  ;;  %v8585_v22 = vld [vmem:[%s14016_s3 + $0x410] sm:$0xff] }
 0x3e2   : > { %10591 = vmatpush3.bf16.msra.mxu1 %v11993_v38  ;;  %4134 = vmatprep.mubr.f32.mxu1 %v8524_v23 }
 0x3e3   : > { %10592 = vmatprep.subr.bf16.mxu1 %v11319_v19 }
 0x3e5   : > { %4135 = vmatmul.mubr.f32.gmra.mrb[54].mxu1 %v8523_v24 }
 0x3e6   : > { %10594 = vmatpush3.bf16.msra.mxu1 %v11987_v36  ;;  %4139 = vmatprep.mubr.f32.mxu1 %v8527_v25 }
 0x3e7   : > { %10596 = vmatprep.subr.bf16.mxu1 %v11942_v30  ;;  %v8532_v30 = vld [vmem:[%s14016_s3 + $0x2d0] sm:$0xff] }
 0x3e9   : > { %4140 = vmatmul.mubr.f32.gmra.mrb[56].mxu1 %v8526_v26 }
 0x3ea   : > { %4144 = vmatprep.mubr.f32.mxu1 %v8530_v27 }
 0x3ed   : > { %4145 = vmatmul.mubr.f32.gmra.mrb[58].mxu1 %v8529_v28  ;;  %v8584_v28 = vld [vmem:[%s14016_s3 + $0x408] sm:$0xff] }
 0x3ee   : > { %4149 = vmatprep.mubr.f32.mxu1 %v8533_v31 }
 0x3f1   : > { %4150 = vmatmul.mubr.f32.gmra.mrb[60].mxu1 %v8532_v30  ;;  %v8588_v30 = vld [vmem:[%s14016_s3 + $0x428] sm:$0xff] }
 0x3f2   : > { %4154 = vmatprep.mubr.f32.mxu1 %v8536_v32 }
 0x3f5   : > { %4155 = vmatmul.mubr.f32.gmra.mrb[62].mxu1 %v8535_v33 }
 0x3f6   : > { %4159 = vmatprep.mubr.f32.mxu1 %v8539_v37 }
 0x3f9   : > { %4160 = vmatmul.mubr.f32.gmra.mrb[64].mxu1 %v8538_v21 }
 0x3fa   : > { %4164 = vmatprep.mubr.f32.mxu1 %v8542_v39 }
 0x3fd   : > { %4165 = vmatmul.mubr.f32.gmra.mrb[66].mxu1 %v8541_v40  ;;  %v8587_v40 = vld [vmem:[%s14016_s3 + $0x420] sm:$0xff] }
 0x3fe   : > { %4169 = vmatprep.mubr.f32.mxu1 %v8545_v41 }
 0x401   : > { %4170 = vmatmul.mubr.f32.gmra.mrb[68].mxu1 %v8544_v42  ;;  %v8591_v42 = vld [vmem:[%s14016_s3 + $0x440] sm:$0xff] }
 0x402   : > { %4174 = vmatprep.mubr.f32.mxu1 %v8548_v43 }
 0x405   : > { %4175 = vmatmul.mubr.f32.gmra.mrb[70].mxu1 %v8547_v44 }
 0x406   : > { %4179 = vmatprep.mubr.f32.mxu1 %v8551_v47 }
 0x409   : > { %4180 = vmatmul.mubr.f32.gmra.mrb[72].mxu1 %v8550_v50 }
 0x40a   : > { %4184 = vmatprep.mubr.f32.mxu1 %v8554_v51 }
 0x40d   : > { %4185 = vmatmul.mubr.f32.gmra.mrb[74].mxu1 %v8553_v52  ;;  %v8590_v52 = vld [vmem:[%s14016_s3 + $0x438] sm:$0xff] }
 0x40e   : > { %4189 = vmatprep.mubr.f32.mxu1 %v8557_v53 }
 0x411   : > { %4190 = vmatmul.mubr.f32.gmra.mrb[76].mxu1 %v8556_v54  ;;  %v8594_v54 = vld [vmem:[%s14016_s3 + $0x458] sm:$0xff] }
 0x412   : > { %10003 = vmatprep.mubr.msk.f32.mxu1 %vm11320_vm2, %v11321_v20 }
 0x415   : > { %10004 = vmatmul.mubr.msk.f32.vlgmr.msra.gmra.mrb[78].mxu1 %vm3334_vm3, %v8522_v55 }
 0x416   : > { %10598 = vmatpush3.bf16.msra.mxu1 %v11910_v35  ;;  %10006 = vmatprep.mubr.msk.f32.mxu1 %vm11320_vm2, %v11321_v20  ;;  %v8528_v35 = vld [vmem:[%s14016_s3 + $0x2b0] sm:$0xff] }
 0x417   : > { %10600 = vmatprep.subr.bf16.mxu1 %v11940_v29  ;;  %v8549_v29 = vld [vmem:[%s14016_s3 + $0x358] sm:$0xff] }
 0x419   : > { %10007 = vmatmul.mubr.msk.f32.gmra.mrb[80].mxu1 %vm3334_vm3, %v8525_v56 }
 0x41a   : > { %10602 = vmatpush3.bf16.msra.mxu1 %v11908_v34  ;;  %10009 = vmatprep.mubr.msk.f32.mxu1 %vm11320_vm2, %v11321_v20  ;;  %v8531_v34 = vld [vmem:[%s14016_s3 + $0x2c8] sm:$0xff] }
 0x41b   : > { %10604 = vmatprep.subr.bf16.mxu1 %v11954_v46  ;;  %v8558_v46 = vld [vmem:[%s14016_s3 + $0x3a0] sm:$0xff] }
 0x41d   : > { %10010 = vmatmul.mubr.msk.f32.gmra.mrb[82].mxu1 %vm3334_vm3, %v8528_v35 }
 0x41e   : > { %10606 = vmatpush3.bf16.msra.mxu1 %v11918_v49  ;;  %10012 = vmatprep.mubr.msk.f32.mxu1 %vm11320_vm2, %v11321_v20  ;;  %v8534_v49 = vld [vmem:[%s14016_s3 + $0x2e0] sm:$0xff] }
 0x41f   : > { %10608 = vmatprep.subr.bf16.mxu1 %v11951_v45  ;;  %v8555_v45 = vld [vmem:[%s14016_s3 + $0x388] sm:$0xff] }
 0x421   : > { %10013 = vmatmul.mubr.msk.f32.gmra.mrb[84].mxu1 %vm3334_vm3, %v8531_v34 }
 0x422   : > { %10610 = vmatpush3.bf16.msra.mxu1 %v11916_v48  ;;  %10015 = vmatprep.mubr.msk.f32.mxu1 %vm11320_vm2, %v11321_v20  ;;  %v8537_v48 = vld [vmem:[%s14016_s3 + $0x2f8] sm:$0xff] }
 0x423   : > { %10612 = vmatprep.subr.bf16.mxu1 %v11966_v0 }
 0x425   : > { %10016 = vmatmul.mubr.msk.f32.gmra.mrb[86].mxu1 %vm3334_vm3, %v8534_v49 }
 0x426   : > { %10614 = vmatpush3.bf16.msra.mxu1 %v11926_v63  ;;  %10018 = vmatprep.mubr.msk.f32.mxu1 %vm11320_vm2, %v11321_v20  ;;  %v8540_v63 = vld [vmem:[%s14016_s3 + $0x310] sm:$0xff] }
 0x427   : > { %10616 = vmatprep.subr.bf16.mxu1 %v11963_v61  ;;  %v8573_v61 = vld [vmem:[%s14016_s3 + $0x3b0] sm:$0xff] }
 0x429   : > { %10019 = vmatmul.mubr.msk.f32.gmra.mrb[88].mxu1 %vm3334_vm3, %v8537_v48  ;;  %v8593_v48 = vld [vmem:[%s14016_s3 + $0x450] sm:$0xff] }
 0x42a   : > { %10618 = vmatpush3.bf16.msra.mxu1 %v11924_v62  ;;  %10021 = vmatprep.mubr.msk.f32.mxu1 %vm11320_vm2, %v11321_v20  ;;  %v8543_v62 = vld [vmem:[%s14016_s3 + $0x328] sm:$0xff] }
 0x42b   : > { %10620 = vmatprep.subr.bf16.mxu1 %v11978_v16 }
 0x42d   : > { %10022 = vmatmul.mubr.msk.f32.gmra.mrb[90].mxu1 %vm3334_vm3, %v8540_v63 }
 0x42e   : > { %10622 = vmatpush3.bf16.msra.mxu1 %v11934_v13  ;;  %10024 = vmatprep.mubr.msk.f32.mxu1 %vm11320_vm2, %v11321_v20  ;;  %v8546_v13 = vld [vmem:[%s14016_s3 + $0x340] sm:$0xff] }
 0x42f   : > { %10624 = vmatprep.subr.bf16.mxu1 %v11975_v15  ;;  %v8572_v15 = vld [vmem:[%s14016_s3 + $0x3a8] sm:$0xff] }
 0x431   : > { %10025 = vmatmul.mubr.msk.f32.gmra.mrb[92].mxu1 %vm3334_vm3, %v8543_v62  ;;  %v8597_v62 = vld [vmem:[%s14016_s3 + $0x470] sm:$0xff] }
 0x432   : > { %10626 = vmatpush3.bf16.msra.mxu1 %v11932_v12  ;;  %10027 = vmatprep.mubr.msk.f32.mxu1 %vm11320_vm2, %v11321_v20  ;;  %v8552_v12 = vld [vmem:[%s14016_s3 + $0x370] sm:$0xff] }
 0x433   : > { %10627 = vmatprep.subr.bf16.mxu1 %v11319_v19 }
 0x435   : > { %10028 = vmatmul.mubr.msk.f32.gmra.mrb[94].mxu1 %vm3334_vm3, %v8546_v13 }
 0x436   : > { %10030 = vmatprep.mubr.msk.f32.mxu1 %vm11320_vm2, %v11321_v20 }
 0x439   : > { %10031 = vmatmul.mubr.msk.f32.gmra.mrb[96].mxu1 %vm3334_vm3, %v8549_v29 }
 0x43a   : > { %10033 = vmatprep.mubr.msk.f32.mxu1 %vm11320_vm2, %v11321_v20 }
 0x43d   : > { %10034 = vmatmul.mubr.msk.f32.gmra.mrb[98].mxu1 %vm3334_vm3, %v8552_v12 }
 0x43e   : > { %10036 = vmatprep.mubr.msk.f32.mxu1 %vm11320_vm2, %v11321_v20 }
 0x441   : > { %10037 = vmatmul.mubr.msk.f32.gmra.mrb[100].mxu1 %vm3334_vm3, %v8555_v45 }
 0x442   : > { %10039 = vmatprep.mubr.msk.f32.mxu1 %vm11320_vm2, %v11321_v20 }
 0x445   : > { %10040 = vmatmul.mubr.msk.f32.gmra.mrb[102].mxu1 %vm3334_vm3, %v8558_v46  ;;  %v9098_v0 = vpop.f32.mrb[36].mxu0 }
 0x446   : > { %4481 = vmatprep.mubr.f32.mxu1 %v8573_v61  ;;  %v9099_v16 = vpop.f32.mrb[37].mxu0  ;;  %v8596_v61 = vld [vmem:[%s14016_s3 + $0x468] sm:$0xff] }
 0x447   : > { %v9100_v57 = vadd.f32 %v9099_v16, %v9098_v0 }
 0x449   : > { %4482 = vmatmul.mubr.f32.vlgmr.msra.gmra.mrb[104].mxu1 %v8572_v15  ;;  %v9101_v59 = vpop.f32.mrb[38].mxu0  ;;  %v8600_v15 = vld [vmem:[%s14016_s3 + $0x488] sm:$0xff] }
 0x44a   : > { %10629 = vmatpush3.bf16.msra.mxu1 %v11993_v38  ;;  %4486 = vmatprep.mubr.f32.mxu1 %v8576_v58  ;;  %v9102_v1 = vpop.f32.mrb[39].mxu0  ;;  %v8578_v38 = vld [vmem:[%s14016_s3 + $0x3d8] sm:$0xff] }
 0x44b   : > { %10630 = vmatprep.subr.bf16.mxu1 %v11319_v19  ;;  %v9103_v2 = vadd.f32 %v9102_v1, %v9101_v59  ;;  %v8599_v1 = vld [vmem:[%s14016_s3 + $0x480] sm:$0xff] }
 0x44c   : > { %v3570_v4 = vpop.f32.mrb[0].mxu1 }
 0x44d   : > { %v12535_v5 = vadd.f32 %v9100_v57, %v3570_v4  ;;  %v9911_v6 = vpop.f32.mrb[1].mxu1  ;;  %4487 = vmatmul.mubr.f32.gmra.mrb[106].mxu1 %v8575_v60 }
 0x44e   : > { %10632 = vmatpush3.bf16.msra.mxu1 %v11987_v36  ;;  %4491 = vmatprep.mubr.f32.mxu1 %v8579_v3  ;;  %v8581_v36 = vld [vmem:[%s14016_s3 + $0x3f0] sm:$0xff]  ;;  %v8603_v3 = vld [vmem:[%s14016_s3 + $0x4a0] sm:$0xff] }
 0x44f   : > { %v9104_v7 = vpop.f32.mrb[40].mxu0  ;;  %10089 = vmatprep.subr.bf16.mxu1 %v11321_v20 }
 0x450   : > { %v3575_v9 = vpop.f32.mrb[2].mxu1  ;;  %v9105_v10 = vpop.f32.mrb[41].mxu0 }
 0x451   : > { %v12545_v11 = vadd.f32 %v9103_v2, %v3575_v9  ;;  %v9914_v14 = vpop.f32.mrb[3].mxu1  ;;  %4492 = vmatmul.mubr.f32.gmra.mrb[108].mxu1 %v8578_v38  ;;  %v9106_v17 = vadd.f32 %v9105_v10, %v9104_v7  ;;  %v8602_v9 = vld [vmem:[%s14016_s3 + $0x498] sm:$0xff] }
 0x452   : > { %4496 = vmatprep.mubr.f32.mxu1 %v8582_v8  ;;  %v8606_v14 = vld [vmem:[%s14016_s3 + $0x4b8] sm:$0xff] }
 0x453   : > { %v9107_v18 = vpop.f32.mrb[42].mxu0 }
 0x454   : > { %v3580_v23 = vpop.f32.mrb[4].mxu1  ;;  %v9108_v24 = vpop.f32.mrb[43].mxu0 }
 0x455   : > { %v12553_v25 = vadd.f32 %v9106_v17, %v3580_v23  ;;  %v9917_v26 = vpop.f32.mrb[5].mxu1  ;;  %4497 = vmatmul.mubr.f32.gmra.mrb[110].mxu1 %v8581_v36  ;;  %v9109_v27 = vadd.f32 %v9108_v24, %v9107_v18  ;;  %v8605_v24 = vld [vmem:[%s14016_s3 + $0x4b0] sm:$0xff] }
 0x456   : > { %4501 = vmatprep.mubr.f32.mxu1 %v8585_v22 }
 0x457   : > { %v9110_v31 = vpop.f32.mrb[44].mxu0 }
 0x458   : > { %v3585_v32 = vpop.f32.mrb[6].mxu1  ;;  %v9111_v33 = vpop.f32.mrb[45].mxu0 }
 0x459   : > { %v12561_v37 = vadd.f32 %v9109_v27, %v3585_v32  ;;  %v9920_v21 = vpop.f32.mrb[7].mxu1  ;;  %4502 = vmatmul.mubr.f32.gmra.mrb[112].mxu1 %v8584_v28  ;;  %v9112_v39 = vadd.f32 %v9111_v33, %v9110_v31  ;;  %v8609_v27 = vld [vmem:[%s14016_s3 + $0x4d0] sm:$0xff] }
 0x45a   : > { %4506 = vmatprep.mubr.f32.mxu1 %v8588_v30  ;;  %v8608_v21 = vld [vmem:[%s14016_s3 + $0x4c8] sm:$0xff] }
 0x45b   : > { %v9113_v41 = vpop.f32.mrb[46].mxu0 }
 0x45c   : > { %v3590_v43 = vpop.f32.mrb[8].mxu1  ;;  %v9114_v44 = vpop.f32.mrb[47].mxu0 }
 0x45d   : > { %v12569_v47 = vadd.f32 %v9112_v39, %v3590_v43  ;;  %v9923_v50 = vpop.f32.mrb[9].mxu1  ;;  %4507 = vmatmul.mubr.f32.gmra.mrb[114].mxu1 %v8587_v40  ;;  %v9115_v51 = vadd.f32 %v9114_v44, %v9113_v41 }
 0x45e   : > { %4511 = vmatprep.mubr.f32.mxu1 %v8591_v42  ;;  %v8574_v50 = vld [vmem:[%s14016_s3 + $0x3b8] sm:$0xff] }
 0x45f   : > { %v9116_v53 = vpop.f32.mrb[48].mxu0 }
 0x460   : > { %v3595_v55 = vpop.f32.mrb[10].mxu1  ;;  %v9117_v56 = vpop.f32.mrb[49].mxu0 }
 0x461   : > { %v12577_v35 = vadd.f32 %v9115_v51, %v3595_v55  ;;  %v9926_v34 = vpop.f32.mrb[11].mxu1  ;;  %4512 = vmatmul.mubr.f32.gmra.mrb[116].mxu1 %v8590_v52  ;;  %v9118_v49 = vadd.f32 %v9117_v56, %v9116_v53 }
 0x462   : > { %4516 = vmatprep.mubr.f32.mxu1 %v8594_v54  ;;  %v8577_v34 = vld [vmem:[%s14016_s3 + $0x3d0] sm:$0xff] }
 0x463   : > { %v9119_v63 = vpop.f32.mrb[50].mxu0 }
 0x464   : > { %v3600_v13 = vpop.f32.mrb[12].mxu1  ;;  %v9120_v29 = vpop.f32.mrb[51].mxu0 }
 0x465   : > { %v12585_v12 = vadd.f32 %v9118_v49, %v3600_v13  ;;  %v9929_v45 = vpop.f32.mrb[13].mxu1  ;;  %4517 = vmatmul.mubr.f32.gmra.mrb[118].mxu1 %v8593_v48  ;;  %v9121_v46 = vadd.f32 %v9120_v29, %v9119_v63 }
 0x466   : > { %4521 = vmatprep.mubr.f32.mxu1 %v8597_v62  ;;  %v8580_v45 = vld [vmem:[%s14016_s3 + $0x3e8] sm:$0xff] }
 0x467   : > { %v9122_v0 = vpop.f32.mrb[52].mxu0 }
 0x468   : > { %v3605_v16 = vpop.f32.mrb[14].mxu1  ;;  %v9123_v57 = vpop.f32.mrb[53].mxu0 }
 0x469   : > { %v12593_v58 = vadd.f32 %v9121_v46, %v3605_v16  ;;  %v9932_v59 = vpop.f32.mrb[15].mxu1  ;;  %4522 = vmatmul.mubr.f32.gmra.mrb[120].mxu1 %v8596_v61  ;;  %v9124_v60 = vadd.f32 %v9123_v57, %v9122_v0 }
 0x46a   : > { %4526 = vmatprep.mubr.f32.mxu1 %v8600_v15 }
 0x46b   : > { %v9125_v2 = vpop.f32.mrb[54].mxu0 }
 0x46c   : > { %v3610_v4 = vpop.f32.mrb[16].mxu1  ;;  %v9126_v6 = vpop.f32.mrb[55].mxu0 }
 0x46d   : > { %v12601_v38 = vadd.f32 %v9124_v60, %v3610_v4  ;;  %v9935_v7 = vpop.f32.mrb[17].mxu1  ;;  %4527 = vmatmul.mubr.f32.gmra.mrb[122].mxu1 %v8599_v1  ;;  %v9127_v8 = vadd.f32 %v9126_v6, %v9125_v2  ;;  %v8583_v60 = vld [vmem:[%s14016_s3 + $0x400] sm:$0xff] }
 0x46e   : > { %4531 = vmatprep.mubr.f32.mxu1 %v8603_v3 }
 0x46f   : > { %v9128_v10 = vpop.f32.mrb[56].mxu0 }
 0x470   : > { %v3615_v17 = vpop.f32.mrb[18].mxu1  ;;  %v9129_v36 = vpop.f32.mrb[57].mxu0 }
 0x471   : > { %v12609_v18 = vadd.f32 %v9127_v8, %v3615_v17  ;;  %v9938_v22 = vpop.f32.mrb[19].mxu1  ;;  %4532 = vmatmul.mubr.f32.gmra.mrb[124].mxu1 %v8602_v9  ;;  %v9130_v23 = vadd.f32 %v9129_v36, %v9128_v10  ;;  %v8586_v9 = vld [vmem:[%s14016_s3 + $0x418] sm:$0xff] }
 0x472   : > { %4536 = vmatprep.mubr.f32.mxu1 %v8606_v14 }
 0x473   : > { %v9131_v26 = vpop.f32.mrb[58].mxu0 }
 0x474   : > { %v3620_v28 = vpop.f32.mrb[20].mxu1  ;;  %v9132_v31 = vpop.f32.mrb[59].mxu0 }
 0x475   : > { %v12617_v30 = vadd.f32 %v9130_v23, %v3620_v28  ;;  %v9941_v32 = vpop.f32.mrb[21].mxu1  ;;  %4537 = vmatmul.mubr.f32.gmra.mrb[126].mxu1 %v8605_v24  ;;  %v9133_v33 = vadd.f32 %v9132_v31, %v9131_v26  ;;  %v8589_v26 = vld [vmem:[%s14016_s3 + $0x430] sm:$0xff] }
 0x476   : > { %4541 = vmatprep.mubr.f32.mxu1 %v8609_v27 }
 0x477   : > { %v9134_v39 = vpop.f32.mrb[60].mxu0 }
 0x478   : > { %v3625_v40 = vpop.f32.mrb[22].mxu1  ;;  %v9135_v41 = vpop.f32.mrb[61].mxu0 }
 0x479   : > { %v12622_v42 = vadd.f32 %v9133_v33, %v3625_v40  ;;  %v9944_v43 = vpop.f32.mrb[23].mxu1  ;;  %4542 = vmatmul.mubr.f32.gmra.mrb[128].mxu1 %v8608_v21  ;;  %v9136_v44 = vadd.f32 %v9135_v41, %v9134_v39  ;;  %v8592_v40 = vld [vmem:[%s14016_s3 + $0x448] sm:$0xff] }
 0x47a   : > { %10050 = vmatprep.mubr.msk.f32.mxu1 %vm11320_vm2, %v11321_v20 }
 0x47b   : > { %v9186_v51 = vpop.f32.mrb[62].mxu0 }
 0x47c   : > { %v3630_v52 = vpop.f32.mrb[24].mxu1  ;;  %v9187_v53 = vpop.f32.mrb[63].mxu0 }
 0x47d   : > { %v12629_v54 = vadd.f32 %v9136_v44, %v3630_v52  ;;  %v9947_v55 = vpop.f32.mrb[25].mxu1  ;;  %10051 = vmatmul.mubr.msk.f32.vlgmr.msra.gmra.mrb[130].mxu1 %vm3334_vm3, %v8574_v50  ;;  %v9188_v56 = vadd.f32 %v9187_v53, %v9186_v51 }
 0x47e   : > { %10053 = vmatprep.mubr.msk.f32.mxu1 %vm11320_vm2, %v11321_v20  ;;  %v8595_v55 = vld [vmem:[%s14016_s3 + $0x460] sm:$0xff] }
 0x47f   : > { %v9189_v49 = vpop.f32.mrb[64].mxu0 }
 0x480   : > { %v3909_v48 = vpop.f32.mrb[26].mxu1  ;;  %v9190_v63 = vpop.f32.mrb[65].mxu0 }
 0x481   : > { %v12637_v62 = vadd.f32 %v9188_v56, %v3909_v48  ;;  %v9958_v13 = vpop.f32.mrb[27].mxu1  ;;  %10054 = vmatmul.mubr.msk.f32.gmra.mrb[132].mxu1 %vm3334_vm3, %v8577_v34  ;;  %v9191_v29 = vadd.f32 %v9190_v63, %v9189_v49 }
 0x482   : > { %10056 = vmatprep.mubr.msk.f32.mxu1 %vm11320_vm2, %v11321_v20 }
 0x483   : > { %v3973_v46 = vmax.f32 %v12535_v5, %v12637_v62  ;;  %v9192_v61 = vpop.f32.mrb[66].mxu0 }
 0x484   : > { %v3914_v0 = vpop.f32.mrb[28].mxu1  ;;  %v9193_v15 = vpop.f32.mrb[67].mxu0 }
 0x485   : > { %v12647_v16 = vadd.f32 %v9191_v29, %v3914_v0  ;;  %v9961_v57 = vpop.f32.mrb[29].mxu1  ;;  %10057 = vmatmul.mubr.msk.f32.gmra.mrb[134].mxu1 %vm3334_vm3, %v8580_v45  ;;  %v9194_v59 = vadd.f32 %v9193_v15, %v9192_v61  ;;  %v8598_v45 = vld [vmem:[%s14016_s3 + $0x478] sm:$0xff] }
 0x486   : > { %10059 = vmatprep.mubr.msk.f32.mxu1 %vm11320_vm2, %v11321_v20 }
 0x487   : > { %v3974_v1 = vmax.f32 %v12545_v11, %v12647_v16  ;;  %v9195_v2 = vpop.f32.mrb[68].mxu0 }
 0x488   : > { %v3919_v3 = vpop.f32.mrb[30].mxu1  ;;  %v9196_v4 = vpop.f32.mrb[69].mxu0 }
 0x489   : > { %v12657_v6 = vadd.f32 %v9194_v59, %v3919_v3  ;;  %v9964_v7 = vpop.f32.mrb[31].mxu1  ;;  %10060 = vmatmul.mubr.msk.f32.gmra.mrb[136].mxu1 %vm3334_vm3, %v8583_v60  ;;  %v9197_v8 = vadd.f32 %v9196_v4, %v9195_v2  ;;  %v8601_v3 = vld [vmem:[%s14016_s3 + $0x490] sm:$0xff] }
 0x48a   : > { %10062 = vmatprep.mubr.msk.f32.mxu1 %vm11320_vm2, %v11321_v20 }
 0x48b   : > { %v3975_v10 = vmax.f32 %v12553_v25, %v12657_v6  ;;  %v9198_v14 = vpop.f32.mrb[70].mxu0 }
 0x48c   : > { %v3924_v17 = vpop.f32.mrb[32].mxu1  ;;  %v9199_v36 = vpop.f32.mrb[71].mxu0 }
 0x48d   : > { %v12667_v22 = vadd.f32 %v9197_v8, %v3924_v17  ;;  %v9967_v23 = vpop.f32.mrb[33].mxu1  ;;  %10063 = vmatmul.mubr.msk.f32.gmra.mrb[138].mxu1 %vm3334_vm3, %v8586_v9  ;;  %v9200_v24 = vadd.f32 %v9199_v36, %v9198_v14 }
 0x48e   : > { %10065 = vmatprep.mubr.msk.f32.mxu1 %vm11320_vm2, %v11321_v20  ;;  %v8604_v23 = vld [vmem:[%s14016_s3 + $0x4a8] sm:$0xff] }
 0x48f   : > { %v3976_v27 = vmax.f32 %v12561_v37, %v12667_v22  ;;  %v9201_v28 = vpop.f32.mrb[72].mxu0 }
 0x490   : > { %v3929_v31 = vpop.f32.mrb[34].mxu1  ;;  %v9202_v32 = vpop.f32.mrb[73].mxu0 }
 0x491   : > { %v12677_v33 = vadd.f32 %v9200_v24, %v3929_v31  ;;  %v9970_v21 = vpop.f32.mrb[35].mxu1  ;;  %10066 = vmatmul.mubr.msk.f32.gmra.mrb[140].mxu1 %vm3334_vm3, %v8589_v26  ;;  %v9203_v39 = vadd.f32 %v9202_v32, %v9201_v28 }
 0x492   : > { %10068 = vmatprep.mubr.msk.f32.mxu1 %vm11320_vm2, %v11321_v20 }
 0x493   : > { %v3977_v41 = vmax.f32 %v12569_v47, %v12677_v33  ;;  %v9204_v43 = vpop.f32.mrb[74].mxu0 }
 0x494   : > { %v3934_v44 = vpop.f32.mrb[36].mxu1  ;;  %v9205_v50 = vpop.f32.mrb[75].mxu0 }
 0x495   : > { %v12687_v51 = vadd.f32 %v9203_v39, %v3934_v44  ;;  %v9973_v52 = vpop.f32.mrb[37].mxu1  ;;  %10069 = vmatmul.mubr.msk.f32.gmra.mrb[142].mxu1 %vm3334_vm3, %v8592_v40  ;;  %v9206_v53 = vadd.f32 %v9205_v50, %v9204_v43  ;;  %v8607_v40 = vld [vmem:[%s14016_s3 + $0x4c0] sm:$0xff] }
 0x496   : > { %10071 = vmatprep.mubr.msk.f32.mxu1 %vm11320_vm2, %v11321_v20 }
 0x497   : > { %v3978_v56 = vmax.f32 %v12577_v35, %v12687_v51  ;;  %v9207_v34 = vpop.f32.mrb[76].mxu0 }
 0x498   : > { %v3939_v49 = vpop.f32.mrb[38].mxu1  ;;  %v9208_v48 = vpop.f32.mrb[77].mxu0 }
 0x499   : > { %v12697_v63 = vadd.f32 %v9206_v53, %v3939_v49  ;;  %v9976_v13 = vpop.f32.mrb[39].mxu1  ;;  %10072 = vmatmul.mubr.msk.f32.gmra.mrb[144].mxu1 %vm3334_vm3, %v8595_v55  ;;  %v9209_v29 = vadd.f32 %v9208_v48, %v9207_v34  ;;  %v8610_v49 = vld [vmem:[%s14016_s3 + $0x4d8] sm:$0xff] }
 0x49a   : > { %10074 = vmatprep.mubr.msk.f32.mxu1 %vm11320_vm2, %v11321_v20 }
 0x49b   : > { %v3979_v61 = vmax.f32 %v12585_v12, %v12697_v63  ;;  %v9210_v0 = vpop.f32.mrb[78].mxu0 }
 0x49c   : > { %v3944_v15 = vpop.f32.mrb[40].mxu1  ;;  %v9211_v57 = vpop.f32.mrb[79].mxu0 }
 0x49d   : > { %v12707_v59 = vadd.f32 %v9209_v29, %v3944_v15  ;;  %v9979_v60 = vpop.f32.mrb[41].mxu1  ;;  %10075 = vmatmul.mubr.msk.f32.gmra.mrb[146].mxu1 %vm3334_vm3, %v8598_v45  ;;  %v9212_v2 = vadd.f32 %v9211_v57, %v9210_v0 }
 0x49e   : > { %10077 = vmatprep.mubr.msk.f32.mxu1 %vm11320_vm2, %v11321_v20 }
 0x49f   : > { %v3980_v4 = vmax.f32 %v12593_v58, %v12707_v59  ;;  %v9213_v7 = vpop.f32.mrb[80].mxu0 }
 0x4a0   : > { %v3949_v8 = vpop.f32.mrb[42].mxu1  ;;  %v9214_v9 = vpop.f32.mrb[81].mxu0 }
 0x4a1   : > { %v12717_v14 = vadd.f32 %v9212_v2, %v3949_v8  ;;  %v9982_v17 = vpop.f32.mrb[43].mxu1  ;;  %10078 = vmatmul.mubr.msk.f32.gmra.mrb[148].mxu1 %vm3334_vm3, %v8601_v3  ;;  %v9215_v36 = vadd.f32 %v9214_v9, %v9213_v7 }
 0x4a2   : > { %10080 = vmatprep.mubr.msk.f32.mxu1 %vm11320_vm2, %v11321_v20 }
 0x4a3   : > { %v9216_v24 = vpop.f32.mrb[82].mxu0  ;;  %v3981_v26 = vmax.f32 %v12601_v38, %v12717_v14 }
 0x4a4   : > { %v3954_v28 = vpop.f32.mrb[44].mxu1  ;;  %v9217_v31 = vpop.f32.mrb[83].mxu0 }
 0x4a5   : > { %v12727_v32 = vadd.f32 %v9215_v36, %v3954_v28  ;;  %v9985_v21 = vpop.f32.mrb[45].mxu1  ;;  %10081 = vmatmul.mubr.msk.f32.gmra.mrb[150].mxu1 %vm3334_vm3, %v8604_v23  ;;  %v9218_v39 = vadd.f32 %v9217_v31, %v9216_v24 }
 0x4a6   : > { %10083 = vmatprep.mubr.msk.f32.mxu1 %vm11320_vm2, %v11321_v20 }
 0x4a7   : > { %v9219_v43 = vpop.f32.mrb[84].mxu0  ;;  %v3982_v44 = vmax.f32 %v12609_v18, %v12727_v32 }
 0x4a8   : > { %v3959_v50 = vpop.f32.mrb[46].mxu1  ;;  %v9220_v52 = vpop.f32.mrb[85].mxu0 }
 0x4a9   : > { %v12737_v53 = vadd.f32 %v9218_v39, %v3959_v50  ;;  %v9988_v55 = vpop.f32.mrb[47].mxu1  ;;  %10084 = vmatmul.mubr.msk.f32.gmra.mrb[152].mxu1 %vm3334_vm3, %v8607_v40  ;;  %v9221_v34 = vadd.f32 %v9220_v52, %v9219_v43  ;;  %v11059_v40 = vld [vmem:[%s14017_s4 + $0x20] sm:$0xff]  }
 0x4aa   : > { %10086 = vmatprep.mubr.msk.f32.mxu1 %vm11320_vm2, %v11321_v20  ;;  %10090 = vmatpush3.bf16.msra.mxu1 %v11059_v40 }
 0x4ab   : > { %v9222_v48 = vpop.f32.mrb[86].mxu0  ;;  %v3983_v13 = vmax.f32 %v12617_v30, %v12737_v53  ;;  %10091 = vmatprep.subr.bf16.mxu1 %v11321_v20 }
 0x4ac   : > { %v3964_v29 = vpop.f32.mrb[48].mxu1  ;;  %v9223_v45 = vpop.f32.mrb[87].mxu0 }
 0x4ad   : > { %v12747_v0 = vadd.f32 %v9221_v34, %v3964_v29  ;;  %v9991_v15 = vpop.f32.mrb[49].mxu1  ;;  %10087 = vmatmul.mubr.msk.f32.gmra.mrb[154].mxu1 %vm3334_vm3, %v8610_v49  ;;  %v9224_v57 = vadd.f32 %v9223_v45, %v9222_v48 }
 0x4ae   : > { %10097 = vmatprep.mubr.msk.bf16.mxu1 %vm11320_vm2, %v11321_v20 }
 0x4af   : > { %v3984_v60 = vmax.f32 %v12622_v42, %v12747_v0 }
 0x4b0   : > { %v3969_v2 = vpop.f32.mrb[50].mxu1 }
 0x4b1   : > { %v12754_v3 = vadd.f32 %v9224_v57, %v3969_v2  ;;  %v9994_v7 = vpop.f32.mrb[51].mxu1  ;;  %v11060_v57 = vld [vmem:[%s14017_s4 + $0x28] sm:$0xff]  }
 0x4b2   : > { %10092 = vmatpush3.bf16.msra.mxu1 %v11060_v57 }
 0x4b3   : > { %v3985_v8 = vmax.f32 %v12629_v54, %v12754_v3  ;;  %10093 = vmatprep.subr.bf16.mxu1 %v11321_v20 }
 0x4b4   : > { %v9274_v9 = vpop.f32.mrb[52].mxu1 }
 0x4b5   : > { %v9275_v17 = vpop.f32.mrb[53].mxu1 }
 0x4b6   : > { %v9276_v36 = vadd.f32 %v9275_v17, %v9274_v9 }
 0x4b8   : > { %v9277_v23 = vpop.f32.mrb[54].mxu1 }
 0x4b9   : > { %v9278_v24 = vpop.f32.mrb[55].mxu1 }
 0x4ba   : > { %v9279_v28 = vadd.f32 %v9278_v24, %v9277_v23 }
 0x4bc   : > { %v9280_v31 = vpop.f32.mrb[56].mxu1 }
 0x4bd   : > { %v9281_v21 = vpop.f32.mrb[57].mxu1 }
 0x4be   : > { %v12758_v39 = vadd.f32 %v9281_v21, %v9280_v31 }
 0x4c0   : > { %v9283_v43 = vpop.f32.mrb[58].mxu1 }
 0x4c1   : > { %v9284_v50 = vpop.f32.mrb[59].mxu1 }
 0x4c2   : > { %v9285_v52 = vadd.f32 %v9284_v50, %v9283_v43 }
 0x4c4   : > { %v9286_v55 = vpop.f32.mrb[60].mxu1 }
 0x4c5   : > { %v9287_v34 = vpop.f32.mrb[61].mxu1 }
 0x4c6   : > { %v12764_v49 = vadd.f32 %v9287_v34, %v9286_v55 }
 0x4c8   : > { %v9289_v48 = vpop.f32.mrb[62].mxu1 }
 0x4c9   : > { %v9290_v29 = vpop.f32.mrb[63].mxu1 }
 0x4ca   : > { %v12766_v45 = vadd.f32 %v9290_v29, %v9289_v48  ;;  %v11061_v29 = vld [vmem:[%s14017_s4 + $0x30] sm:$0xff]  }
 0x4cb   : > { %10094 = vmatpush3.bf16.msra.mxu1 %v11061_v29 }
 0x4cc   : > { %v9292_v15 = vpop.f32.mrb[64].mxu1  ;;  %10095 = vmatprep.subr.bf16.mxu1 %v11321_v20 }
 0x4cd   : > { %v9293_v2 = vpop.f32.mrb[65].mxu1 }
 0x4ce   : > { %v12771_v7 = vadd.f32 %v9293_v2, %v9292_v15  ;;  %v11062_v15 = vld [vmem:[%s14017_s4 + $0xc0] sm:$0xff]  }
 0x4cf   : > { %10258 = vmatpush3.bf16.msra.mxu0 %v11062_v15 }
 0x4d0   : > { %v9295_v9 = vpop.f32.mrb[66].mxu1  ;;  %10259 = vmatprep.subr.bf16.mxu0 %v11321_v20 }
 0x4d1   : > { %v9296_v17 = vpop.f32.mrb[67].mxu1 }
 0x4d2   : > { %v12774_v23 = vadd.f32 %v9296_v17, %v9295_v9  ;;  %v11063_v17 = vld [vmem:[%s14017_s4 + $0x38] sm:$0xff]  }
 0x4d3   : > { %10096 = vmatpush3.bf16.msra.mxu1 %v11063_v17 }
 0x4d4   : > { %v9298_v24 = vpop.f32.mrb[68].mxu1  ;;  %10117 = vmatprep.subr.bf16.mxu1 %v11321_v20 }
 0x4d5   : > { %v9299_v31 = vpop.f32.mrb[69].mxu1 }
 0x4d6   : > { %v12776_v21 = vadd.f32 %v9299_v31, %v9298_v24  ;;  %v11064_v24 = vld [vmem:[%s14017_s4 + $0xc8] sm:$0xff]  }
 0x4d7   : > { %10260 = vmatpush3.bf16.msra.mxu0 %v11064_v24 }
 0x4d8   : > { %v9301_v40 = vpop.f32.mrb[70].mxu1  ;;  %10261 = vmatprep.subr.bf16.mxu0 %v11321_v20 }
 0x4d9   : > { %v9302_v43 = vpop.f32.mrb[71].mxu1 }
 0x4da   : > { %v12778_v50 = vadd.f32 %v9302_v43, %v9301_v40 }
 0x4dc   : > { %v9304_v55 = vpop.f32.mrb[72].mxu1 }
 0x4dd   : > { %v9305_v34 = vpop.f32.mrb[73].mxu1 }
 0x4de   : > { %v12780_v48 = vadd.f32 %v9305_v34, %v9304_v55  ;;  %v11065_v55 = vld [vmem:[%s14017_s4 + $0xd0] sm:$0xff]  }
 0x4df   : > { %10262 = vmatpush3.bf16.msra.mxu0 %v11065_v55 }
 0x4e0   : > { %v9307_v57 = vpop.f32.mrb[74].mxu1  ;;  %10263 = vmatprep.subr.bf16.mxu0 %v11321_v20 }
 0x4e1   : > { %v9308_v2 = vpop.f32.mrb[75].mxu1 }
 0x4e2   : > { %v12788_v9 = vadd.f32 %v9308_v2, %v9307_v57  ;;  %v11066_v2 = vld [vmem:[%s14017_s4 + $0xd8] sm:$0xff]  }
 0x4e3   : > { %10264 = vmatpush3.bf16.msra.mxu0 %v11066_v2 }
 0x4e4   : > { %v9310_v31 = vpop.f32.mrb[76].mxu1  ;;  %10285 = vmatprep.subr.bf16.mxu0 %v11321_v20 }
 0x4e5   : > { %v9311_v40 = vpop.f32.mrb[77].mxu1 }
 0x4e6   : > { %v9312_v43 = vadd.f32 %v9311_v40, %v9310_v31 }
 0x4e8   : > { %v4261_v34 = vpop.f32.mrb[78].mxu1 }
 0x4e9   : > { %v4262_v29 = vadd.f32 %v9276_v36, %v4261_v34  ;;  %v10005_v15 = vpop.f32.mrb[79].mxu1 }
 0x4eb   : > { %v12807_v57 = vmax.f32 %v3973_v46, %v4262_v29 }
 0x4ec   : > { %v4266_v17 = vpop.f32.mrb[80].mxu1 }
 0x4ed   : > { %v4267_v24 = vadd.f32 %v9279_v28, %v4266_v17  ;;  %v10008_v31 = vpop.f32.mrb[81].mxu1 }
 0x4ef   : > { %v12816_v36 = vmax.f32 %v3974_v1, %v4267_v24 }
 0x4f0   : > { %v4271_v40 = vpop.f32.mrb[82].mxu1 }
 0x4f1   : > { %v4272_v5 = vadd.f32 %v12758_v39, %v4271_v40  ;;  %v10011_v62 = vpop.f32.mrb[83].mxu1 }
 0x4f3   : > { %v12822_v46 = vmax.f32 %v3975_v10, %v4272_v5 }
 0x4f4   : > { %v4276_v55 = vpop.f32.mrb[84].mxu1 }
 0x4f5   : > { %v4277_v28 = vadd.f32 %v9285_v52, %v4276_v55  ;;  %v10014_v34 = vpop.f32.mrb[85].mxu1 }
 0x4f7   : > { %v12827_v29 = vmax.f32 %v3976_v27, %v4277_v28 }
 0x4f8   : > { %v4281_v11 = vpop.f32.mrb[86].mxu1 }
 0x4f9   : > { %v4282_v16 = vadd.f32 %v12764_v49, %v4281_v11  ;;  %v10017_v1 = vpop.f32.mrb[87].mxu1 }
 0x4fb   : > { %v12833_v39 = vmax.f32 %v3977_v41, %v4282_v16 }
 0x4fc   : > { %v4286_v25 = vpop.f32.mrb[88].mxu1 }
 0x4fd   : > { %v4287_v6 = vadd.f32 %v12766_v45, %v4286_v25  ;;  %v10020_v10 = vpop.f32.mrb[89].mxu1 }
 0x4ff   : > { %v12839_v52 = vmax.f32 %v3978_v56, %v4287_v6 }
 0x500   : > { %v4291_v37 = vpop.f32.mrb[90].mxu1 }
 0x501   : > { %v4292_v22 = vadd.f32 %v12771_v7, %v4291_v37  ;;  %v10023_v27 = vpop.f32.mrb[91].mxu1 }
 0x503   : > { %v12845_v49 = vmax.f32 %v3979_v61, %v4292_v22 }
 0x504   : > { %v4296_v47 = vpop.f32.mrb[92].mxu1 }
 0x505   : > { %v4297_v33 = vadd.f32 %v12774_v23, %v4296_v47  ;;  %v10026_v41 = vpop.f32.mrb[93].mxu1 }
 0x507   : > { %v12851_v45 = vmax.f32 %v3980_v4, %v4297_v33 }
 0x508   : > { %v4301_v35 = vpop.f32.mrb[94].mxu1 }
 0x509   : > { %v4302_v51 = vadd.f32 %v12776_v21, %v4301_v35  ;;  %v10029_v56 = vpop.f32.mrb[95].mxu1 }
 0x50b   : > { %v12857_v7 = vmax.f32 %v3981_v26, %v4302_v51 }
 0x50c   : > { %v4306_v12 = vpop.f32.mrb[96].mxu1 }
 0x50d   : > { %v4307_v63 = vadd.f32 %v12778_v50, %v4306_v12  ;;  %v10032_v61 = vpop.f32.mrb[97].mxu1 }
 0x50f   : > { %v12863_v23 = vmax.f32 %v3982_v44, %v4307_v63 }
 0x510   : > { %v4311_v58 = vpop.f32.mrb[98].mxu1 }
 0x511   : > { %v4312_v59 = vadd.f32 %v12780_v48, %v4311_v58  ;;  %v10035_v4 = vpop.f32.mrb[99].mxu1 }
 0x513   : > { %v12869_v21 = vmax.f32 %v3983_v13, %v4312_v59 }
 0x514   : > { %v4316_v38 = vpop.f32.mrb[100].mxu1 }
 0x515   : > { %v4317_v14 = vadd.f32 %v12788_v9, %v4316_v38  ;;  %v10038_v26 = vpop.f32.mrb[101].mxu1 }
 0x517   : > { %v12875_v50 = vmax.f32 %v3984_v60, %v4317_v14 }
 0x518   : > { %v4321_v18 = vpop.f32.mrb[102].mxu1 }
 0x519   : > { %v4322_v32 = vadd.f32 %v9312_v43, %v4321_v18  ;;  %v10041_v44 = vpop.f32.mrb[103].mxu1 }
 0x51b   : > { %v12880_v48 = vmax.f32 %v3985_v8, %v4322_v32 }
 0x51c   : > { %v9362_v30 = vpop.f32.mrb[104].mxu1 }
 0x51d   : > { %v9363_v53 = vpop.f32.mrb[105].mxu1 }
 0x51e   : > { %v9364_v13 = vadd.f32 %v9363_v53, %v9362_v30 }
 0x520   : > { %v9365_v15 = vpop.f32.mrb[106].mxu1 }
 0x521   : > { %v9366_v2 = vpop.f32.mrb[107].mxu1 }
 0x522   : > { %v9367_v9 = vadd.f32 %v9366_v2, %v9365_v15 }
 0x524   : > { %v9368_v17 = vpop.f32.mrb[108].mxu1 }
 0x525   : > { %v9369_v24 = vpop.f32.mrb[109].mxu1 }
 0x526   : > { %v9370_v31 = vadd.f32 %v9369_v24, %v9368_v17 }
 0x528   : > { %v9371_v42 = vpop.f32.mrb[110].mxu1 }
 0x529   : > { %v9372_v0 = vpop.f32.mrb[111].mxu1 }
 0x52a   : > { %v9373_v60 = vadd.f32 %v9372_v0, %v9371_v42 }
 0x52c   : > { %v9374_v40 = vpop.f32.mrb[112].mxu1 }
 0x52d   : > { %v9375_v43 = vpop.f32.mrb[113].mxu1 }
 0x52e   : > { %v9376_v5 = vadd.f32 %v9375_v43, %v9374_v40 }
 0x530   : > { %v9377_v62 = vpop.f32.mrb[114].mxu1 }
 0x531   : > { %v9378_v55 = vpop.f32.mrb[115].mxu1 }
 0x532   : > { %v9379_v54 = vadd.f32 %v9378_v55, %v9377_v62 }
 0x534   : > { %v9380_v3 = vpop.f32.mrb[116].mxu1 }
 0x535   : > { %v9381_v8 = vpop.f32.mrb[117].mxu1 }
 0x536   : > { %v9382_v28 = vadd.f32 %v9381_v8, %v9380_v3 }
 0x538   : > { %v9383_v34 = vpop.f32.mrb[118].mxu1 }
 0x539   : > { %v9384_v11 = vpop.f32.mrb[119].mxu1 }
 0x53a   : > { %v12882_v16 = vadd.f32 %v9384_v11, %v9383_v34 }
 0x53c   : > { %v9386_v1 = vpop.f32.mrb[120].mxu1 }
 0x53d   : > { %v9387_v25 = vpop.f32.mrb[121].mxu1 }
 0x53e   : > { %v12884_v6 = vadd.f32 %v9387_v25, %v9386_v1 }
 0x540   : > { %v9389_v10 = vpop.f32.mrb[122].mxu1 }
 0x541   : > { %v9390_v37 = vpop.f32.mrb[123].mxu1 }
 0x542   : > { %v12886_v22 = vadd.f32 %v9390_v37, %v9389_v10  ;;  %v12932_v37 = vld [vmem:[%s14017_s4 + $0xe0] sm:$0xff]  }
 0x544   : > { %v9392_v27 = vpop.f32.mrb[124].mxu1 }
 0x545   : > { %v9393_v47 = vpop.f32.mrb[125].mxu1 }
 0x546   : > { %v12888_v33 = vadd.f32 %v9393_v47, %v9392_v27 }
 0x548   : > { %v9395_v41 = vpop.f32.mrb[126].mxu1 }
 0x549   : > { %v9396_v35 = vpop.f32.mrb[127].mxu1 }
 0x54a   : > { %v12890_v51 = vadd.f32 %v9396_v35, %v9395_v41 }
 0x54c   : > { %v9398_v56 = vpop.f32.mrb[128].mxu1 }
 0x54d   : > { %v9399_v12 = vpop.f32.mrb[129].mxu1 }
 0x54e   : > { %v12892_v63 = vadd.f32 %v9399_v12, %v9398_v56  ;;  %v12952_v56 = vld [vmem:[%s14017_s4 + $0xe8] sm:$0xff]  }
 0x550   : > { %v4613_v61 = vpop.f32.mrb[130].mxu1 }
 0x551   : > { %v4614_v58 = vadd.f32 %v9364_v13, %v4613_v61  ;;  %v10052_v59 = vpop.f32.mrb[131].mxu1 }
 0x553   : > { %v4677_v4 = vmax.f32 %v12807_v57, %v4614_v58 }
 0x554   : > { %v4618_v38 = vpop.f32.mrb[132].mxu1 }
 0x555   : > { %4691 = vst.msk [vmem:[#allocation2] sm:$0xff] %vm4690_vm4, %v4677_v4  ;;  %v4619_v14 = vadd.f32 %v9367_v9, %v4618_v38  ;;  %v10055_v26 = vpop.f32.mrb[133].mxu1 }
 0x557   : > { %v4678_v18 = vmax.f32 %v12816_v36, %v4619_v14 }
 0x558   : > { %v4623_v32 = vpop.f32.mrb[134].mxu1 }
 0x559   : > { %4692 = vst.msk [vmem:[#allocation2 + $0x8] sm:$0xff] %vm4690_vm4, %v4678_v18  ;;  %v4624_v44 = vadd.f32 %v9370_v31, %v4623_v32  ;;  %v10058_v30 = vpop.f32.mrb[135].mxu1 }
 0x55b   : > { %v4679_v53 = vmax.f32 %v12822_v46, %v4624_v44  ;;  %v11067_v46 = vld [vmem:[%s14017_s4] sm:$0xff]  }
 0x55c   : > { %v4628_v15 = vpop.f32.mrb[136].mxu1 }
 0x55d   : > { %4693 = vst.msk [vmem:[#allocation2 + $0x10] sm:$0xff] %vm4690_vm4, %v4679_v53  ;;  %v4629_v13 = vadd.f32 %v9373_v60, %v4628_v15  ;;  %v10061_v2 = vpop.f32.mrb[137].mxu1 }
 0x55f   : > { %v4680_v57 = vmax.f32 %v12827_v29, %v4629_v13 }
 0x560   : > { %v4633_v17 = vpop.f32.mrb[138].mxu1  ;;  %v4727_v0 = vld [vmem:[#allocation2 + $0x1] sm:$0xff] }
 0x561   : > { %4694 = vst.msk [vmem:[#allocation2 + $0x18] sm:$0xff] %vm4690_vm4, %v4680_v57  ;;  %v4634_v9 = vadd.f32 %v9376_v5, %v4633_v17  ;;  %v10064_v24 = vpop.f32.mrb[139].mxu1 }
 0x563   : > { %v4681_v36 = vmax.f32 %v12833_v39, %v4634_v9  ;;  %v11068_v39 = vld [vmem:[%s14017_s4 + $0x8] sm:$0xff]  }
 0x564   : > { %v4638_v42 = vpop.f32.mrb[140].mxu1  ;;  %v4728_v31 = vld [vmem:[#allocation2 + $0x9] sm:$0xff] }
 0x565   : > { %4695 = vst.msk [vmem:[#allocation2 + $0x20] sm:$0xff] %vm4690_vm4, %v4681_v36  ;;  %v4639_v60 = vadd.f32 %v9379_v54, %v4638_v42  ;;  %v10067_v40 = vpop.f32.mrb[141].mxu1  ;;  %v4737_v43 = vpack.c.bf16 %v4728_v31, %v4727_v0 }
 0x567   : > { %v4682_v29 = vmax.f32 %v12839_v52, %v4639_v60  ;;  %10098 = vmatmul.mubr.msk.bf16.vlgmr.msra.gmra.mrb[156].mxu1 %vm4690_vm4, %v4737_v43 }
 0x568   : > { %v4643_v5 = vpop.f32.mrb[142].mxu1  ;;  %10101 = vmatprep.mubr.msk.bf16.mxu1 %vm11320_vm2, %v11321_v20  ;;  %10118 = vmatpush3.bf16.msra.mxu1 %v11067_v46  ;;  %v12916_v54 = vld [vmem:[#allocation2 + $0x14] sm:$0xff] }
 0x569   : > { %4696 = vst.msk [vmem:[#allocation2 + $0x28] sm:$0xff] %vm4690_vm4, %v4682_v29  ;;  %v4644_v62 = vadd.f32 %v9382_v28, %v4643_v5  ;;  %v10070_v55 = vpop.f32.mrb[143].mxu1  ;;  %10119 = vmatprep.subr.bf16.mxu1 %v11321_v20  ;;  %v4729_v8 = vld [vmem:[#allocation2 + $0x11] sm:$0xff] }
 0x56a   : > { %v4704_v55 = vld [vmem:[#allocation2] sm:$0xff] }
 0x56b   : > { %v4683_v52 = vmax.f32 %v12845_v49, %v4644_v62  ;;  %v11069_v49 = vld [vmem:[%s14017_s4 + $0x10] sm:$0xff]   ;;  %v4705_v62 = vld [vmem:[#allocation2 + $0x8] sm:$0xff] }
 0x56c   : > { %v4648_v3 = vpop.f32.mrb[144].mxu1  ;;  %v4730_v34 = vld [vmem:[#allocation2 + $0x19] sm:$0xff]  ;;  %10120 = vmatpush3.bf16.msra.mxu1 %v11068_v39 }
 0x56d   : > { %v12919_v11 = vld [vmem:[#allocation2 + $0x1c] sm:$0xff]  ;;  %4697 = vst.msk [vmem:[#allocation2 + $0x30] sm:$0xff] %vm4690_vm4, %v4683_v52  ;;  %v4649_v1 = vadd.f32 %v12882_v16, %v4648_v3  ;;  %v10073_v25 = vpop.f32.mrb[145].mxu1  ;;  %v4738_v10 = vpack.c.bf16 %v4730_v34, %v4729_v8  ;;  %10121 = vmatprep.subr.bf16.mxu1 %v11321_v20  ;;  %v4714_v3 = vpack.c.bf16 %v4705_v62, %v4704_v55 }
 0x56e   : > { %v5564_v28 = vpack.c.bf16 %v12919_v11, %v12916_v54  ;;  %v11076_v34 = vld [vmem:[%s14017_s4 + $0x40] sm:$0xff]   ;;  %v4707_v25 = vld [vmem:[#allocation2 + $0x18] sm:$0xff] }
 0x56f   : > { %v4684_v27 = vmax.f32 %v12851_v45, %v4649_v1  ;;  %10102 = vmatmul.mubr.msk.bf16.gmra.mrb[160].mxu1 %vm4690_vm4, %v4738_v10  ;;  %v11071_v45 = vld [vmem:[%s14017_s4 + $0x18] sm:$0xff]   ;;  %v11080_v1 = vld [vmem:[%s14017_s4 + $0x48] sm:$0xff]  }
 0x570   : > { %10266 = vmatmul.mubr.msk.bf16.vlgmr.msra.gmra.mrb[88].mxu0 %vm4690_vm4, %v5564_v28  ;;  %v4653_v16 = vpop.f32.mrb[146].mxu1  ;;  %10105 = vmatprep.mubr.msk.bf16.mxu1 %vm11320_vm2, %v11321_v20  ;;  %v12941_v47 = vld [vmem:[#allocation2 + $0x24] sm:$0xff]  ;;  %v4706_v28 = vld [vmem:[#allocation2 + $0x10] sm:$0xff]  ;;  %v4977_v62 = vld [vmem:[#allocation2 + $0x1a] sm:$0xff] }
 0x571   : > { %10269 = vmatprep.mubr.msk.bf16.mxu0 %vm11320_vm2, %v11321_v20  ;;  %4698 = vst.msk [vmem:[#allocation2 + $0x38] sm:$0xff] %vm4690_vm4, %v4684_v27  ;;  %v4654_v41 = vadd.f32 %v12884_v6, %v4653_v16  ;;  %v10076_v35 = vpop.f32.mrb[147].mxu1  ;;  %10122 = vmatpush3.bf16.msra.mxu1 %v11069_v49  ;;  %v5420_v12 = vpack.c.bf16 %v12941_v47, %v12919_v11  ;;  %v4731_v58 = vld [vmem:[#allocation2 + $0x21] sm:$0xff]  ;;  %v5699_v49 = vld [vmem:[#allocation2 + $0x15] sm:$0xff] }
 0x572   : > { %10286 = vmatpush3.bf16.msra.mxu0 %v12932_v37  ;;  %10123 = vmatprep.subr.bf16.mxu1 %v11321_v20  ;;  %v5700_v10 = vld [vmem:[#allocation2 + $0x1d] sm:$0xff]  ;;  %v4715_v16 = vpack.c.bf16 %v4707_v25, %v4706_v28  ;;  %v11081_v35 = vld [vmem:[%s14017_s4 + $0x50] sm:$0xff]  }
 0x573   : > { %10287 = vmatprep.subr.bf16.mxu0 %v11321_v20  ;;  %v4685_v6 = vmax.f32 %v12857_v7, %v4654_v41  ;;  %v12969_v7 = vld [vmem:[%s14017_s4 + $0xf0] sm:$0xff]   ;;  %v11075_v27 = vld [vmem:[%s14017_s4 + $0x100] sm:$0xff]   ;;  %v5709_v41 = vpack.c.bf16 %v5700_v10, %v5699_v49  ;;  %v11086_v25 = vld [vmem:[%s14017_s4 + $0x78] sm:$0xff]  }
 0x574   : > { %v4658_v61 = vpop.f32.mrb[148].mxu1  ;;  %v4732_v59 = vld [vmem:[#allocation2 + $0x29] sm:$0xff] }
 0x575   : > { %v12959_v4 = vld [vmem:[#allocation2 + $0x2c] sm:$0xff]  ;;  %4699 = vst.msk [vmem:[#allocation2 + $0x40] sm:$0xff] %vm4690_vm4, %v4685_v6  ;;  %v4659_v38 = vadd.f32 %v12886_v22, %v4658_v61  ;;  %v10079_v14 = vpop.f32.mrb[149].mxu1  ;;  %v4739_v26 = vpack.c.bf16 %v4732_v59, %v4731_v58  ;;  %10124 = vmatpush3.bf16.msra.mxu1 %v11071_v45  ;;  %v11082_v58 = vld [vmem:[%s14017_s4 + $0x58] sm:$0xff]   ;;  %v4708_v59 = vld [vmem:[#allocation2 + $0x20] sm:$0xff] }
 0x576   : > { %v5565_v18 = vpack.c.bf16 %v12959_v4, %v12941_v47  ;;  %10288 = vmatpush3.bf16.msra.mxu0 %v12952_v56  ;;  %10145 = vmatprep.subr.bf16.mxu1 %v11321_v20  ;;  %v11077_v45 = vld [vmem:[%s14017_s4 + $0x108] sm:$0xff]   ;;  %v11078_v14 = vld [vmem:[%s14017_s4 + $0x110] sm:$0xff]  }
 0x577   : > { %10289 = vmatprep.subr.bf16.mxu0 %v11321_v20  ;;  %v4686_v32 = vmax.f32 %v12863_v23, %v4659_v38  ;;  %10106 = vmatmul.mubr.msk.bf16.gmra.mrb[164].mxu1 %vm4690_vm4, %v4739_v26  ;;  %v12988_v23 = vld [vmem:[%s14017_s4 + $0xf8] sm:$0xff]   ;;  %v4709_v6 = vld [vmem:[#allocation2 + $0x28] sm:$0xff] }
 0x578   : > { %10270 = vmatmul.mubr.msk.bf16.gmra.mrb[92].mxu0 %vm4690_vm4, %v5565_v18  ;;  %v4663_v22 = vpop.f32.mrb[150].mxu1  ;;  %10109 = vmatprep.mubr.msk.bf16.mxu1 %vm11320_vm2, %v11321_v20  ;;  %v12980_v44 = vld [vmem:[#allocation2 + $0x34] sm:$0xff]  ;;  %v5701_v38 = vld [vmem:[#allocation2 + $0x25] sm:$0xff]  ;;  %v4716_v26 = vpack.c.bf16 %v4709_v6, %v4708_v59 }
 0x579   : > { %10273 = vmatprep.mubr.msk.bf16.mxu0 %vm11320_vm2, %v11321_v20  ;;  %4700 = vst.msk [vmem:[#allocation2 + $0x48] sm:$0xff] %vm4690_vm4, %v4686_v32  ;;  %v4664_v30 = vadd.f32 %v12888_v33, %v4663_v22  ;;  %v10082_v53 = vpop.f32.mrb[151].mxu1  ;;  %v5421_v15 = vpack.c.bf16 %v12980_v44, %v12959_v4  ;;  %v4733_v57 = vld [vmem:[#allocation2 + $0x31] sm:$0xff]  ;;  %v4978_v49 = vld [vmem:[#allocation2 + $0x22] sm:$0xff] }
 0x57a   : > { %10290 = vmatpush3.bf16.msra.mxu0 %v12969_v7  ;;  %v5702_v61 = vld [vmem:[#allocation2 + $0x2d] sm:$0xff]  ;;  %v11079_v32 = vld [vmem:[%s14017_s4 + $0x118] sm:$0xff]  }
 0x57b   : > { %10291 = vmatprep.subr.bf16.mxu0 %v11321_v20  ;;  %v4687_v13 = vmax.f32 %v12869_v21, %v4664_v30  ;;  %v5710_v18 = vpack.c.bf16 %v5702_v61, %v5701_v38  ;;  %v4711_v22 = vld [vmem:[#allocation2 + $0x38] sm:$0xff]  ;;  %v4710_v53 = vld [vmem:[#allocation2 + $0x30] sm:$0xff]  ;;  %v11087_v38 = vld [vmem:[%s14017_s4 + $0x80] sm:$0xff]  }
 0x57c   : > { %v4668_v2 = vpop.f32.mrb[152].mxu1  ;;  %v4734_v17 = vld [vmem:[#allocation2 + $0x39] sm:$0xff]  ;;  %v4979_v10 = vld [vmem:[#allocation2 + $0x2a] sm:$0xff] }
 0x57d   : > { %v12994_v9 = vld [vmem:[#allocation2 + $0x3c] sm:$0xff]  ;;  %4701 = vst.msk [vmem:[#allocation2 + $0x50] sm:$0xff] %vm4690_vm4, %v4687_v13  ;;  %v4669_v33 = vadd.f32 %v12890_v51, %v4668_v2  ;;  %v10085_v24 = vpop.f32.mrb[153].mxu1  ;;  %v4740_v36 = vpack.c.bf16 %v4734_v17, %v4733_v57  ;;  %v4717_v2 = vpack.c.bf16 %v4711_v22, %v4710_v53 }
 0x57e   : > { %v5566_v42 = vpack.c.bf16 %v12994_v9, %v12980_v44  ;;  %10292 = vmatpush3.bf16.msra.mxu0 %v12988_v23  ;;  %v5845_v30 = vld [vmem:[#allocation2 + $0x1e] sm:$0xff]  ;;  %v5844_v13 = vld [vmem:[#allocation2 + $0x16] sm:$0xff] }
 0x57f   : > { %10313 = vmatprep.subr.bf16.mxu0 %v11321_v20  ;;  %v4688_v21 = vmax.f32 %v12875_v50, %v4669_v33  ;;  %10110 = vmatmul.mubr.msk.bf16.gmra.mrb[168].mxu1 %vm4690_vm4, %v4740_v36  ;;  %v5854_v57 = vpack.c.bf16 %v5845_v30, %v5844_v13  ;;  %v5847_v33 = vld [vmem:[#allocation2 + $0x2e] sm:$0xff]  ;;  %v4712_v24 = vld [vmem:[#allocation2 + $0x40] sm:$0xff]  ;;  %v11090_v22 = vld [vmem:[%s14017_s4 + $0x98] sm:$0xff]  }
 0x580   : > { %10274 = vmatmul.mubr.msk.bf16.gmra.mrb[96].mxu0 %vm4690_vm4, %v5566_v42  ;;  %v4673_v0 = vpop.f32.mrb[154].mxu1  ;;  %10113 = vmatprep.mubr.msk.bf16.mxu1 %vm11320_vm2, %v11321_v20  ;;  %v13009_v51 = vld [vmem:[#allocation2 + $0x44] sm:$0xff] }
 0x581   : > { %10277 = vmatprep.mubr.msk.bf16.mxu0 %vm11320_vm2, %v11321_v20  ;;  %4702 = vst.msk [vmem:[#allocation2 + $0x58] sm:$0xff] %vm4690_vm4, %v4688_v21  ;;  %v4674_v31 = vadd.f32 %v12892_v63, %v4673_v0  ;;  %v10088_v46 = vpop.f32.mrb[155].mxu1  ;;  %v5422_v50 = vpack.c.bf16 %v13009_v51, %v12994_v9  ;;  %v4735_v40 = vld [vmem:[#allocation2 + $0x41] sm:$0xff]  ;;  %v4975_v0 = vld [vmem:[#allocation2 + $0xa] sm:$0xff] }
 0x582   : > { %v4713_v17 = vld [vmem:[#allocation2 + $0x48] sm:$0xff]  ;;  %v5704_v9 = vld [vmem:[#allocation2 + $0x3d] sm:$0xff] }
 0x583   : > { %v4689_v60 = vmax.f32 %v12880_v48, %v4674_v31  ;;  %v5846_v36 = vld [vmem:[#allocation2 + $0x26] sm:$0xff]  ;;  %v4718_v42 = vpack.c.bf16 %v4713_v17, %v4712_v24  ;;  %v5849_v31 = vld [vmem:[#allocation2 + $0x3e] sm:$0xff] }
 0x584   : > { %v4736_v43 = vld [vmem:[#allocation2 + $0x49] sm:$0xff]  ;;  %v5855_v21 = vpack.c.bf16 %v5847_v33, %v5846_v36  ;;  %v11091_v33 = vld [vmem:[%s14017_s4 + $0xa0] sm:$0xff]  }
 0x585   : > { %v13016_v29 = vld [vmem:[#allocation2 + $0x4c] sm:$0xff]  ;;  %4703 = vst.msk [vmem:[#allocation2 + $0x60] sm:$0xff] %vm4690_vm4, %v4689_v60  ;;  %v4741_v5 = vpack.c.bf16 %v4736_v43, %v4735_v40  ;;  %v4974_v46 = vld [vmem:[#allocation2 + $0x2] sm:$0xff]  ;;  %v5848_v60 = vld [vmem:[#allocation2 + $0x36] sm:$0xff] }
 0x586   : > { %v5567_v39 = vpack.c.bf16 %v13016_v29, %v13009_v51  ;;  %v4984_v40 = vpack.c.bf16 %v4975_v0, %v4974_v46  ;;  %v5856_v43 = vpack.c.bf16 %v5849_v31, %v5848_v60  ;;  %v5851_v55 = vld [vmem:[#allocation2 + $0x4e] sm:$0xff]  ;;  %v11094_v46 = vld [vmem:[%s14017_s4 + $0xb8] sm:$0xff]  }
 0x587   : > { %10114 = vmatmul.mubr.msk.bf16.gmra.mrb[172].mxu1 %vm4690_vm4, %v4741_v5  ;;  %v11083_v5 = vld [vmem:[%s14017_s4 + $0x60] sm:$0xff]   ;;  %v4983_v61 = vld [vmem:[#allocation2 + $0x4a] sm:$0xff]  ;;  %v5269_v60 = vld [vmem:[#allocation2 + $0x33] sm:$0xff] }
 0x588   : > { %10278 = vmatmul.mubr.msk.bf16.gmra.mrb[100].mxu0 %vm4690_vm4, %v5567_v39  ;;  %10125 = vmatprep.mubr.msk.bf16.mxu1 %vm11320_vm2, %v11321_v20  ;;  %v13027_v48 = vld [vmem:[#allocation2 + $0x54] sm:$0xff]  ;;  %v11084_v39 = vld [vmem:[%s14017_s4 + $0x68] sm:$0xff]  }
 0x589   : > { %10281 = vmatprep.mubr.msk.bf16.mxu0 %vm11320_vm2, %v11321_v20  ;;  %v5423_v63 = vpack.c.bf16 %v13027_v48, %v13016_v29  ;;  %v5128_v13 = vld [vmem:[#allocation2 + $0x52] sm:$0xff]  ;;  %v11092_v36 = vld [vmem:[%s14017_s4 + $0xa8] sm:$0xff]  }
 0x58a   : > { %v5264_v17 = vld [vmem:[#allocation2 + $0xb] sm:$0xff] }
 0x58c   : > { %v5563_v52 = vld [vmem:[#allocation2 + $0x5c] sm:$0xff] }
 0x58d   : > { %v5568_v8 = vpack.c.bf16 %v5563_v52, %v13027_v48  ;;  %v4976_v52 = vld [vmem:[#allocation2 + $0x12] sm:$0xff]  ;;  %v5853_v28 = vld [vmem:[#allocation2 + $0x5e] sm:$0xff] }
 0x58f   : > { %10126 = vmatmul.mubr.msk.bf16.vlgmr.msra.gmra.mrb[176].mxu1 %vm4690_vm4, %v4714_v3  ;;  %v5850_v3 = vld [vmem:[#allocation2 + $0x46] sm:$0xff] }
 0x590   : > { %10282 = vmatmul.mubr.msk.bf16.gmra.mrb[104].mxu0 %vm4690_vm4, %v5568_v8  ;;  %10129 = vmatprep.mubr.msk.bf16.mxu1 %vm11320_vm2, %v11321_v20  ;;  %v4985_v8 = vpack.c.bf16 %v4977_v62, %v4976_v52 }
 0x591   : > { %10293 = vmatprep.mubr.msk.bf16.mxu0 %vm11320_vm2, %v11321_v20  ;;  %10146 = vmatpush3.bf16.msra.mxu1 %v11076_v34  ;;  %v5857_v34 = vpack.c.bf16 %v5851_v55, %v5850_v3  ;;  %v5273_v55 = vld [vmem:[#allocation2 + $0x53] sm:$0xff] }
 0x592   : > { %10147 = vmatprep.subr.bf16.mxu1 %v11321_v20 }
 0x595   : > { %10148 = vmatpush3.bf16.msra.mxu1 %v11080_v1  ;;  %v11085_v1 = vld [vmem:[%s14017_s4 + $0x70] sm:$0xff]  }
 0x596   : > { %10149 = vmatprep.subr.bf16.mxu1 %v11321_v20 }
 0x597   : > { %10130 = vmatmul.mubr.msk.bf16.gmra.mrb[180].mxu1 %vm4690_vm4, %v4715_v16  ;;  %v4986_v16 = vpack.c.bf16 %v4979_v10, %v4978_v49 }
 0x598   : > { %10294 = vmatmul.mubr.msk.bf16.vlgmr.msra.gmra.mrb[108].mxu0 %vm4690_vm4, %v5709_v41  ;;  %10133 = vmatprep.mubr.msk.bf16.mxu1 %vm11320_vm2, %v11321_v20 }
 0x599   : > { %10314 = vmatpush3.bf16.msra.mxu0 %v11075_v27  ;;  %10297 = vmatprep.mubr.msk.bf16.mxu0 %vm11320_vm2, %v11321_v20  ;;  %v5852_v27 = vld [vmem:[#allocation2 + $0x56] sm:$0xff] }
 0x59a   : > { %10315 = vmatprep.subr.bf16.mxu0 %v11321_v20  ;;  %10150 = vmatpush3.bf16.msra.mxu1 %v11081_v35  ;;  %v5858_v41 = vpack.c.bf16 %v5853_v28, %v5852_v27  ;;  %v4981_v35 = vld [vmem:[#allocation2 + $0x3a] sm:$0xff] }
 0x59b   : > { %10151 = vmatprep.subr.bf16.mxu1 %v11321_v20 }
 0x59d   : > { %10316 = vmatpush3.bf16.msra.mxu0 %v11077_v45  ;;  %v4980_v45 = vld [vmem:[#allocation2 + $0x32] sm:$0xff] }
 0x59e   : > { %10317 = vmatprep.subr.bf16.mxu0 %v11321_v20  ;;  %10152 = vmatpush3.bf16.msra.mxu1 %v11082_v58  ;;  %v4987_v6 = vpack.c.bf16 %v4981_v35, %v4980_v45  ;;  %v4982_v58 = vld [vmem:[#allocation2 + $0x42] sm:$0xff]  ;;  %v5131_v30 = vpack.c.bf16 %v4980_v45, %v4979_v10 }
 0x59f   : > { %10134 = vmatmul.mubr.msk.bf16.gmra.mrb[184].mxu1 %vm4690_vm4, %v4716_v26  ;;  %10173 = vmatprep.subr.bf16.mxu1 %v11321_v20  ;;  %v4988_v59 = vpack.c.bf16 %v4983_v61, %v4982_v58  ;;  %v11088_v26 = vld [vmem:[%s14017_s4 + $0x88] sm:$0xff]   ;;  %v5132_v53 = vpack.c.bf16 %v4982_v58, %v4981_v35 }
 0x5a0   : > { %10298 = vmatmul.mubr.msk.bf16.gmra.mrb[112].mxu0 %vm4690_vm4, %v5710_v18  ;;  %10137 = vmatprep.mubr.msk.bf16.mxu1 %vm11320_vm2, %v11321_v20  ;;  %v11089_v18 = vld [vmem:[%s14017_s4 + $0x90] sm:$0xff]  }
 0x5a1   : > { %10318 = vmatpush3.bf16.msra.mxu0 %v11078_v14  ;;  %10321 = vmatprep.mubr.msk.bf16.mxu0 %vm11320_vm2, %v11321_v20  ;;  %v5129_v14 = vpack.c.bf16 %v4976_v52, %v4975_v0  ;;  %v11093_v0 = vld [vmem:[%s14017_s4 + $0xb0] sm:$0xff]  }
 0x5a2   : > { %10319 = vmatprep.subr.bf16.mxu0 %v11321_v20  ;;  %v5272_v52 = vld [vmem:[#allocation2 + $0x4b] sm:$0xff] }
 0x5a3   : > { %v5278_v3 = vpack.c.bf16 %v5273_v55, %v5272_v52 }
 0x5a5   : > { %10320 = vmatpush3.bf16.msra.mxu0 %v11079_v32  ;;  %v5130_v32 = vpack.c.bf16 %v4978_v49, %v4977_v62 }
 0x5a6   : > { %10648 = vmatprep.subr.bf16.mxu0 %v11319_v19 }
 0x5a7   : > { %10138 = vmatmul.mubr.msk.bf16.gmra.mrb[188].mxu1 %vm4690_vm4, %v4717_v2  ;;  %v5133_v2 = vpack.c.bf16 %v5128_v13, %v4983_v61  ;;  %v5703_v61 = vld [vmem:[#allocation2 + $0x35] sm:$0xff] }
 0x5a8   : > { %10322 = vmatmul.mubr.msk.bf16.vlgmr.msra.gmra.mrb[116].mxu0 %vm4690_vm4, %v5854_v57  ;;  %10141 = vmatprep.mubr.msk.bf16.mxu1 %vm11320_vm2, %v11321_v20  ;;  %v5265_v57 = vld [vmem:[#allocation2 + $0x13] sm:$0xff] }
 0x5a9   : > { %10325 = vmatprep.mubr.msk.bf16.mxu0 %vm11320_vm2, %v11321_v20  ;;  %v5274_v24 = vpack.c.bf16 %v5265_v57, %v5264_v17 }
 0x5af   : > { %10142 = vmatmul.mubr.msk.bf16.gmra.mrb[192].mxu1 %vm4690_vm4, %v4718_v42  ;;  %v5267_v42 = vld [vmem:[#allocation2 + $0x23] sm:$0xff] }
 0x5b0   : > { %10326 = vmatmul.mubr.msk.bf16.gmra.mrb[120].mxu0 %vm4690_vm4, %v5855_v21  ;;  %10153 = vmatprep.mubr.msk.bf16.mxu1 %vm11320_vm2, %v11321_v20  ;;  %v5266_v21 = vld [vmem:[#allocation2 + $0x1b] sm:$0xff] }
 0x5b1   : > { %10329 = vmatprep.mubr.msk.bf16.mxu0 %vm11320_vm2, %v11321_v20  ;;  %v5275_v31 = vpack.c.bf16 %v5267_v42, %v5266_v21 }
 0x5b7   : > { %10154 = vmatmul.mubr.msk.bf16.vlgmr.msra.gmra.mrb[196].mxu1 %vm4690_vm4, %v4984_v40  ;;  %v5268_v40 = vld [vmem:[#allocation2 + $0x2b] sm:$0xff] }
 0x5b8   : > { %10330 = vmatmul.mubr.msk.bf16.gmra.mrb[124].mxu0 %vm4690_vm4, %v5856_v43  ;;  %10157 = vmatprep.mubr.msk.bf16.mxu1 %vm11320_vm2, %v11321_v20  ;;  %v5276_v43 = vpack.c.bf16 %v5269_v60, %v5268_v40 }
 0x5b9   : > { %10333 = vmatprep.mubr.msk.bf16.mxu0 %vm11320_vm2, %v11321_v20  ;;  %10174 = vmatpush3.bf16.msra.mxu1 %v11083_v5  ;;  %v5271_v5 = vld [vmem:[#allocation2 + $0x43] sm:$0xff] }
 0x5ba   : > { %10175 = vmatprep.subr.bf16.mxu1 %v11321_v20 }
 0x5bd   : > { %10176 = vmatpush3.bf16.msra.mxu1 %v11084_v39  ;;  %v5270_v39 = vld [vmem:[#allocation2 + $0x3b] sm:$0xff] }
 0x5be   : > { %10177 = vmatprep.subr.bf16.mxu1 %v11321_v20  ;;  %v5277_v62 = vpack.c.bf16 %v5271_v5, %v5270_v39 }
 0x5bf   : > { %10158 = vmatmul.mubr.msk.bf16.gmra.mrb[200].mxu1 %vm4690_vm4, %v4985_v8  ;;  %v5409_v8 = vld [vmem:[#allocation2 + $0xc] sm:$0xff] }
 0x5c0   : > { %10334 = vmatmul.mubr.msk.bf16.gmra.mrb[128].mxu0 %vm4690_vm4, %v5857_v34  ;;  %10161 = vmatprep.mubr.msk.bf16.mxu1 %vm11320_vm2, %v11321_v20  ;;  %v5419_v34 = vpack.c.bf16 %v12916_v54, %v5409_v8 }
 0x5c1   : > { %10337 = vmatprep.mubr.msk.bf16.mxu0 %vm11320_vm2, %v11321_v20  ;;  %10178 = vmatpush3.bf16.msra.mxu1 %v11085_v1 }
 0x5c2   : > { %10179 = vmatprep.subr.bf16.mxu1 %v11321_v20 }
 0x5c5   : > { %10180 = vmatpush3.bf16.msra.mxu1 %v11086_v25 }
 0x5c6   : > { %10201 = vmatprep.subr.bf16.mxu1 %v11321_v20 }
 0x5c7   : > { %10162 = vmatmul.mubr.msk.bf16.gmra.mrb[204].mxu1 %vm4690_vm4, %v4986_v16 }
 0x5c8   : > { %10338 = vmatmul.mubr.msk.bf16.gmra.mrb[132].mxu0 %vm4690_vm4, %v5858_v41  ;;  %10165 = vmatprep.mubr.msk.bf16.mxu1 %vm11320_vm2, %v11321_v20 }
 0x5c9   : > { %10396 = vmatprep.mubr.msk.f32.mxu0 %vm11320_vm2, %v11321_v20 }
 0x5cf   : > { %10166 = vmatmul.mubr.msk.bf16.gmra.mrb[208].mxu1 %vm4690_vm4, %v4987_v6 }
 0x5d0   : > { %10169 = vmatprep.mubr.msk.bf16.mxu1 %vm11320_vm2, %v11321_v20 }
 0x5d7   : > { %10170 = vmatmul.mubr.msk.bf16.gmra.mrb[212].mxu1 %vm4690_vm4, %v4988_v59 }
 0x5d8   : > { %10181 = vmatprep.mubr.msk.bf16.mxu1 %vm11320_vm2, %v11321_v20 }
 0x5df   : > { %10182 = vmatmul.mubr.msk.bf16.vlgmr.msra.gmra.mrb[216].mxu1 %vm4690_vm4, %v5129_v14 }
 0x5e0   : > { %10185 = vmatprep.mubr.msk.bf16.mxu1 %vm11320_vm2, %v11321_v20  ;;  %10202 = vmatpush3.bf16.msra.mxu1 %v11087_v38  ;;  %v5711_v38 = vpack.c.bf16 %v5704_v9, %v5703_v61 }
 0x5e1   : > { %10203 = vmatprep.subr.bf16.mxu1 %v11321_v20 }
 0x5e4   : > { %10204 = vmatpush3.bf16.msra.mxu1 %v11088_v26 }
 0x5e5   : > { %10205 = vmatprep.subr.bf16.mxu1 %v11321_v20 }
 0x5e7   : > { %10186 = vmatmul.mubr.msk.bf16.gmra.mrb[220].mxu1 %vm4690_vm4, %v5130_v32 }
 0x5e8   : > { %10189 = vmatprep.mubr.msk.bf16.mxu1 %vm11320_vm2, %v11321_v20  ;;  %10206 = vmatpush3.bf16.msra.mxu1 %v11089_v18 }
 0x5e9   : > { %10207 = vmatprep.subr.bf16.mxu1 %v11321_v20 }
 0x5ec   : > { %10208 = vmatpush3.bf16.msra.mxu1 %v11090_v22 }
 0x5ed   : > { %10229 = vmatprep.subr.bf16.mxu1 %v11321_v20 }
 0x5ef   : > { %10190 = vmatmul.mubr.msk.bf16.gmra.mrb[224].mxu1 %vm4690_vm4, %v5131_v30 }
 0x5f0   : > { %10193 = vmatprep.mubr.msk.bf16.mxu1 %vm11320_vm2, %v11321_v20 }
 0x5f7   : > { %10194 = vmatmul.mubr.msk.bf16.gmra.mrb[228].mxu1 %vm4690_vm4, %v5132_v53  ;;  %v5705_v53 = vld [vmem:[#allocation2 + $0x45] sm:$0xff] }
 0x5f8   : > { %10197 = vmatprep.mubr.msk.bf16.mxu1 %vm11320_vm2, %v11321_v20 }
 0x5ff   : > { %10198 = vmatmul.mubr.msk.bf16.gmra.mrb[232].mxu1 %vm4690_vm4, %v5133_v2 }
 0x600   : > { %10209 = vmatprep.mubr.msk.bf16.mxu1 %vm11320_vm2, %v11321_v20 }
 0x607   : > { %10210 = vmatmul.mubr.msk.bf16.vlgmr.msra.gmra.mrb[236].mxu1 %vm4690_vm4, %v5274_v24  ;;  %v5708_v24 = vld [vmem:[#allocation2 + $0x5d] sm:$0xff] }
 0x608   : > { %10213 = vmatprep.mubr.msk.bf16.mxu1 %vm11320_vm2, %v11321_v20  ;;  %10230 = vmatpush3.bf16.msra.mxu1 %v11091_v33 }
 0x609   : > { %10231 = vmatprep.subr.bf16.mxu1 %v11321_v20 }
 0x60c   : > { %10232 = vmatpush3.bf16.msra.mxu1 %v11092_v36 }
 0x60d   : > { %10233 = vmatprep.subr.bf16.mxu1 %v11321_v20 }
 0x60f   : > { %10214 = vmatmul.mubr.msk.bf16.gmra.mrb[240].mxu1 %vm4690_vm4, %v5275_v31 }
 0x610   : > { %10217 = vmatprep.mubr.msk.bf16.mxu1 %vm11320_vm2, %v11321_v20  ;;  %10234 = vmatpush3.bf16.msra.mxu1 %v11093_v0 }
 0x611   : > { %10235 = vmatprep.subr.bf16.mxu1 %v11321_v20 }
 0x614   : > { %10236 = vmatpush3.bf16.msra.mxu1 %v11094_v46  ;;  %v5707_v46 = vld [vmem:[#allocation2 + $0x55] sm:$0xff] }
 0x615   : > { %10709 = vmatprep.subr.bf16.mxu1 %v11321_v20  ;;  %v5713_v5 = vpack.c.bf16 %v5708_v24, %v5707_v46 }
 0x617   : > { %10218 = vmatmul.mubr.msk.bf16.gmra.mrb[244].mxu1 %vm4690_vm4, %v5276_v43 }
 0x618   : > { %10221 = vmatprep.mubr.msk.bf16.mxu1 %vm11320_vm2, %v11321_v20 }
 0x61f   : > { %10222 = vmatmul.mubr.msk.bf16.gmra.mrb[248].mxu1 %vm4690_vm4, %v5277_v62 }
 0x620   : > { %10225 = vmatprep.mubr.msk.bf16.mxu1 %vm11320_vm2, %v11321_v20 }
 0x627   : > { %10226 = vmatmul.mubr.msk.bf16.gmra.mrb[252].mxu1 %vm4690_vm4, %v5278_v3 }
 0x628   : > { %10237 = vmatprep.mubr.msk.bf16.mxu1 %vm11320_vm2, %v11321_v20 }
 0x62f   : > { %10238 = vmatmul.mubr.msk.bf16.vlgmr.msra.gmra.mrb[0].mxu1 %vm4690_vm4, %v5419_v34 }
 0x630   : > { %10241 = vmatprep.mubr.msk.bf16.mxu1 %vm11320_vm2, %v11321_v20  ;;  %10713 = vmatpush3.bf16.msra.mxu1 %v12932_v37 }
 0x631   : > { %10710 = vmatprep.subr.bf16.mxu1 %v11321_v20 }
 0x634   : > { %10714 = vmatpush3.bf16.msra.mxu1 %v12952_v56 }
 0x635   : > { %10711 = vmatprep.subr.bf16.mxu1 %v11321_v20 }
 0x637   : > { %10242 = vmatmul.mubr.msk.bf16.gmra.mrb[4].mxu1 %vm4690_vm4, %v5420_v12 }
 0x638   : > { %10245 = vmatprep.mubr.msk.bf16.mxu1 %vm11320_vm2, %v11321_v20  ;;  %10715 = vmatpush3.bf16.msra.mxu1 %v12969_v7 }
 0x639   : > { %10712 = vmatprep.subr.bf16.mxu1 %v11321_v20 }
 0x63a   : > { %v4823_v54 = vpop.f32.mrb[156].mxu1 }
 0x63b   : > { %v10099_v37 = vpop.f32.mrb[157].mxu1 }
 0x63c   : > { %v4826_v1 = vpop.f32.mrb[158].mxu1  ;;  %10716 = vmatpush3.bf16.msra.mxu1 %v12988_v23 }
 0x63d   : > { %v10100_v56 = vpop.f32.mrb[159].mxu1  ;;  %10633 = vmatprep.subr.bf16.mxu1 %v11319_v19 }
 0x63f   : > { %10246 = vmatmul.mubr.msk.bf16.gmra.mrb[8].mxu1 %vm4690_vm4, %v5421_v15 }
 0x640   : > { %10249 = vmatprep.mubr.msk.bf16.mxu1 %vm11320_vm2, %v11321_v20 }
 0x642   : > { %v13220_v11 = vpop.f32.mrb[160].mxu1 }
 0x643   : > { %v13222_v47 = vpop.f32.mrb[88].mxu0  ;;  %v10103_v12 = vpop.f32.mrb[161].mxu1 }
 0x644   : > { %v10267_v7 = vpop.f32.mrb[89].mxu0  ;;  %v13224_v25 = vpop.f32.mrb[162].mxu1 }
 0x645   : > { %v13226_v23 = vpop.f32.mrb[90].mxu0  ;;  %v10104_v10 = vpop.f32.mrb[163].mxu1 }
 0x646   : > { %v10268_v28 = vpop.f32.mrb[91].mxu0 }
 0x647   : > { %10250 = vmatmul.mubr.msk.bf16.gmra.mrb[12].mxu1 %vm4690_vm4, %v5422_v50 }
 0x648   : > { %10253 = vmatprep.mubr.msk.bf16.mxu1 %vm11320_vm2, %v11321_v20 }
 0x64a   : > { %v13234_v4 = vpop.f32.mrb[164].mxu1 }
 0x64b   : > { %v13236_v44 = vpop.f32.mrb[92].mxu0  ;;  %v10107_v15 = vpop.f32.mrb[165].mxu1 }
 0x64c   : > { %v10271_v49 = vpop.f32.mrb[93].mxu0  ;;  %v13238_v27 = vpop.f32.mrb[166].mxu1 }
 0x64d   : > { %v13240_v16 = vpop.f32.mrb[94].mxu0  ;;  %v10108_v41 = vpop.f32.mrb[167].mxu1 }
 0x64e   : > { %v10272_v35 = vpop.f32.mrb[95].mxu0 }
 0x64f   : > { %10254 = vmatmul.mubr.msk.bf16.gmra.mrb[16].mxu1 %vm4690_vm4, %v5423_v63  ;;  %v5706_v63 = vld [vmem:[#allocation2 + $0x4d] sm:$0xff] }
 0x650   : > { %10301 = vmatprep.mubr.msk.bf16.mxu1 %vm11320_vm2, %v11321_v20  ;;  %v5712_v57 = vpack.c.bf16 %v5706_v63, %v5705_v53 }
 0x652   : > { %v4847_v51 = vpop.f32.mrb[168].mxu1 }
 0x653   : > { %v13248_v50 = vpop.f32.mrb[96].mxu0  ;;  %v10111_v45 = vpop.f32.mrb[169].mxu1 }
 0x654   : > { %v10275_v6 = vpop.f32.mrb[97].mxu0  ;;  %v4850_v58 = vpop.f32.mrb[170].mxu1 }
 0x655   : > { %v13250_v59 = vpop.f32.mrb[98].mxu0  ;;  %v10112_v14 = vpop.f32.mrb[171].mxu1 }
 0x656   : > { %v10276_v26 = vpop.f32.mrb[99].mxu0 }
 0x657   : > { %10302 = vmatmul.mubr.msk.bf16.vlgmr.msra.gmra.mrb[20].mxu1 %vm4690_vm4, %v5711_v38 }
 0x658   : > { %10305 = vmatprep.mubr.msk.bf16.mxu1 %vm11320_vm2, %v11321_v20 }
 0x65a   : > { %v4855_v29 = vpop.f32.mrb[172].mxu1 }
 0x65b   : > { %v13255_v48 = vpop.f32.mrb[100].mxu0  ;;  %v10115_v18 = vpop.f32.mrb[173].mxu1 }
 0x65c   : > { %v10279_v32 = vpop.f32.mrb[101].mxu0  ;;  %v4858_v22 = vpop.f32.mrb[174].mxu1 }
 0x65d   : > { %v13257_v30 = vpop.f32.mrb[102].mxu0  ;;  %v10116_v13 = vpop.f32.mrb[175].mxu1 }
 0x65e   : > { %v10280_v2 = vpop.f32.mrb[103].mxu0 }
 0x65f   : > { %10306 = vmatmul.mubr.msk.bf16.gmra.mrb[24].mxu1 %vm4690_vm4, %v5712_v57 }
 0x660   : > { %10309 = vmatprep.mubr.msk.bf16.mxu1 %vm11320_vm2, %v11321_v20 }
 0x662   : > { %v4935_v17 = vpop.f32.mrb[176].mxu1 }
 0x663   : > { %v13262_v33 = vpop.f32.mrb[104].mxu0  ;;  %v4936_v36 = vadd.f32 %v4935_v17, %v4823_v54  ;;  %v10127_v42 = vpop.f32.mrb[177].mxu1 }
 0x664   : > { %v10283_v21 = vpop.f32.mrb[105].mxu0  ;;  %v4938_v0 = vpop.f32.mrb[178].mxu1 }
 0x665   : > { %v13264_v31 = vpop.f32.mrb[106].mxu0  ;;  %v4939_v60 = vadd.f32 %v4938_v0, %v4826_v1  ;;  %v10128_v40 = vpop.f32.mrb[179].mxu1 }
 0x666   : > { %v10284_v43 = vpop.f32.mrb[107].mxu0 }
 0x667   : > { %10310 = vmatmul.mubr.msk.bf16.gmra.mrb[28].mxu1 %vm4690_vm4, %v5713_v5 }
 0x668   : > { %10361 = vmatprep.mubr.msk.f32.mxu1 %vm11320_vm2, %v11321_v20 }
 0x66a   : > { %v4943_v39 = vpop.f32.mrb[180].mxu1 }
 0x66b   : > { %v13269_v62 = vpop.f32.mrb[108].mxu0  ;;  %v4944_v55 = vadd.f32 %v4943_v39, %v13220_v11  ;;  %v10131_v52 = vpop.f32.mrb[181].mxu1 }
 0x66c   : > { %v10295_v3 = vpop.f32.mrb[109].mxu0  ;;  %v4946_v8 = vpop.f32.mrb[182].mxu1 }
 0x66d   : > { %v13272_v34 = vpop.f32.mrb[110].mxu0  ;;  %v4947_v54 = vadd.f32 %v4946_v8, %v13224_v25  ;;  %v10132_v37 = vpop.f32.mrb[183].mxu1 }
 0x66e   : > { %v10296_v1 = vpop.f32.mrb[111].mxu0 }
 0x672   : > { %v4951_v56 = vpop.f32.mrb[184].mxu1 }
 0x673   : > { %v13275_v12 = vpop.f32.mrb[112].mxu0  ;;  %v4952_v7 = vadd.f32 %v4951_v56, %v13234_v4  ;;  %v10135_v10 = vpop.f32.mrb[185].mxu1 }
 0x674   : > { %v10299_v28 = vpop.f32.mrb[113].mxu0  ;;  %v4954_v15 = vpop.f32.mrb[186].mxu1 }
 0x675   : > { %v13278_v49 = vpop.f32.mrb[114].mxu0  ;;  %v4955_v11 = vadd.f32 %v4954_v15, %v13238_v27  ;;  %v10136_v41 = vpop.f32.mrb[187].mxu1 }
 0x676   : > { %v10300_v35 = vpop.f32.mrb[115].mxu0 }
 0x67a   : > { %v4959_v9 = vpop.f32.mrb[188].mxu1 }
 0x67b   : > { %v13281_v45 = vpop.f32.mrb[116].mxu0  ;;  %v4960_v25 = vadd.f32 %v4959_v9, %v4847_v51  ;;  %v10139_v6 = vpop.f32.mrb[189].mxu1 }
 0x67c   : > { %v10323_v61 = vpop.f32.mrb[117].mxu0  ;;  %v4962_v38 = vpop.f32.mrb[190].mxu1 }
 0x67d   : > { %v13283_v14 = vpop.f32.mrb[118].mxu0  ;;  %v4963_v26 = vadd.f32 %v4962_v38, %v4850_v58  ;;  %v10140_v4 = vpop.f32.mrb[191].mxu1 }
 0x67e   : > { %v10324_v63 = vpop.f32.mrb[119].mxu0 }
 0x682   : > { %v4967_v18 = vpop.f32.mrb[192].mxu1 }
 0x683   : > { %v13285_v32 = vpop.f32.mrb[120].mxu0  ;;  %v4968_v53 = vadd.f32 %v4967_v18, %v4855_v29  ;;  %v10143_v13 = vpop.f32.mrb[193].mxu1 }
 0x684   : > { %v10327_v27 = vpop.f32.mrb[121].mxu0  ;;  %v4970_v2 = vpop.f32.mrb[194].mxu1 }
 0x685   : > { %v13287_v57 = vpop.f32.mrb[122].mxu0  ;;  %v4971_v17 = vadd.f32 %v4970_v2, %v4858_v22  ;;  %v10144_v24 = vpop.f32.mrb[195].mxu1 }
 0x686   : > { %v10328_v51 = vpop.f32.mrb[123].mxu0 }
 0x68a   : > { %v5070_v42 = vpop.f32.mrb[196].mxu1 }
 0x68b   : > { %v13289_v21 = vpop.f32.mrb[124].mxu0  ;;  %v5109_v0 = vadd.f32 %v5070_v42, %v4936_v36  ;;  %v10155_v46 = vpop.f32.mrb[197].mxu1 }
 0x68c   : > { %v10331_v58 = vpop.f32.mrb[125].mxu0  ;;  %v5073_v40 = vpop.f32.mrb[198].mxu1 }
 0x68d   : > { %v13291_v43 = vpop.f32.mrb[126].mxu0  ;;  %v5110_v5 = vadd.f32 %v5073_v40, %v4939_v60  ;;  %v10156_v39 = vpop.f32.mrb[199].mxu1 }
 0x68e   : > { %v10332_v29 = vpop.f32.mrb[127].mxu0 }
 0x692   : > { %v5078_v52 = vpop.f32.mrb[200].mxu1 }
 0x693   : > { %v13293_v3 = vpop.f32.mrb[128].mxu0  ;;  %v5111_v8 = vadd.f32 %v5078_v52, %v4944_v55  ;;  %v10159_v37 = vpop.f32.mrb[201].mxu1 }
 0x694   : > { %v10335_v22 = vpop.f32.mrb[129].mxu0  ;;  %v5081_v1 = vpop.f32.mrb[202].mxu1 }
 0x695   : > { %v13295_v56 = vpop.f32.mrb[130].mxu0  ;;  %v5112_v10 = vadd.f32 %v5081_v1, %v4947_v54  ;;  %v10160_v28 = vpop.f32.mrb[203].mxu1 }
 0x696   : > { %v10336_v36 = vpop.f32.mrb[131].mxu0 }
 0x69a   : > { %v5086_v15 = vpop.f32.mrb[204].mxu1 }
 0x69b   : > { %v13297_v41 = vpop.f32.mrb[132].mxu0  ;;  %v5113_v35 = vadd.f32 %v5086_v15, %v4952_v7  ;;  %v10163_v9 = vpop.f32.mrb[205].mxu1 }
 0x69c   : > { %v10339_v60 = vpop.f32.mrb[133].mxu0  ;;  %v5089_v6 = vpop.f32.mrb[206].mxu1 }
 0x69d   : > { %v13299_v61 = vpop.f32.mrb[134].mxu0  ;;  %v5114_v38 = vadd.f32 %v5089_v6, %v4955_v11  ;;  %v10164_v4 = vpop.f32.mrb[207].mxu1 }
 0x69e   : > { %v10340_v55 = vpop.f32.mrb[135].mxu0 }
 0x6a2   : > { %v5094_v63 = vpop.f32.mrb[208].mxu1 }
 0x6a3   : > { %v5115_v18 = vadd.f32 %v5094_v63, %v4960_v25  ;;  %v10167_v13 = vpop.f32.mrb[209].mxu1 }
 0x6a4   : > { %v5097_v27 = vpop.f32.mrb[210].mxu1 }
 0x6a5   : > { %v5116_v2 = vadd.f32 %v5097_v27, %v4963_v26  ;;  %v10168_v54 = vpop.f32.mrb[211].mxu1 }
 0x6aa   : > { %v5102_v24 = vpop.f32.mrb[212].mxu1 }
 0x6ab   : > { %v5117_v51 = vadd.f32 %v5102_v24, %v4968_v53  ;;  %v10171_v42 = vpop.f32.mrb[213].mxu1 }
 0x6ac   : > { %v5105_v46 = vpop.f32.mrb[214].mxu1 }
 0x6ad   : > { %v5118_v58 = vadd.f32 %v5105_v46, %v4971_v17  ;;  %v10172_v7 = vpop.f32.mrb[215].mxu1 }
 0x6b2   : > { %v5215_v40 = vpop.f32.mrb[216].mxu1 }
 0x6b3   : > { %v5254_v39 = vadd.f32 %v5215_v40, %v5109_v0  ;;  %v10183_v29 = vpop.f32.mrb[217].mxu1 }
 0x6b4   : > { %v5218_v52 = vpop.f32.mrb[218].mxu1 }
 0x6b5   : > { %v5255_v37 = vadd.f32 %v5218_v52, %v5110_v5  ;;  %v10184_v11 = vpop.f32.mrb[219].mxu1 }
 0x6ba   : > { %v5223_v22 = vpop.f32.mrb[220].mxu1 }
 0x6bb   : > { %v5256_v1 = vadd.f32 %v5223_v22, %v5111_v8  ;;  %v10187_v28 = vpop.f32.mrb[221].mxu1 }
 0x6bc   : > { %v5226_v25 = vpop.f32.mrb[222].mxu1 }
 0x6bd   : > { %v5257_v36 = vadd.f32 %v5226_v25, %v5112_v10  ;;  %v10188_v15 = vpop.f32.mrb[223].mxu1 }
 0x6c2   : > { %v5231_v26 = vpop.f32.mrb[224].mxu1 }
 0x6c3   : > { %v5258_v9 = vadd.f32 %v5231_v26, %v5113_v35  ;;  %v10191_v60 = vpop.f32.mrb[225].mxu1 }
 0x6c4   : > { %v5234_v53 = vpop.f32.mrb[226].mxu1 }
 0x6c5   : > { %v5259_v6 = vadd.f32 %v5234_v53, %v5114_v38  ;;  %v10192_v4 = vpop.f32.mrb[227].mxu1 }
 0x6ca   : > { %v5239_v17 = vpop.f32.mrb[228].mxu1 }
 0x6cb   : > { %v5260_v55 = vadd.f32 %v5239_v17, %v5115_v18  ;;  %v10195_v63 = vpop.f32.mrb[229].mxu1 }
 0x6cc   : > { %v5242_v0 = vpop.f32.mrb[230].mxu1 }
 0x6cd   : > { %v5261_v13 = vadd.f32 %v5242_v0, %v5116_v2  ;;  %v10196_v27 = vpop.f32.mrb[231].mxu1 }
 0x6d2   : > { %v5247_v5 = vpop.f32.mrb[232].mxu1 }
 0x6d3   : > { %v5262_v54 = vadd.f32 %v5247_v5, %v5117_v51  ;;  %v10199_v24 = vpop.f32.mrb[233].mxu1 }
 0x6d4   : > { %v5250_v8 = vpop.f32.mrb[234].mxu1 }
 0x6d5   : > { %v5263_v42 = vadd.f32 %v5250_v8, %v5118_v58  ;;  %v10200_v46 = vpop.f32.mrb[235].mxu1 }
 0x6da   : > { %v5360_v10 = vpop.f32.mrb[236].mxu1 }
 0x6db   : > { %v5399_v7 = vadd.f32 %v5360_v10, %v5254_v39  ;;  %v10211_v40 = vpop.f32.mrb[237].mxu1 }
 0x6dc   : > { %v5363_v35 = vpop.f32.mrb[238].mxu1 }
 0x6dd   : > { %v5400_v29 = vadd.f32 %v5363_v35, %v5255_v37  ;;  %v10212_v52 = vpop.f32.mrb[239].mxu1 }
 0x6e2   : > { %v5368_v38 = vpop.f32.mrb[240].mxu1 }
 0x6e3   : > { %v5401_v11 = vadd.f32 %v5368_v38, %v5256_v1  ;;  %v10215_v22 = vpop.f32.mrb[241].mxu1 }
 0x6e4   : > { %v5371_v18 = vpop.f32.mrb[242].mxu1 }
 0x6e5   : > { %v5402_v28 = vadd.f32 %v5371_v18, %v5257_v36  ;;  %v10216_v25 = vpop.f32.mrb[243].mxu1 }
 0x6ea   : > { %v5376_v2 = vpop.f32.mrb[244].mxu1 }
 0x6eb   : > { %v5403_v15 = vadd.f32 %v5376_v2, %v5258_v9  ;;  %v10219_v26 = vpop.f32.mrb[245].mxu1 }
 0x6ec   : > { %v5379_v51 = vpop.f32.mrb[246].mxu1 }
 0x6ed   : > { %v5404_v60 = vadd.f32 %v5379_v51, %v5259_v6  ;;  %v10220_v53 = vpop.f32.mrb[247].mxu1 }
 0x6f2   : > { %v5384_v58 = vpop.f32.mrb[248].mxu1 }
 0x6f3   : > { %v5405_v4 = vadd.f32 %v5384_v58, %v5260_v55  ;;  %v10223_v17 = vpop.f32.mrb[249].mxu1 }
 0x6f4   : > { %v5387_v39 = vpop.f32.mrb[250].mxu1 }
 0x6f5   : > { %v13301_v63 = vadd.f32 %v5387_v39, %v5261_v13  ;;  %v10224_v37 = vpop.f32.mrb[251].mxu1 }
 0x6fa   : > { %v5392_v0 = vpop.f32.mrb[252].mxu1 }
 0x6fb   : > { %v13303_v27 = vadd.f32 %v5392_v0, %v5262_v54  ;;  %v10227_v1 = vpop.f32.mrb[253].mxu1  ;;  %v13313_v54 = vld [vmem:[%s14018_s5] ss:$0 sm:$0xff] }
 0x6fc   : > { %v5395_v5 = vpop.f32.mrb[254].mxu1 }
 0x6fd   : > { %v13305_v36 = vadd.f32 %v5395_v5, %v5263_v42  ;;  %v10228_v24 = vpop.f32.mrb[255].mxu1 }
 0x702   : > { %v5505_v9 = vpop.f32.mrb[0].mxu1 }
 0x703   : > { %v5544_v8 = vadd.f32 %v5505_v9, %v5399_v7  ;;  %v10239_v46 = vpop.f32.mrb[1].mxu1 }
 0x704   : > { %v5508_v6 = vpop.f32.mrb[2].mxu1 }
 0x705   : > { %v5689_v10 = vadd.f32 %v13222_v47, %v5544_v8  ;;  %v5545_v55 = vadd.f32 %v5508_v6, %v5400_v29  ;;  %v10240_v40 = vpop.f32.mrb[3].mxu1 }
 0x707   : > { %v5834_v13 = vadd.f32 %v13269_v62, %v5689_v10  ;;  %v5690_v35 = vadd.f32 %v13226_v23, %v5545_v55 }
 0x709   : > { %v5979_v42 = vadd.f32 %v13281_v45, %v5834_v13  ;;  %v5835_v52 = vadd.f32 %v13272_v34, %v5690_v35 }
 0x70a   : > { %v5513_v7 = vpop.f32.mrb[4].mxu1 }
 0x70b   : > { %v5996_v38 = vadd.f32 %v13313_v54, %v5979_v42  ;;  %v5980_v47 = vadd.f32 %v13283_v14, %v5835_v52  ;;  %v5546_v29 = vadd.f32 %v5513_v7, %v5401_v11  ;;  %v10243_v22 = vpop.f32.mrb[5].mxu1 }
 0x70c   : > { %v5516_v18 = vpop.f32.mrb[6].mxu1 }
 0x70d   : > { %v5997_v62 = vadd.f32 %v13313_v54, %v5980_v47  ;;  %v5691_v23 = vadd.f32 %v13236_v44, %v5546_v29  ;;  %v5547_v25 = vadd.f32 %v5516_v18, %v5402_v28  ;;  %v10244_v2 = vpop.f32.mrb[7].mxu1  ;;  %v6006_v26 = vmax.f32 %v5996_v38, 0.0 }
 0x70f   : > { %v6007_v51 = vmax.f32 %v5997_v62, 0.0  ;;  %v5836_v45 = vadd.f32 %v13275_v12, %v5691_v23  ;;  %v5692_v34 = vadd.f32 %v13240_v16, %v5547_v25 }
 0x711   : > { %v5981_v53 = vadd.f32 %v13285_v32, %v5836_v45  ;;  %v5837_v58 = vadd.f32 %v13278_v49, %v5692_v34  ;;  %v13325_v14 = vpack.c.bf16 %v6007_v51, %v6006_v26 }
 0x712   : > { %v5521_v11 = vpop.f32.mrb[8].mxu1 }
 0x713   : > { %v5998_v17 = vadd.f32 %v13313_v54, %v5981_v53  ;;  %v5982_v39 = vadd.f32 %v13287_v57, %v5837_v58  ;;  %v5548_v44 = vadd.f32 %v5521_v11, %v5403_v15  ;;  %v10247_v28 = vpop.f32.mrb[9].mxu1  ;;  %10635 = vmatpush3.bf16.msra.mxu1 %v13325_v14  ;;  %10650 = vmatpush3.bf16.msra.mxu0 %v13325_v14 }
 0x714   : > { %v5524_v12 = vpop.f32.mrb[10].mxu1  ;;  %10636 = vmatprep.subr.bf16.mxu1 %v11319_v19  ;;  %10651 = vmatprep.subr.bf16.mxu0 %v11319_v19 }
 0x715   : > { %v5999_v16 = vadd.f32 %v13313_v54, %v5982_v39  ;;  %v5549_v49 = vadd.f32 %v5524_v12, %v5404_v60  ;;  %v10248_v32 = vpop.f32.mrb[11].mxu1  ;;  %v5693_v37 = vadd.f32 %v13248_v50, %v5548_v44  ;;  %v6008_v0 = vmax.f32 %v5998_v17, 0.0 }
 0x717   : > { %v6009_v1 = vmax.f32 %v5999_v16, 0.0  ;;  %v5694_v57 = vadd.f32 %v13250_v59, %v5549_v49 }
 0x719   : > { %v13336_v15 = vpack.c.bf16 %v6009_v1, %v6008_v0  ;;  %v8712_v1 = vld [vmem:[%s14019_s6 + $0x30] sm:$0xff] }
 0x71a   : > { %v5529_v5 = vpop.f32.mrb[12].mxu1 }
 0x71b   : > { %v5550_v24 = vadd.f32 %v5529_v5, %v5405_v4  ;;  %v10251_v9 = vpop.f32.mrb[13].mxu1  ;;  %10638 = vmatpush3.bf16.msra.mxu1 %v13336_v15  ;;  %10653 = vmatpush3.bf16.msra.mxu0 %v13336_v15  ;;  %v8714_v5 = vld [vmem:[%s14019_s6 + $0x40] sm:$0xff] }
 0x71c   : > { %v5532_v8 = vpop.f32.mrb[14].mxu1  ;;  %10639 = vmatprep.subr.bf16.mxu1 %v11319_v19  ;;  %10654 = vmatprep.subr.bf16.mxu0 %v11319_v19  ;;  %v8715_v9 = vld [vmem:[%s14019_s6 + $0x48] sm:$0xff] }
 0x71d   : > { %v5551_v50 = vadd.f32 %v5532_v8, %v13301_v63  ;;  %v10252_v60 = vpop.f32.mrb[15].mxu1  ;;  %v5695_v46 = vadd.f32 %v13255_v48, %v5550_v24  ;;  %v6020_v24 = vld [vmem:[%s14019_s6 + $0x20] sm:$0xff]  ;;  %v8721_v8 = vld [vmem:[%s14019_s6 + $0x50] sm:$0xff] }
 0x71e   : > { %v8732_v60 = vld [vmem:[%s14019_s6 + $0x80] sm:$0xff] }
 0x71f   : > { %v5696_v59 = vadd.f32 %v13257_v30, %v5551_v50  ;;  %v8731_v50 = vld [vmem:[%s14019_s6 + $0x78] sm:$0xff] }
 0x722   : > { %v5537_v6 = vpop.f32.mrb[16].mxu1 }
 0x723   : > { %v5552_v4 = vadd.f32 %v5537_v6, %v13303_v27  ;;  %v10255_v10 = vpop.f32.mrb[17].mxu1  ;;  %v8724_v6 = vld [vmem:[%s14019_s6 + $0x68] sm:$0xff] }
 0x724   : > { %v5540_v55 = vpop.f32.mrb[18].mxu1  ;;  %v8725_v10 = vld [vmem:[%s14019_s6 + $0x70] sm:$0xff] }
 0x725   : > { %v5553_v40 = vadd.f32 %v5540_v55, %v13305_v36  ;;  %v10256_v13 = vpop.f32.mrb[19].mxu1  ;;  %v5697_v35 = vadd.f32 %v13262_v33, %v5552_v4  ;;  %v8734_v4 = vld [vmem:[%s14019_s6 + $0x90] sm:$0xff]  ;;  %v8735_v55 = vld [vmem:[%s14019_s6 + $0x98] sm:$0xff] }
 0x726   : > { %v11097_v13 = vld [vmem:[%s14020_s7 + $0x84] ss:$8 sps:$4 sm:$0xff]  }
 0x727   : > { %v5698_v42 = vadd.f32 %v13264_v31, %v5553_v40  ;;  %v11095_v40 = vld [vmem:[%s14020_s7 + $0x80] ss:$8 sps:$4 sm:$0xff]  }
 0x72a   : > { %v5811_v52 = vpop.f32.mrb[20].mxu1 }
 0x72b   : > { %v5838_v7 = vadd.f32 %v5811_v52, %v5693_v37  ;;  %v10303_v63 = vpop.f32.mrb[21].mxu1  ;;  %v11101_v52 = vld [vmem:[%s14020_s7 + $0xa0] ss:$8 sps:$4 sm:$0xff]  }
 0x72c   : > { %v5814_v38 = vpop.f32.mrb[22].mxu1  ;;  %v11106_v63 = vld [vmem:[%s14020_s7 + $0xb4] ss:$8 sps:$4 sm:$0xff]  }
 0x72d   : > { %v5983_v48 = vadd.f32 %v13289_v21, %v5838_v7  ;;  %v5839_v47 = vadd.f32 %v5814_v38, %v5694_v57  ;;  %v10304_v30 = vpop.f32.mrb[23].mxu1  ;;  %v8713_v57 = vld [vmem:[%s14019_s6 + $0x38] sm:$0xff]  ;;  %v11103_v7 = vld [vmem:[%s14020_s7 + $0xa4] ss:$8 sps:$4 sm:$0xff]  }
 0x72e   : > { %v11104_v38 = vld [vmem:[%s14020_s7 + $0xb0] ss:$8 sps:$4 sm:$0xff]   ;;  %v11112_v30 = vld [vmem:[%s14020_s7 + $0xd4] ss:$8 sps:$4 sm:$0xff]  }
 0x72f   : > { %v6000_v29 = vadd.f32 %v13313_v54, %v5983_v48  ;;  %v5984_v27 = vadd.f32 %v13291_v43, %v5839_v47  ;;  %v11109_v48 = vld [vmem:[%s14020_s7 + $0xc4] ss:$8 sps:$4 sm:$0xff]   ;;  %v11107_v47 = vld [vmem:[%s14020_s7 + $0xc0] ss:$8 sps:$4 sm:$0xff]  }
 0x731   : > { %v6001_v22 = vadd.f32 %v13313_v54, %v5984_v27  ;;  %v6010_v18 = vmax.f32 %v6000_v29, 0.0  ;;  %v11110_v29 = vld [vmem:[%s14020_s7 + $0xd0] ss:$8 sps:$4 sm:$0xff]   ;;  %v11115_v27 = vld [vmem:[%s14020_s7 + $0xe4] ss:$8 sps:$4 sm:$0xff]  }
 0x732   : > { %v5819_v36 = vpop.f32.mrb[24].mxu1 }
 0x733   : > { %v6011_v62 = vmax.f32 %v6001_v22, 0.0  ;;  %v5840_v33 = vadd.f32 %v5819_v36, %v5695_v46  ;;  %v10307_v23 = vpop.f32.mrb[25].mxu1  ;;  %v8723_v46 = vld [vmem:[%s14019_s6 + $0x60] sm:$0xff]  ;;  %v11118_v36 = vld [vmem:[%s14020_s7 + $0xf4] ss:$8 sps:$4 sm:$0xff]  }
 0x734   : > { %v5822_v31 = vpop.f32.mrb[26].mxu1  ;;  %v11113_v22 = vld [vmem:[%s14020_s7 + $0xe0] ss:$8 sps:$4 sm:$0xff]  }
 0x735   : > { %v10640_v25 = vpack.c.bf16 %v6011_v62, %v6010_v18  ;;  %v5985_v2 = vadd.f32 %v13293_v3, %v5840_v33  ;;  %v5841_v26 = vadd.f32 %v5822_v31, %v5696_v59  ;;  %v10308_v51 = vpop.f32.mrb[27].mxu1  ;;  %v8733_v59 = vld [vmem:[%s14019_s6 + $0x88] sm:$0xff]  ;;  %v11116_v18 = vld [vmem:[%s14020_s7 + $0xf0] ss:$8 sps:$4 sm:$0xff]   ;;  %v11322_v33 = vmov 0  }
 0x736   : > { %v11121_v62 = vld [vmem:[%s14020_s7 + $0x4] ss:$8 sps:$4 sm:$0xff]  }
 0x737   : > { %v6002_v21 = vadd.f32 %v13313_v54, %v5985_v2  ;;  %v5986_v45 = vadd.f32 %v13295_v56, %v5841_v26  ;;  %10641 = vmatpush3.bf16.msra.mxu1 %v10640_v25  ;;  %10656 = vmatpush3.bf16.msra.mxu0 %v10640_v25 }
 0x738   : > { %10642 = vmatprep.subr.bf16.mxu1 %v11319_v19  ;;  %10657 = vmatprep.subr.bf16.mxu0 %v11319_v19 }
 0x739   : > { %v6003_v43 = vadd.f32 %v13313_v54, %v5986_v45  ;;  %v6012_v53 = vmax.f32 %v6002_v21, 0.0 }
 0x73a   : > { %v5827_v34 = vpop.f32.mrb[28].mxu1 }
 0x73b   : > { %v6013_v58 = vmax.f32 %v6003_v43, 0.0  ;;  %v5842_v11 = vadd.f32 %v5827_v34, %v5697_v35  ;;  %v10311_v17 = vpop.f32.mrb[29].mxu1  ;;  %v11098_v35 = vld [vmem:[%s14020_s7 + $0x90] ss:$8 sps:$4 sm:$0xff]  }
 0x73c   : > { %v5830_v3 = vpop.f32.mrb[30].mxu1 }
 0x73d   : > { %v10643_v39 = vpack.c.bf16 %v6013_v58, %v6012_v53  ;;  %v5987_v44 = vadd.f32 %v13297_v41, %v5842_v11  ;;  %v5843_v28 = vadd.f32 %v5830_v3, %v5698_v42  ;;  %v10312_v12 = vpop.f32.mrb[31].mxu1  ;;  %v6016_v41 = vld [vmem:[%s14019_s6] sm:$0xff]  ;;  %v11100_v42 = vld [vmem:[%s14020_s7 + $0x94] ss:$8 sps:$4 sm:$0xff]  }
 0x73f   : > { %v6004_v56 = vadd.f32 %v13313_v54, %v5987_v44  ;;  %v5988_v16 = vadd.f32 %v13299_v61, %v5843_v28  ;;  %10644 = vmatpush3.bf16.msra.mxu1 %v10643_v39  ;;  %10659 = vmatpush3.bf16.msra.mxu0 %v10643_v39  ;;  %v8711_v61 = vld [vmem:[%s14019_s6 + $0x28] sm:$0xff] }
 0x740   : > { %10645 = vmatprep.subr.bf16.mxu1 %v11319_v19  ;;  %10660 = vmatprep.subr.bf16.mxu0 %v11319_v19 }
 0x741   : > { %v6005_v49 = vadd.f32 %v13313_v54, %v5988_v16  ;;  %v6014_v32 = vmax.f32 %v6004_v56, 0.0  ;;  %v6017_v54 = vld [vmem:[%s14019_s6 + $0x8] sm:$0xff] }
 0x743   : > { %v6015_v37 = vmax.f32 %v6005_v49, 0.0 }
 0x745   : > { %v10646_v0 = vpack.c.bf16 %v6015_v37, %v6014_v32 }
 0x747   : > { %10647 = vmatpush3.bf16.msra.mxu1 %v10646_v0  ;;  %10662 = vmatpush3.bf16.msra.mxu0 %v10646_v0 }
 0x748   : > { %10663 = vmatprep.subr.bf16.mxu1 %v11319_v19  ;;  %10678 = vmatprep.subr.bf16.mxu0 %v11319_v19 }
 0x74a   : > { %10362 = vmatmul.mubr.msk.f32.vlgmr.msra.gmra.mrb[32].mxu1 %vm6021_vm5, %v6016_v41  ;;  %10397 = vmatmul.mubr.msk.f32.vlgmr.msra.gmra.mrb[136].mxu0 %vm6021_vm5, %v8711_v61 }
 0x74b   : > { %10665 = vmatpush3.bf16.msra.mxu1 %v13325_v14  ;;  %10680 = vmatpush3.bf16.msra.mxu0 %v13325_v14  ;;  %v6018_v14 = vld [vmem:[%s14019_s6 + $0x10] sm:$0xff] }
 0x74c   : > { %10364 = vmatprep.mubr.msk.f32.mxu1 %vm11320_vm2, %v11321_v20  ;;  %10399 = vmatprep.mubr.msk.f32.mxu0 %vm11320_vm2, %v11321_v20 }
 0x74d   : > { %10666 = vmatprep.subr.bf16.mxu1 %v11319_v19  ;;  %10681 = vmatprep.subr.bf16.mxu0 %v11319_v19 }
 0x74e   : > { %10365 = vmatmul.mubr.msk.f32.gmra.mrb[34].mxu1 %vm6021_vm5, %v6017_v54  ;;  %10400 = vmatmul.mubr.msk.f32.gmra.mrb[138].mxu0 %vm6021_vm5, %v8712_v1 }
 0x74f   : > { %10668 = vmatpush3.bf16.msra.mxu1 %v13336_v15  ;;  %10683 = vmatpush3.bf16.msra.mxu0 %v13336_v15  ;;  %v6019_v15 = vld [vmem:[%s14019_s6 + $0x18] sm:$0xff] }
 0x750   : > { %10367 = vmatprep.mubr.msk.f32.mxu1 %vm11320_vm2, %v11321_v20  ;;  %10402 = vmatprep.mubr.msk.f32.mxu0 %vm11320_vm2, %v11321_v20 }
 0x751   : > { %10669 = vmatprep.subr.bf16.mxu1 %v11319_v19  ;;  %10684 = vmatprep.subr.bf16.mxu0 %v11319_v19 }
 0x752   : > { %10368 = vmatmul.mubr.msk.f32.gmra.mrb[36].mxu1 %vm6021_vm5, %v6018_v14  ;;  %10403 = vmatmul.mubr.msk.f32.gmra.mrb[140].mxu0 %vm6021_vm5, %v8713_v57 }
 0x753   : > { %10671 = vmatpush3.bf16.msra.mxu1 %v10640_v25  ;;  %10686 = vmatpush3.bf16.msra.mxu0 %v10640_v25 }
 0x754   : > { %10370 = vmatprep.mubr.msk.f32.mxu1 %vm11320_vm2, %v11321_v20  ;;  %10405 = vmatprep.mubr.msk.f32.mxu0 %vm11320_vm2, %v11321_v20 }
 0x755   : > { %10672 = vmatprep.subr.bf16.mxu1 %v11319_v19  ;;  %10687 = vmatprep.subr.bf16.mxu0 %v11319_v19 }
 0x756   : > { %10371 = vmatmul.mubr.msk.f32.gmra.mrb[38].mxu1 %vm6021_vm5, %v6019_v15  ;;  %10406 = vmatmul.mubr.msk.f32.gmra.mrb[142].mxu0 %vm6021_vm5, %v8714_v5 }
 0x757   : > { %10674 = vmatpush3.bf16.msra.mxu1 %v10643_v39  ;;  %10689 = vmatpush3.bf16.msra.mxu0 %v10643_v39 }
 0x758   : > { %10373 = vmatprep.mubr.msk.f32.mxu1 %vm11320_vm2, %v11321_v20  ;;  %10408 = vmatprep.mubr.msk.f32.mxu0 %vm11320_vm2, %v11321_v20 }
 0x759   : > { %10675 = vmatprep.subr.bf16.mxu1 %v11319_v19  ;;  %10690 = vmatprep.subr.bf16.mxu0 %v11319_v19  ;;  %v8722_v19 = vld [vmem:[%s14019_s6 + $0x58] sm:$0xff] }
 0x75a   : > { %10374 = vmatmul.mubr.msk.f32.gmra.mrb[40].mxu1 %vm6021_vm5, %v6020_v24  ;;  %10409 = vmatmul.mubr.msk.f32.gmra.mrb[144].mxu0 %vm6021_vm5, %v8715_v9 }
 0x75b   : > { %10677 = vmatpush3.bf16.msra.mxu1 %v10646_v0  ;;  %10692 = vmatpush3.bf16.msra.mxu0 %v10646_v0 }
 0x75c   : > { %10431 = vmatprep.mubr.msk.f32.mxu1 %vm11320_vm2, %v11321_v20  ;;  %10466 = vmatprep.mubr.msk.f32.mxu0 %vm11320_vm2, %v11321_v20 }
 0x75d   : > { %6602 = vmatprep.subr.bf16.mxu1 %v11097_v13 }
 0x75e   : > { %10432 = vmatmul.mubr.msk.f32.vlgmr.msra.gmra.mrb[42].mxu1 %vm6021_vm5, %v8721_v8  ;;  %10467 = vmatmul.mubr.msk.f32.vlgmr.msra.gmra.mrb[146].mxu0 %vm6021_vm5, %v8731_v50 }
 0x75f   : > { %10434 = vmatprep.mubr.msk.f32.mxu1 %vm11320_vm2, %v11321_v20  ;;  %10469 = vmatprep.mubr.msk.f32.mxu0 %vm11320_vm2, %v11321_v20 }
 0x760   : > { %6603 = vmatpush1.bf16.msra.mxu1 %v11095_v40 }
 0x761   : > { %6604 = vmatprep.subr.bf16.mxu1 %v11100_v42 }
 0x762   : > { %10435 = vmatmul.mubr.msk.f32.gmra.mrb[44].mxu1 %vm6021_vm5, %v8722_v19  ;;  %10470 = vmatmul.mubr.msk.f32.gmra.mrb[148].mxu0 %vm6021_vm5, %v8732_v60 }
 0x763   : > { %10437 = vmatprep.mubr.msk.f32.mxu1 %vm11320_vm2, %v11321_v20  ;;  %10472 = vmatprep.mubr.msk.f32.mxu0 %vm11320_vm2, %v11321_v20 }
 0x764   : > { %6605 = vmatpush1.bf16.msra.mxu1 %v11098_v35 }
 0x765   : > { %6606 = vmatprep.subr.bf16.mxu1 %v11103_v7 }
 0x766   : > { %10438 = vmatmul.mubr.msk.f32.gmra.mrb[46].mxu1 %vm6021_vm5, %v8723_v46  ;;  %10473 = vmatmul.mubr.msk.f32.gmra.mrb[150].mxu0 %vm6021_vm5, %v8733_v59 }
 0x767   : > { %10440 = vmatprep.mubr.msk.f32.mxu1 %vm11320_vm2, %v11321_v20  ;;  %10475 = vmatprep.mubr.msk.f32.mxu0 %vm11320_vm2, %v11321_v20 }
 0x768   : > { %6607 = vmatpush1.bf16.msra.mxu1 %v11101_v52 }
 0x769   : > { %6608 = vmatprep.subr.bf16.mxu1 %v11106_v63 }
 0x76a   : > { %10441 = vmatmul.mubr.msk.f32.gmra.mrb[48].mxu1 %vm6021_vm5, %v8724_v6  ;;  %10476 = vmatmul.mubr.msk.f32.gmra.mrb[152].mxu0 %vm6021_vm5, %v8734_v4 }
 0x76b   : > { %10443 = vmatprep.mubr.msk.f32.mxu1 %vm11320_vm2, %v11321_v20  ;;  %10478 = vmatprep.mubr.msk.f32.mxu0 %vm11320_vm2, %v11321_v20 }
 0x76c   : > { %6609 = vmatpush1.bf16.msra.mxu1 %v11104_v38 }
 0x76d   : > { %6610 = vmatprep.subr.bf16.mxu1 %v11109_v48 }
 0x76e   : > { %10444 = vmatmul.mubr.msk.f32.gmra.mrb[50].mxu1 %vm6021_vm5, %v8725_v10  ;;  %10479 = vmatmul.mubr.msk.f32.gmra.mrb[154].mxu0 %vm6021_vm5, %v8735_v55 }
 0x76f   : > { %8059 = vmatprep.mubr.f32.mxu0 %v11321_v20  ;;  %6634 = vmatprep.mubr.bf16.mxu1 %v11322_v33 }
 0x770   : > { %6611 = vmatpush1.bf16.msra.mxu1 %v11107_v47 }
 0x771   : > { %6612 = vmatprep.subr.bf16.mxu1 %v11112_v30 }
 0x774   : > { %6613 = vmatpush1.bf16.msra.mxu1 %v11110_v29 }
 0x775   : > { %6614 = vmatprep.subr.bf16.mxu1 %v11115_v27 }
 0x778   : > { %6615 = vmatpush1.bf16.msra.mxu1 %v11113_v22 }
 0x779   : > { %6616 = vmatprep.subr.bf16.mxu1 %v11118_v36  ;;  %v11119_v36 = vld [vmem:[%s14020_s7] ss:$8 sps:$4 sm:$0xff]  }
 0x77c   : > { %6617 = vmatpush1.bf16.msra.mxu1 %v11116_v18 }
 0x77d   : > { %6733 = vmatprep.subr.bf16.mxu1 %v11121_v62  ;;  %v11124_v62 = vld [vmem:[%s14020_s7 + $0x14] ss:$8 sps:$4 sm:$0xff]  }
 0x81d   : > { %v6103_v23 = vpop.f32.mrb[32].mxu1  ;;  %v6214_v31 = vpop.f32.mrb[136].mxu0 }
 0x81e   : > { %v6238_v25 = vmax.f32 %v6103_v23, %v6214_v31  ;;  %v10363_v2 = vpop.f32.mrb[33].mxu1  ;;  %v10398_v26 = vpop.f32.mrb[137].mxu0 }
 0x81f   : > { %v11127_v26 = vld [vmem:[%s14020_s7 + $0x24] ss:$8 sps:$4 sm:$0xff]  }
 0x821   : > { %v6108_v51 = vpop.f32.mrb[34].mxu1  ;;  %v6219_v21 = vpop.f32.mrb[138].mxu0 }
 0x822   : > { %v6239_v45 = vmax.f32 %v6108_v51, %v6219_v21  ;;  %v10366_v43 = vpop.f32.mrb[35].mxu1  ;;  %v10401_v34 = vpop.f32.mrb[139].mxu0  ;;  %v11125_v21 = vld [vmem:[%s14020_s7 + $0x20] ss:$8 sps:$4 sm:$0xff]  }
 0x823   : > { %v11130_v43 = vld [vmem:[%s14020_s7 + $0x34] ss:$8 sps:$4 sm:$0xff]   ;;  %v11128_v34 = vld [vmem:[%s14020_s7 + $0x30] ss:$8 sps:$4 sm:$0xff]  }
 0x825   : > { %v6113_v53 = vpop.f32.mrb[36].mxu1  ;;  %v6224_v58 = vpop.f32.mrb[140].mxu0 }
 0x826   : > { %v6240_v11 = vmax.f32 %v6113_v53, %v6224_v58  ;;  %v10369_v17 = vpop.f32.mrb[37].mxu1  ;;  %v10404_v3 = vpop.f32.mrb[141].mxu0  ;;  %v11133_v53 = vld [vmem:[%s14020_s7 + $0x44] ss:$8 sps:$4 sm:$0xff]   ;;  %v11131_v58 = vld [vmem:[%s14020_s7 + $0x40] ss:$8 sps:$4 sm:$0xff]  }
 0x827   : > { %v11134_v17 = vld [vmem:[%s14020_s7 + $0x50] ss:$8 sps:$4 sm:$0xff]   ;;  %v11139_v3 = vld [vmem:[%s14020_s7 + $0x64] ss:$8 sps:$4 sm:$0xff]  }
 0x829   : > { %v6118_v39 = vpop.f32.mrb[38].mxu1  ;;  %v6229_v44 = vpop.f32.mrb[142].mxu0 }
 0x82a   : > { %v6241_v28 = vmax.f32 %v6118_v39, %v6229_v44  ;;  %v10372_v12 = vpop.f32.mrb[39].mxu1  ;;  %v10407_v56 = vpop.f32.mrb[143].mxu0  ;;  %v11137_v39 = vld [vmem:[%s14020_s7 + $0x60] ss:$8 sps:$4 sm:$0xff]   ;;  %v11142_v44 = vld [vmem:[%s14020_s7 + $0x74] ss:$8 sps:$4 sm:$0xff]  }
 0x82b   : > { %v11145_v12 = vld [vmem:[%s14020_s7 + $0x104] ss:$8 sps:$4 sm:$0xff]   ;;  %v11143_v56 = vld [vmem:[%s14020_s7 + $0x100] ss:$8 sps:$4 sm:$0xff]  }
 0x82d   : > { %v6123_v16 = vpop.f32.mrb[40].mxu1  ;;  %v6234_v49 = vpop.f32.mrb[144].mxu0 }
 0x82e   : > { %v6242_v32 = vmax.f32 %v6123_v16, %v6234_v49  ;;  %v10375_v37 = vpop.f32.mrb[41].mxu1  ;;  %v10410_v0 = vpop.f32.mrb[145].mxu0  ;;  %v11148_v16 = vld [vmem:[%s14020_s7 + $0x114] ss:$8 sps:$4 sm:$0xff]   ;;  %v11146_v49 = vld [vmem:[%s14020_s7 + $0x110] ss:$8 sps:$4 sm:$0xff]  }
 0x82f   : > { %v11149_v37 = vld [vmem:[%s14020_s7 + $0x120] ss:$8 sps:$4 sm:$0xff]  }
 0x831   : > { %v6330_v41 = vpop.f32.mrb[42].mxu1  ;;  %v6446_v61 = vpop.f32.mrb[146].mxu0 }
 0x832   : > { %v6354_v54 = vmax.f32 %v6238_v25, %v6330_v41  ;;  %v10433_v1 = vpop.f32.mrb[43].mxu1  ;;  %v10468_v14 = vpop.f32.mrb[147].mxu0  ;;  %v11122_v25 = vld [vmem:[%s14020_s7 + $0x10] ss:$8 sps:$4 sm:$0xff]   ;;  %v11154_v41 = vld [vmem:[%s14020_s7 + $0x134] ss:$8 sps:$4 sm:$0xff]  }
 0x833   : > { %v11155_v1 = vld [vmem:[%s14020_s7 + $0x140] ss:$8 sps:$4 sm:$0xff]   ;;  %v11160_v14 = vld [vmem:[%s14020_s7 + $0x154] ss:$8 sps:$4 sm:$0xff]  }
 0x834   : > { %v13548_v57 = vmax.f32 %v6354_v54, %v6446_v61  ;;  %v11152_v61 = vld [vmem:[%s14020_s7 + $0x130] ss:$8 sps:$4 sm:$0xff]   ;;  %v11157_v54 = vld [vmem:[%s14020_s7 + $0x144] ss:$8 sps:$4 sm:$0xff]  }
 0x835   : > { %v6335_v15 = vpop.f32.mrb[44].mxu1  ;;  %v6451_v5 = vpop.f32.mrb[148].mxu0 }
 0x836   : > { %6475 = vst [vmem:[#allocation3] sm:$0xff] %v13548_v57  ;;  %v6355_v24 = vmax.f32 %v6239_v45, %v6335_v15  ;;  %v10436_v9 = vpop.f32.mrb[45].mxu1  ;;  %v10471_v8 = vpop.f32.mrb[149].mxu0  ;;  %v11163_v15 = vld [vmem:[%s14020_s7 + $0x164] ss:$8 sps:$4 sm:$0xff]  }
 0x837   : > { %v11164_v9 = vld [vmem:[%s14020_s7 + $0x170] ss:$8 sps:$4 sm:$0xff]   ;;  %v11169_v8 = vld [vmem:[%s14020_s7 + $0x184] ss:$8 sps:$4 sm:$0xff]  }
 0x838   : > { %v13551_v50 = vmax.f32 %v6355_v24, %v6451_v5  ;;  %v11161_v5 = vld [vmem:[%s14020_s7 + $0x160] ss:$8 sps:$4 sm:$0xff]   ;;  %v11166_v24 = vld [vmem:[%s14020_s7 + $0x174] ss:$8 sps:$4 sm:$0xff]  }
 0x839   : > { %v6340_v19 = vpop.f32.mrb[46].mxu1  ;;  %v6456_v60 = vpop.f32.mrb[150].mxu0 }
 0x83a   : > { %6476 = vst [vmem:[#allocation3 + $0x8] sm:$0xff] %v13551_v50  ;;  %v6483_v46 = vpack.c.bf16 %v13551_v50, %v13548_v57  ;;  %v6356_v59 = vmax.f32 %v6240_v11, %v6340_v19  ;;  %v10439_v6 = vpop.f32.mrb[47].mxu1  ;;  %v10474_v4 = vpop.f32.mrb[151].mxu0  ;;  %v11136_v11 = vld [vmem:[%s14020_s7 + $0x54] ss:$8 sps:$4 sm:$0xff]  }
 0x83b   : > { %v11158_v57 = vld [vmem:[%s14020_s7 + $0x150] ss:$8 sps:$4 sm:$0xff]   ;;  %v11172_v6 = vld [vmem:[%s14020_s7 + $0x194] ss:$8 sps:$4 sm:$0xff]  }
 0x83c   : > { %v13556_v10 = vmax.f32 %v6356_v59, %v6456_v60  ;;  %v11170_v4 = vld [vmem:[%s14020_s7 + $0x190] ss:$8 sps:$4 sm:$0xff]  }
 0x83d   : > { %v6345_v55 = vpop.f32.mrb[48].mxu1  ;;  %v6461_v40 = vpop.f32.mrb[152].mxu0 }
 0x83e   : > { %6477 = vst [vmem:[#allocation3 + $0x10] sm:$0xff] %v13556_v10  ;;  %v7261_v13 = vpack.c.bf16 %v13556_v10, %v13551_v50  ;;  %v6357_v35 = vmax.f32 %v6241_v28, %v6345_v55  ;;  %v10442_v42 = vpop.f32.mrb[49].mxu1  ;;  %v10477_v52 = vpop.f32.mrb[153].mxu0  ;;  %v11140_v28 = vld [vmem:[%s14020_s7 + $0x70] ss:$8 sps:$4 sm:$0xff]   ;;  %v6484_v0 = vpack.c.bf16 %v13556_v10, %v13556_v10 }
 0x83f   : > { %v11175_v55 = vld [vmem:[%s14020_s7 + $0x1a4] ss:$8 sps:$4 sm:$0xff]   ;;  %v11178_v52 = vld [vmem:[%s14020_s7 + $0x1b4] ss:$8 sps:$4 sm:$0xff]  }
 0x840   : > { %v13561_v7 = vmax.f32 %v6357_v35, %v6461_v40  ;;  %v11173_v35 = vld [vmem:[%s14020_s7 + $0x1a0] ss:$8 sps:$4 sm:$0xff]   ;;  %v11250_v10 = vld [vmem:[%s14020_s7 + $0x334] ss:$8 sps:$4 sm:$0xff]  }
 0x841   : > { %v6350_v63 = vpop.f32.mrb[50].mxu1  ;;  %v6466_v38 = vpop.f32.mrb[154].mxu0  ;;  %v6501_v27 = vld [vmem:[#allocation3 + $0x1] sm:$0xff] }
 0x842   : > { %6478 = vst [vmem:[#allocation3 + $0x18] sm:$0xff] %v13561_v7  ;;  %v6358_v48 = vmax.f32 %v6242_v32, %v6350_v63  ;;  %v10445_v47 = vpop.f32.mrb[51].mxu1  ;;  %v10480_v30 = vpop.f32.mrb[155].mxu0  ;;  %v11151_v32 = vld [vmem:[%s14020_s7 + $0x124] ss:$8 sps:$4 sm:$0xff]   ;;  %v7262_v50 = vpack.c.bf16 %v13561_v7, %v13561_v7 }
 0x843   : > { %v6784_v60 = vld [vmem:[#allocation3 + $0x2] sm:$0xff]  ;;  %v11184_v47 = vld [vmem:[%s14020_s7 + $0x1d4] ss:$8 sps:$4 sm:$0xff]  }
 0x844   : > { %v6474_v29 = vmax.f32 %v6358_v48, %v6466_v38  ;;  %v11176_v63 = vld [vmem:[%s14020_s7 + $0x1b0] ss:$8 sps:$4 sm:$0xff]   ;;  %v11181_v38 = vld [vmem:[%s14020_s7 + $0x1c4] ss:$8 sps:$4 sm:$0xff]   ;;  %v11179_v48 = vld [vmem:[%s14020_s7 + $0x1c0] ss:$8 sps:$4 sm:$0xff]  }
 0x845   : > { %v6502_v22 = vld [vmem:[#allocation3 + $0x9] sm:$0xff]  ;;  %v11251_v7 = vld [vmem:[%s14020_s7 + $0x340] ss:$8 sps:$4 sm:$0xff]  }
 0x846   : > { %v6504_v18 = vpack.c.bf16 %v6502_v22, %v6501_v27  ;;  %6479 = vst [vmem:[#allocation3 + $0x20] sm:$0xff] %v6474_v29  ;;  %v13570_v23 = vld [vmem:[#allocation3 + $0xe] sm:$0xff]  ;;  %v11187_v29 = vld [vmem:[%s14020_s7 + $0x1e4] ss:$8 sps:$4 sm:$0xff]   ;;  %v11185_v27 = vld [vmem:[%s14020_s7 + $0x1e0] ss:$8 sps:$4 sm:$0xff]  }
 0x847   : > { %v6785_v19 = vld [vmem:[#allocation3 + $0xa] sm:$0xff] }
 0x848   : > { %6635 = vmatmul.mubr.bf16.vlgmr.msra.gmra.mrb[52].mxu1 %v6504_v18  ;;  %v6787_v59 = vpack.c.bf16 %v6785_v19, %v6784_v60  ;;  %v11182_v30 = vld [vmem:[%s14020_s7 + $0x1d0] ss:$8 sps:$4 sm:$0xff]   ;;  %v11190_v22 = vld [vmem:[%s14020_s7 + $0x1f4] ss:$8 sps:$4 sm:$0xff]   ;;  %v11193_v18 = vld [vmem:[%s14020_s7 + $0x204] ss:$8 sps:$4 sm:$0xff]  }
 0x849   : > { %v13572_v31 = vld [vmem:[#allocation3 + $0x16] sm:$0xff]  ;;  %6734 = vmatpush1.bf16.msra.mxu1 %v11119_v36  ;;  %6644 = vmatprep.mubr.bf16.mxu1 %v11322_v33  ;;  %v11188_v36 = vld [vmem:[%s14020_s7 + $0x1f0] ss:$8 sps:$4 sm:$0xff]  }
 0x84a   : > { %v7735_v2 = vpack.c.bf16 %v13572_v31, %v13570_v23  ;;  %6735 = vmatprep.subr.bf16.mxu1 %v11124_v62  ;;  %v6503_v51 = vld [vmem:[#allocation3 + $0x11] sm:$0xff]  ;;  %v6942_v62 = vld [vmem:[#allocation3 + $0x6] sm:$0xff] }
 0x84b   : > { %v6505_v45 = vpack.c.bf16 %v6503_v51, %v6503_v51  ;;  %v6786_v40 = vld [vmem:[#allocation3 + $0x12] sm:$0xff]  ;;  %v11235_v60 = vld [vmem:[%s14020_s7 + $0x2e4] ss:$8 sps:$4 sm:$0xff]  }
 0x84c   : > { %v6788_v42 = vpack.c.bf16 %v6786_v40, %v6786_v40  ;;  %v11196_v51 = vld [vmem:[%s14020_s7 + $0x214] ss:$8 sps:$4 sm:$0xff]   ;;  %v11230_v19 = vld [vmem:[%s14020_s7 + $0x2d0] ss:$8 sps:$4 sm:$0xff]  }
 0x84d   : > { %6736 = vmatpush1.bf16.msra.mxu1 %v11122_v25  ;;  %v11191_v25 = vld [vmem:[%s14020_s7 + $0x200] ss:$8 sps:$4 sm:$0xff]   ;;  %v11244_v40 = vld [vmem:[%s14020_s7 + $0x314] ss:$8 sps:$4 sm:$0xff]  }
 0x84e   : > { %6737 = vmatprep.subr.bf16.mxu1 %v11127_v26  ;;  %v6945_v26 = vpack.c.bf16 %v13570_v23, %v6942_v62  ;;  %v11263_v62 = vld [vmem:[%s14020_s7 + $0x380] ss:$8 sps:$4 sm:$0xff]  }
 0x850   : > { %6645 = vmatmul.mubr.bf16.gmra.mrb[56].mxu1 %v6505_v45  ;;  %v11199_v45 = vld [vmem:[%s14020_s7 + $0x224] ss:$8 sps:$4 sm:$0xff]  }
 0x851   : > { %6738 = vmatpush1.bf16.msra.mxu1 %v11125_v21  ;;  %6765 = vmatprep.mubr.bf16.mxu1 %v11322_v33  ;;  %v11194_v21 = vld [vmem:[%s14020_s7 + $0x210] ss:$8 sps:$4 sm:$0xff]  }
 0x852   : > { %6739 = vmatprep.subr.bf16.mxu1 %v11130_v43  ;;  %v11197_v43 = vld [vmem:[%s14020_s7 + $0x220] ss:$8 sps:$4 sm:$0xff]  }
 0x855   : > { %6740 = vmatpush1.bf16.msra.mxu1 %v11128_v34  ;;  %v6946_v34 = vpack.c.bf16 %v13572_v31, %v13572_v31 }
 0x856   : > { %6741 = vmatprep.subr.bf16.mxu1 %v11133_v53  ;;  %v11202_v53 = vld [vmem:[%s14020_s7 + $0x234] ss:$8 sps:$4 sm:$0xff]  }
 0x859   : > { %6742 = vmatpush1.bf16.msra.mxu1 %v11131_v58  ;;  %v11200_v58 = vld [vmem:[%s14020_s7 + $0x230] ss:$8 sps:$4 sm:$0xff]  }
 0x85a   : > { %6743 = vmatprep.subr.bf16.mxu1 %v11136_v11  ;;  %v11205_v11 = vld [vmem:[%s14020_s7 + $0x244] ss:$8 sps:$4 sm:$0xff]  }
 0x85d   : > { %6744 = vmatpush1.bf16.msra.mxu1 %v11134_v17  ;;  %v11203_v17 = vld [vmem:[%s14020_s7 + $0x240] ss:$8 sps:$4 sm:$0xff]  }
 0x85e   : > { %6745 = vmatprep.subr.bf16.mxu1 %v11139_v3  ;;  %v11208_v3 = vld [vmem:[%s14020_s7 + $0x254] ss:$8 sps:$4 sm:$0xff]  }
 0x861   : > { %6746 = vmatpush1.bf16.msra.mxu1 %v11137_v39  ;;  %v11206_v39 = vld [vmem:[%s14020_s7 + $0x250] ss:$8 sps:$4 sm:$0xff]  }
 0x862   : > { %6747 = vmatprep.subr.bf16.mxu1 %v11142_v44  ;;  %v11211_v44 = vld [vmem:[%s14020_s7 + $0x264] ss:$8 sps:$4 sm:$0xff]  }
 0x865   : > { %6748 = vmatpush1.bf16.msra.mxu1 %v11140_v28  ;;  %v11209_v28 = vld [vmem:[%s14020_s7 + $0x260] ss:$8 sps:$4 sm:$0xff]  }
 0x866   : > { %6885 = vmatprep.subr.bf16.mxu1 %v11145_v12  ;;  %v11214_v12 = vld [vmem:[%s14020_s7 + $0x274] ss:$8 sps:$4 sm:$0xff]  }
 0x868   : > { %6766 = vmatmul.mubr.bf16.vlgmr.msra.gmra.mrb[52].mxu1 %v6483_v46  ;;  %v11167_v46 = vld [vmem:[%s14020_s7 + $0x180] ss:$8 sps:$4 sm:$0xff]  }
 0x869   : > { %6886 = vmatpush1.bf16.msra.mxu1 %v11143_v56  ;;  %6775 = vmatprep.mubr.bf16.mxu1 %v11322_v33  ;;  %v11212_v56 = vld [vmem:[%s14020_s7 + $0x270] ss:$8 sps:$4 sm:$0xff]  }
 0x86a   : > { %6887 = vmatprep.subr.bf16.mxu1 %v11148_v16  ;;  %v11217_v16 = vld [vmem:[%s14020_s7 + $0x284] ss:$8 sps:$4 sm:$0xff]  }
 0x86d   : > { %6888 = vmatpush1.bf16.msra.mxu1 %v11146_v49  ;;  %v7101_v49 = vld [vmem:[#allocation3 + $0xf] sm:$0xff] }
 0x86e   : > { %6889 = vmatprep.subr.bf16.mxu1 %v11151_v32  ;;  %v7100_v32 = vld [vmem:[#allocation3 + $0x7] sm:$0xff] }
 0x870   : > { %6776 = vmatmul.mubr.bf16.gmra.mrb[60].mxu1 %v6484_v0  ;;  %v7103_v0 = vpack.c.bf16 %v7101_v49, %v7100_v32  ;;  %v7575_v49 = vld [vmem:[#allocation3 + $0x15] sm:$0xff] }
 0x871   : > { %6890 = vmatpush1.bf16.msra.mxu1 %v11149_v37  ;;  %6917 = vmatprep.mubr.bf16.mxu1 %v11322_v33  ;;  %v11215_v37 = vld [vmem:[%s14020_s7 + $0x280] ss:$8 sps:$4 sm:$0xff]  }
 0x872   : > { %6891 = vmatprep.subr.bf16.mxu1 %v11154_v41  ;;  %v11220_v41 = vld [vmem:[%s14020_s7 + $0x294] ss:$8 sps:$4 sm:$0xff]  }
 0x875   : > { %6892 = vmatpush1.bf16.msra.mxu1 %v11152_v61  ;;  %v11218_v61 = vld [vmem:[%s14020_s7 + $0x290] ss:$8 sps:$4 sm:$0xff]  }
 0x876   : > { %6893 = vmatprep.subr.bf16.mxu1 %v11157_v54  ;;  %v11223_v54 = vld [vmem:[%s14020_s7 + $0x2a4] ss:$8 sps:$4 sm:$0xff]  }
 0x879   : > { %6894 = vmatpush1.bf16.msra.mxu1 %v11155_v1  ;;  %v7102_v1 = vld [vmem:[#allocation3 + $0x17] sm:$0xff] }
 0x87a   : > { %6895 = vmatprep.subr.bf16.mxu1 %v11160_v14  ;;  %v11221_v14 = vld [vmem:[%s14020_s7 + $0x2a0] ss:$8 sps:$4 sm:$0xff]  }
 0x87d   : > { %6896 = vmatpush1.bf16.msra.mxu1 %v11158_v57  ;;  %v7104_v57 = vpack.c.bf16 %v7102_v1, %v7102_v1 }
 0x87e   : > { %6897 = vmatprep.subr.bf16.mxu1 %v11163_v15  ;;  %v11226_v15 = vld [vmem:[%s14020_s7 + $0x2b4] ss:$8 sps:$4 sm:$0xff]  }
 0x881   : > { %6898 = vmatpush1.bf16.msra.mxu1 %v11161_v5  ;;  %v11224_v5 = vld [vmem:[%s14020_s7 + $0x2b0] ss:$8 sps:$4 sm:$0xff]  }
 0x882   : > { %6899 = vmatprep.subr.bf16.mxu1 %v11166_v24  ;;  %v11229_v24 = vld [vmem:[%s14020_s7 + $0x2c4] ss:$8 sps:$4 sm:$0xff]  }
 0x885   : > { %6900 = vmatpush1.bf16.msra.mxu1 %v11164_v9  ;;  %v11227_v9 = vld [vmem:[%s14020_s7 + $0x2c0] ss:$8 sps:$4 sm:$0xff]  }
 0x886   : > { %7043 = vmatprep.subr.bf16.mxu1 %v11169_v8  ;;  %v11232_v8 = vld [vmem:[%s14020_s7 + $0x2d4] ss:$8 sps:$4 sm:$0xff]  }
 0x888   : > { %6918 = vmatmul.mubr.bf16.vlgmr.msra.gmra.mrb[52].mxu1 %v6787_v59  ;;  %v11238_v59 = vld [vmem:[%s14020_s7 + $0x2f4] ss:$8 sps:$4 sm:$0xff]  }
 0x889   : > { %7044 = vmatpush1.bf16.msra.mxu1 %v11167_v46  ;;  %6927 = vmatprep.mubr.bf16.mxu1 %v11322_v33  ;;  %v11233_v46 = vld [vmem:[%s14020_s7 + $0x2e0] ss:$8 sps:$4 sm:$0xff]  }
 0x88a   : > { %7045 = vmatprep.subr.bf16.mxu1 %v11172_v6  ;;  %v11236_v6 = vld [vmem:[%s14020_s7 + $0x2f0] ss:$8 sps:$4 sm:$0xff]  }
 0x88d   : > { %7046 = vmatpush1.bf16.msra.mxu1 %v11170_v4  ;;  %v11241_v4 = vld [vmem:[%s14020_s7 + $0x304] ss:$8 sps:$4 sm:$0xff]  }
 0x88e   : > { %7047 = vmatprep.subr.bf16.mxu1 %v11175_v55  ;;  %v11239_v55 = vld [vmem:[%s14020_s7 + $0x300] ss:$8 sps:$4 sm:$0xff]  }
 0x890   : > { %6928 = vmatmul.mubr.bf16.gmra.mrb[64].mxu1 %v6788_v42  ;;  %v11247_v42 = vld [vmem:[%s14020_s7 + $0x324] ss:$8 sps:$4 sm:$0xff]  }
 0x891   : > { %7048 = vmatpush1.bf16.msra.mxu1 %v11173_v35  ;;  %7075 = vmatprep.mubr.bf16.mxu1 %v11322_v33  ;;  %v11242_v35 = vld [vmem:[%s14020_s7 + $0x310] ss:$8 sps:$4 sm:$0xff]  }
 0x892   : > { %7049 = vmatprep.subr.bf16.mxu1 %v11178_v52  ;;  %v11245_v52 = vld [vmem:[%s14020_s7 + $0x320] ss:$8 sps:$4 sm:$0xff]  }
 0x895   : > { %7050 = vmatpush1.bf16.msra.mxu1 %v11176_v63  ;;  %v11253_v63 = vld [vmem:[%s14020_s7 + $0x344] ss:$8 sps:$4 sm:$0xff]  }
 0x896   : > { %7051 = vmatprep.subr.bf16.mxu1 %v11181_v38  ;;  %v11256_v38 = vld [vmem:[%s14020_s7 + $0x354] ss:$8 sps:$4 sm:$0xff]  }
 0x899   : > { %7052 = vmatpush1.bf16.msra.mxu1 %v11179_v48  ;;  %v11254_v48 = vld [vmem:[%s14020_s7 + $0x350] ss:$8 sps:$4 sm:$0xff]  }
 0x89a   : > { %7053 = vmatprep.subr.bf16.mxu1 %v11184_v47  ;;  %v11259_v47 = vld [vmem:[%s14020_s7 + $0x364] ss:$8 sps:$4 sm:$0xff]  }
 0x89d   : > { %7054 = vmatpush1.bf16.msra.mxu1 %v11182_v30  ;;  %v11257_v30 = vld [vmem:[%s14020_s7 + $0x360] ss:$8 sps:$4 sm:$0xff]  }
 0x89e   : > { %7055 = vmatprep.subr.bf16.mxu1 %v11187_v29  ;;  %v11262_v29 = vld [vmem:[%s14020_s7 + $0x374] ss:$8 sps:$4 sm:$0xff]  }
 0x8a1   : > { %7056 = vmatpush1.bf16.msra.mxu1 %v11185_v27  ;;  %v11260_v27 = vld [vmem:[%s14020_s7 + $0x370] ss:$8 sps:$4 sm:$0xff]  }
 0x8a2   : > { %7057 = vmatprep.subr.bf16.mxu1 %v11190_v22  ;;  %v11265_v22 = vld [vmem:[%s14020_s7 + $0x384] ss:$8 sps:$4 sm:$0xff]  }
 0x8a5   : > { %7058 = vmatpush1.bf16.msra.mxu1 %v11188_v36  ;;  %v7417_v36 = vld [vmem:[#allocation3 + $0x14] sm:$0xff] }
 0x8a6   : > { %7201 = vmatprep.subr.bf16.mxu1 %v11193_v18  ;;  %v7416_v18 = vld [vmem:[#allocation3 + $0xc] sm:$0xff] }
 0x8a8   : > { %7076 = vmatmul.mubr.bf16.vlgmr.msra.gmra.mrb[52].mxu1 %v6945_v26  ;;  %v11268_v26 = vld [vmem:[%s14020_s7 + $0x394] ss:$8 sps:$4 sm:$0xff]  }
 0x8a9   : > { %7202 = vmatpush1.bf16.msra.mxu1 %v11191_v25  ;;  %7085 = vmatprep.mubr.bf16.mxu1 %v11322_v33  ;;  %v7419_v25 = vpack.c.bf16 %v7417_v36, %v7416_v18 }
 0x8aa   : > { %7203 = vmatprep.subr.bf16.mxu1 %v11196_v51  ;;  %v11266_v51 = vld [vmem:[%s14020_s7 + $0x390] ss:$8 sps:$4 sm:$0xff]  }
 0x8ad   : > { %7204 = vmatpush1.bf16.msra.mxu1 %v11194_v21  ;;  %v11271_v21 = vld [vmem:[%s14020_s7 + $0x3a4] ss:$8 sps:$4 sm:$0xff]  }
 0x8ae   : > { %7205 = vmatprep.subr.bf16.mxu1 %v11199_v45  ;;  %v7418_v45 = vld [vmem:[#allocation3 + $0x1c] sm:$0xff] }
 0x8b0   : > { %7086 = vmatmul.mubr.bf16.gmra.mrb[68].mxu1 %v6946_v34  ;;  %v7420_v34 = vpack.c.bf16 %v7418_v45, %v7418_v45 }
 0x8b1   : > { %7206 = vmatpush1.bf16.msra.mxu1 %v11197_v43  ;;  %7233 = vmatprep.mubr.bf16.mxu1 %v11322_v33  ;;  %v11269_v43 = vld [vmem:[%s14020_s7 + $0x3a0] ss:$8 sps:$4 sm:$0xff]  }
 0x8b2   : > { %7207 = vmatprep.subr.bf16.mxu1 %v11202_v53  ;;  %v11274_v53 = vld [vmem:[%s14020_s7 + $0x3b4] ss:$8 sps:$4 sm:$0xff]  }
 0x8b5   : > { %7208 = vmatpush1.bf16.msra.mxu1 %v11200_v58  ;;  %v11272_v58 = vld [vmem:[%s14020_s7 + $0x3b0] ss:$8 sps:$4 sm:$0xff]  }
 0x8b6   : > { %7209 = vmatprep.subr.bf16.mxu1 %v11205_v11  ;;  %v11277_v11 = vld [vmem:[%s14020_s7 + $0x3c4] ss:$8 sps:$4 sm:$0xff]  }
 0x8b9   : > { %7210 = vmatpush1.bf16.msra.mxu1 %v11203_v17  ;;  %v11275_v17 = vld [vmem:[%s14020_s7 + $0x3c0] ss:$8 sps:$4 sm:$0xff]  }
 0x8ba   : > { %7211 = vmatprep.subr.bf16.mxu1 %v11208_v3  ;;  %v11280_v3 = vld [vmem:[%s14020_s7 + $0x3d4] ss:$8 sps:$4 sm:$0xff]  }
 0x8bd   : > { %7212 = vmatpush1.bf16.msra.mxu1 %v11206_v39  ;;  %v11278_v39 = vld [vmem:[%s14020_s7 + $0x3d0] ss:$8 sps:$4 sm:$0xff]  }
 0x8be   : > { %7213 = vmatprep.subr.bf16.mxu1 %v11211_v44  ;;  %v11283_v44 = vld [vmem:[%s14020_s7 + $0x3e4] ss:$8 sps:$4 sm:$0xff]  }
 0x8c1   : > { %7214 = vmatpush1.bf16.msra.mxu1 %v11209_v28  ;;  %v11281_v28 = vld [vmem:[%s14020_s7 + $0x3e0] ss:$8 sps:$4 sm:$0xff]  }
 0x8c2   : > { %7215 = vmatprep.subr.bf16.mxu1 %v11214_v12  ;;  %v11286_v12 = vld [vmem:[%s14020_s7 + $0x3f4] ss:$8 sps:$4 sm:$0xff]  }
 0x8c5   : > { %7216 = vmatpush1.bf16.msra.mxu1 %v11212_v56  ;;  %v11284_v56 = vld [vmem:[%s14020_s7 + $0x3f0] ss:$8 sps:$4 sm:$0xff]  }
 0x8c6   : > { %7359 = vmatprep.subr.bf16.mxu1 %v11217_v16  ;;  %v11289_v16 = vld [vmem:[%s14020_s7 + $0x404] ss:$8 sps:$4 sm:$0xff]  }
 0x8c8   : > { %7234 = vmatmul.mubr.bf16.vlgmr.msra.gmra.mrb[52].mxu1 %v7103_v0  ;;  %v7574_v0 = vld [vmem:[#allocation3 + $0xd] sm:$0xff] }
 0x8c9   : > { %7360 = vmatpush1.bf16.msra.mxu1 %v11215_v37  ;;  %7243 = vmatprep.mubr.bf16.mxu1 %v11322_v33 }
 0x8ca   : > { %7361 = vmatprep.subr.bf16.mxu1 %v11220_v41 }
 0x8cd   : > { %7362 = vmatpush1.bf16.msra.mxu1 %v11218_v61  ;;  %v11287_v61 = vld [vmem:[%s14020_s7 + $0x400] ss:$8 sps:$4 sm:$0xff]  }
 0x8ce   : > { %7363 = vmatprep.subr.bf16.mxu1 %v11223_v54  ;;  %v7577_v54 = vpack.c.bf16 %v7575_v49, %v7574_v0 }
 0x8d0   : > { %7244 = vmatmul.mubr.bf16.gmra.mrb[72].mxu1 %v7104_v57  ;;  %v11290_v57 = vld [vmem:[%s14020_s7 + $0x410] ss:$8 sps:$4 sm:$0xff]  }
 0x8d1   : > { %7364 = vmatpush1.bf16.msra.mxu1 %v11221_v14  ;;  %7391 = vmatprep.mubr.bf16.mxu1 %v11322_v33  ;;  %v11292_v14 = vld [vmem:[%s14020_s7 + $0x414] ss:$8 sps:$4 sm:$0xff]  }
 0x8d2   : > { %7365 = vmatprep.subr.bf16.mxu1 %v11226_v15  ;;  %v11295_v15 = vld [vmem:[%s14020_s7 + $0x424] ss:$8 sps:$4 sm:$0xff]  }
 0x8d5   : > { %7366 = vmatpush1.bf16.msra.mxu1 %v11224_v5  ;;  %v7576_v5 = vld [vmem:[#allocation3 + $0x1d] sm:$0xff] }
 0x8d6   : > { %7367 = vmatprep.subr.bf16.mxu1 %v11229_v24  ;;  %v11293_v24 = vld [vmem:[%s14020_s7 + $0x420] ss:$8 sps:$4 sm:$0xff]  }
 0x8d9   : > { %7368 = vmatpush1.bf16.msra.mxu1 %v11227_v9  ;;  %v7578_v9 = vpack.c.bf16 %v7576_v5, %v7576_v5 }
 0x8da   : > { %7369 = vmatprep.subr.bf16.mxu1 %v11232_v8  ;;  %v11298_v8 = vld [vmem:[%s14020_s7 + $0x434] ss:$8 sps:$4 sm:$0xff]  }
 0x8dd   : > { %7370 = vmatpush1.bf16.msra.mxu1 %v11230_v19  ;;  %v11296_v19 = vld [vmem:[%s14020_s7 + $0x430] ss:$8 sps:$4 sm:$0xff]  }
 0x8de   : > { %7371 = vmatprep.subr.bf16.mxu1 %v11235_v60  ;;  %v11301_v60 = vld [vmem:[%s14020_s7 + $0x444] ss:$8 sps:$4 sm:$0xff]  }
 0x8e1   : > { %7372 = vmatpush1.bf16.msra.mxu1 %v11233_v46  ;;  %v11299_v46 = vld [vmem:[%s14020_s7 + $0x440] ss:$8 sps:$4 sm:$0xff]  }
 0x8e2   : > { %7373 = vmatprep.subr.bf16.mxu1 %v11238_v59  ;;  %v11304_v59 = vld [vmem:[%s14020_s7 + $0x454] ss:$8 sps:$4 sm:$0xff]  }
 0x8e5   : > { %7374 = vmatpush1.bf16.msra.mxu1 %v11236_v6  ;;  %v11302_v6 = vld [vmem:[%s14020_s7 + $0x450] ss:$8 sps:$4 sm:$0xff]  }
 0x8e6   : > { %7517 = vmatprep.subr.bf16.mxu1 %v11241_v4  ;;  %v11307_v4 = vld [vmem:[%s14020_s7 + $0x464] ss:$8 sps:$4 sm:$0xff]  }
 0x8e8   : > { %7392 = vmatmul.mubr.bf16.vlgmr.msra.gmra.mrb[52].mxu1 %v7261_v13  ;;  %v11248_v13 = vld [vmem:[%s14020_s7 + $0x330] ss:$8 sps:$4 sm:$0xff]  }
 0x8e9   : > { %7518 = vmatpush1.bf16.msra.mxu1 %v11239_v55  ;;  %7401 = vmatprep.mubr.bf16.mxu1 %v11322_v33  ;;  %v11305_v55 = vld [vmem:[%s14020_s7 + $0x460] ss:$8 sps:$4 sm:$0xff]  }
 0x8ea   : > { %7519 = vmatprep.subr.bf16.mxu1 %v11244_v40  ;;  %v11310_v40 = vld [vmem:[%s14020_s7 + $0x474] ss:$8 sps:$4 sm:$0xff]  }
 0x8ed   : > { %7520 = vmatpush1.bf16.msra.mxu1 %v11242_v35  ;;  %v11308_v35 = vld [vmem:[%s14020_s7 + $0x470] ss:$8 sps:$4 sm:$0xff]  }
 0x8ee   : > { %7521 = vmatprep.subr.bf16.mxu1 %v11247_v42 }
 0x8f0   : > { %7402 = vmatmul.mubr.bf16.gmra.mrb[76].mxu1 %v7262_v50 }
 0x8f1   : > { %7522 = vmatpush1.bf16.msra.mxu1 %v11245_v52  ;;  %7549 = vmatprep.mubr.bf16.mxu1 %v11322_v33 }
 0x8f2   : > { %7523 = vmatprep.subr.bf16.mxu1 %v11250_v10 }
 0x8f5   : > { %7524 = vmatpush1.bf16.msra.mxu1 %v11248_v13 }
 0x8f6   : > { %7525 = vmatprep.subr.bf16.mxu1 %v11253_v63 }
 0x8f9   : > { %7526 = vmatpush1.bf16.msra.mxu1 %v11251_v7  ;;  %v7734_v7 = vld [vmem:[#allocation3 + $0x1e] sm:$0xff] }
 0x8fa   : > { %7527 = vmatprep.subr.bf16.mxu1 %v11256_v38  ;;  %v7736_v38 = vpack.c.bf16 %v7734_v7, %v7734_v7 }
 0x8fd   : > { %7528 = vmatpush1.bf16.msra.mxu1 %v11254_v48 }
 0x8fe   : > { %7529 = vmatprep.subr.bf16.mxu1 %v11259_v47 }
 0x901   : > { %7530 = vmatpush1.bf16.msra.mxu1 %v11257_v30 }
 0x902   : > { %7531 = vmatprep.subr.bf16.mxu1 %v11262_v29 }
 0x905   : > { %7532 = vmatpush1.bf16.msra.mxu1 %v11260_v27 }
 0x906   : > { %7675 = vmatprep.subr.bf16.mxu1 %v11265_v22 }
 0x908   : > { %7550 = vmatmul.mubr.bf16.vlgmr.msra.gmra.mrb[52].mxu1 %v7419_v25 }
 0x909   : > { %7676 = vmatpush1.bf16.msra.mxu1 %v11263_v62  ;;  %7559 = vmatprep.mubr.bf16.mxu1 %v11322_v33 }
 0x90a   : > { %7677 = vmatprep.subr.bf16.mxu1 %v11268_v26 }
 0x90d   : > { %7678 = vmatpush1.bf16.msra.mxu1 %v11266_v51 }
 0x90e   : > { %7679 = vmatprep.subr.bf16.mxu1 %v11271_v21 }
 0x910   : > { %7560 = vmatmul.mubr.bf16.gmra.mrb[80].mxu1 %v7420_v34 }
 0x911   : > { %7680 = vmatpush1.bf16.msra.mxu1 %v11269_v43  ;;  %7707 = vmatprep.mubr.bf16.mxu1 %v11322_v33 }
 0x912   : > { %7681 = vmatprep.subr.bf16.mxu1 %v11274_v53 }
 0x915   : > { %7682 = vmatpush1.bf16.msra.mxu1 %v11272_v58 }
 0x916   : > { %7683 = vmatprep.subr.bf16.mxu1 %v11277_v11 }
 0x919   : > { %7684 = vmatpush1.bf16.msra.mxu1 %v11275_v17 }
 0x91a   : > { %7685 = vmatprep.subr.bf16.mxu1 %v11280_v3 }
 0x91d   : > { %7686 = vmatpush1.bf16.msra.mxu1 %v11278_v39 }
 0x91e   : > { %7687 = vmatprep.subr.bf16.mxu1 %v11283_v44 }
 0x921   : > { %7688 = vmatpush1.bf16.msra.mxu1 %v11281_v28 }
 0x922   : > { %7689 = vmatprep.subr.bf16.mxu1 %v11286_v12 }
 0x923   : > { %v6646_v32 = vpop.f32.mrb[56].mxu1 }
 0x924   : > { %v6648_v37 = vpop.f32.mrb[57].mxu1 }
 0x925   : > { %7690 = vmatpush1.bf16.msra.mxu1 %v11284_v56  ;;  %v6650_v41 = vpop.f32.mrb[58].mxu1 }
 0x926   : > { %v6651_v1 = vpop.f32.mrb[59].mxu1  ;;  %7833 = vmatprep.subr.bf16.mxu1 %v11289_v16 }
 0x928   : > { %7708 = vmatmul.mubr.bf16.vlgmr.msra.gmra.mrb[52].mxu1 %v7577_v54 }
 0x929   : > { %7834 = vmatpush1.bf16.msra.mxu1 %v11287_v61  ;;  %7717 = vmatprep.mubr.bf16.mxu1 %v11322_v33  ;;  %v7892_v61 = vlaneseq }
 0x92a   : > { %7835 = vmatprep.subr.bf16.mxu1 %v11292_v14  ;;  %v7890_v14 = vld [vmem:[%s14021_s8] sm:$0x3] }
 0x92b   : > { %v7893_v54 = vshrl.u32 %v7892_v61, 7 }
 0x92d   : > { %7836 = vmatpush1.bf16.msra.mxu1 %v11290_v57  ;;  %v7894_v1 = vsub.s32 0, %v7893_v54  ;;  %v7898_v57 = vsub.s32 1, %v7893_v54 }
 0x92e   : > { %7837 = vmatprep.subr.bf16.mxu1 %v11295_v15 }
 0x92f   : > { %v7895_v15 = vrot.slane %v7890_v14, %v7894_v1  ;;  %v7899_v5 = vrot.slane %v7890_v14, %v7898_v57 }
 0x930   : > { %7718 = vmatmul.mubr.bf16.gmra.mrb[84].mxu1 %v7578_v9 }
 0x931   : > { %7838 = vmatpush1.bf16.msra.mxu1 %v11293_v24  ;;  %7865 = vmatprep.mubr.bf16.mxu1 %v11322_v33 }
 0x932   : > { %7839 = vmatprep.subr.bf16.mxu1 %v11298_v8 }
 0x935   : > { %7840 = vmatpush1.bf16.msra.mxu1 %v11296_v19 }
 0x936   : > { %7841 = vmatprep.subr.bf16.mxu1 %v11301_v60 }
 0x939   : > { %7842 = vmatpush1.bf16.msra.mxu1 %v11299_v46 }
 0x93a   : > { %7843 = vmatprep.subr.bf16.mxu1 %v11304_v59 }
 0x93d   : > { %7844 = vmatpush1.bf16.msra.mxu1 %v11302_v6 }
 0x93e   : > { %7845 = vmatprep.subr.bf16.mxu1 %v11307_v4 }
 0x941   : > { %7846 = vmatpush1.bf16.msra.mxu1 %v11305_v55 }
 0x942   : > { %7847 = vmatprep.subr.bf16.mxu1 %v11310_v40 }
 0x943   : > { %v6777_v42 = vpop.f32.mrb[60].mxu1 }
 0x944   : > { %v6778_v52 = vadd.f32 %v6777_v42, %v6646_v32  ;;  %v6779_v50 = vpop.f32.mrb[61].mxu1 }
 0x945   : > { %v6780_v10 = vadd.f32 %v6779_v50, %v6648_v37  ;;  %v6781_v13 = vpop.f32.mrb[62].mxu1  ;;  %7848 = vmatpush1.bf16.msra.mxu1 %v11308_v35 }
 0x946   : > { %v6782_v63 = vpop.f32.mrb[63].mxu1 }
 0x948   : > { %7866 = vmatmul.mubr.bf16.vlgmr.msra.gmra.mrb[52].mxu1 %v7735_v2 }
 0x949   : > { %7875 = vmatprep.mubr.bf16.mxu1 %v11322_v33 }
 0x950   : > { %7876 = vmatmul.mubr.bf16.gmra.mrb[88].mxu1 %v7736_v38 }
 0x951   : > { %7983 = vmatprep.mubr.f32.mxu1 %v11321_v20 }
 0x963   : > { %v6929_v48 = vpop.f32.mrb[64].mxu1 }
 0x964   : > { %v6940_v47 = vadd.f32 %v6929_v48, %v6778_v52  ;;  %v6931_v30 = vpop.f32.mrb[65].mxu1 }
 0x965   : > { %v6941_v29 = vadd.f32 %v6931_v30, %v6780_v10  ;;  %v6933_v27 = vpop.f32.mrb[66].mxu1 }
 0x966   : > { %v6934_v22 = vpop.f32.mrb[67].mxu1  ;;  %v8886_v27 = vld [vmem:[%s14022_s9 + $0x4] sm:$0xf] }
 0x967   : > { %v7914_v22 = vld [vmem:[%s14022_s9] sm:$0xf] }
 0x983   : > { %v7087_v36 = vpop.f32.mrb[68].mxu1 }
 0x984   : > { %v7098_v18 = vadd.f32 %v7087_v36, %v6940_v47  ;;  %v7089_v62 = vpop.f32.mrb[69].mxu1  ;;  %v8888_v36 = vld [vmem:[%s14022_s9 + $0x8] sm:$0xf] }
 0x985   : > { %v7099_v25 = vadd.f32 %v7089_v62, %v6941_v29  ;;  %v7091_v26 = vpop.f32.mrb[70].mxu1 }
 0x986   : > { %v7092_v23 = vpop.f32.mrb[71].mxu1 }
 0x9a3   : > { %v7245_v31 = vpop.f32.mrb[72].mxu1 }
 0x9a4   : > { %v7256_v2 = vadd.f32 %v7245_v31, %v7098_v18  ;;  %v7247_v33 = vpop.f32.mrb[73].mxu1  ;;  %v8890_v18 = vld [vmem:[%s14022_s9 + $0xc] sm:$0xf] }
 0x9a5   : > { %v7257_v51 = vadd.f32 %v7247_v33, %v7099_v25  ;;  %v7249_v21 = vpop.f32.mrb[74].mxu1 }
 0x9a6   : > { %v7250_v45 = vpop.f32.mrb[75].mxu1 }
 0x9c3   : > { %v7403_v43 = vpop.f32.mrb[76].mxu1 }
 0x9c4   : > { %v7414_v34 = vadd.f32 %v7403_v43, %v7256_v2  ;;  %v7405_v53 = vpop.f32.mrb[77].mxu1 }
 0x9c5   : > { %v7415_v58 = vadd.f32 %v7405_v53, %v7257_v51  ;;  %v7407_v11 = vpop.f32.mrb[78].mxu1 }
 0x9c6   : > { %v7408_v17 = vpop.f32.mrb[79].mxu1 }
 0x9e3   : > { %v7561_v3 = vpop.f32.mrb[80].mxu1 }
 0x9e4   : > { %v7572_v39 = vadd.f32 %v7561_v3, %v7414_v34  ;;  %v7563_v44 = vpop.f32.mrb[81].mxu1 }
 0x9e5   : > { %v7573_v28 = vadd.f32 %v7563_v44, %v7415_v58  ;;  %v7565_v12 = vpop.f32.mrb[82].mxu1 }
 0x9e6   : > { %v7566_v56 = vpop.f32.mrb[83].mxu1 }
 0xa03   : > { %v7719_v16 = vpop.f32.mrb[84].mxu1 }
 0xa04   : > { %v7730_v49 = vadd.f32 %v7719_v16, %v7572_v39  ;;  %v7721_v32 = vpop.f32.mrb[85].mxu1 }
 0xa05   : > { %v7731_v37 = vadd.f32 %v7721_v32, %v7573_v28  ;;  %v7723_v0 = vpop.f32.mrb[86].mxu1 }
 0xa06   : > { %v7724_v41 = vpop.f32.mrb[87].mxu1 }
 0xa1b   : > { %v7867_v24 = vpop.f32.mrb[52].mxu1 }
 0xa1c   : > { %v7902_v9 = vadd.f32 %v7895_v15, %v7867_v24  ;;  %v7869_v8 = vpop.f32.mrb[53].mxu1 }
 0xa1d   : > { %v7903_v19 = vadd.f32 %v7899_v5, %v7869_v8  ;;  %v7871_v60 = vpop.f32.mrb[54].mxu1 }
 0xa1e   : > { %v7904_v46 = vadd.f32 %v7895_v15, %v7871_v60  ;;  %v7873_v59 = vpop.f32.mrb[55].mxu1  ;;  %v7908_v4 = vmax.f32 %v7902_v9, 0.0 }
 0xa1f   : > { %v7905_v6 = vadd.f32 %v7899_v5, %v7873_v59  ;;  %v7909_v40 = vmax.f32 %v7903_v19, 0.0 }
 0xa20   : > { %v7910_v55 = vmax.f32 %v7904_v46, 0.0 }
 0xa21   : > { %v7911_v35 = vmax.f32 %v7905_v6, 0.0 }
 0xa22   : > { %v10695_v42 = vpack.c.bf16 %v7910_v55, %v7908_v4 }
 0xa23   : > { %v10693_v52 = vpack.c.bf16 %v7911_v35, %v7909_v40  ;;  %v7877_v50 = vpop.f32.mrb[88].mxu1 }
 0xa24   : > { %v7888_v10 = vadd.f32 %v7877_v50, %v7730_v49  ;;  %v7879_v13 = vpop.f32.mrb[89].mxu1 }
 0xa25   : > { %v7889_v63 = vadd.f32 %v7879_v13, %v7731_v37  ;;  %v7881_v7 = vpop.f32.mrb[90].mxu1  ;;  %10694 = vmatprep.subr.bf16.mxu1 %v10693_v52  ;;  %10698 = vmatprep.subr.bf16.mxu0 %v10693_v52 }
 0xa26   : > { %v7906_v38 = vadd.f32 %v7895_v15, %v7888_v10  ;;  %v7882_v48 = vpop.f32.mrb[91].mxu1  ;;  %10696 = vmatpush1.bf16.msra.mxu1 %v10695_v42  ;;  %10700 = vmatpush1.bf16.msra.mxu0 %v10695_v42 }
 0xa27   : > { %v7907_v47 = vadd.f32 %v7899_v5, %v7889_v63 }
 0xa28   : > { %v7912_v29 = vmax.f32 %v7906_v38, 0.0 }
 0xa29   : > { %v7913_v30 = vmax.f32 %v7907_v47, 0.0 }
 0xa2b   : > { %7923 = vmatprep.subr.mxu1 %v7913_v30  ;;  %7999 = vmatprep.subr.mxu0 %v7913_v30 }
 0xa2c   : > { %7924 = vmatpush1.msra.mxu1 %v7912_v29  ;;  %8000 = vmatpush1.msra.mxu0 %v7912_v29 }
 0xa2d   : > { %10702 = vmatprep.subr.bf16.mxu0 %v10693_v52  ;;  %8887 = vmatmul.mubr.msk.f32.vlgmr.msra.gmra.mrb[156].mxu0 %vm7915_vm6, %v8886_v27 }
 0xa2e   : > { %10704 = vmatpush1.bf16.msra.mxu0 %v10695_v42  ;;  %8137 = vmatprep.mubr.f32.mxu0 %v11321_v20 }
 0xa2f   : > { %8077 = vmatprep.subr.mxu0 %v7913_v30  ;;  %8885 = vmatmul.mubr.msk.f32.vlgmr.msra.gmra.mrb[92].mxu1 %vm7915_vm6, %v7914_v22 }
 0xa32   : > { %8078 = vmatpush1.msra.mxu0 %v7912_v29 }
 0xa33   : > { %10706 = vmatprep.subr.bf16.mxu0 %v10693_v52  ;;  %8889 = vmatmul.mubr.msk.f32.vlgmr.msra.gmra.mrb[158].mxu0 %vm7915_vm6, %v8888_v36 }
 0xa34   : > { %10708 = vmatpush1.bf16.msra.mxu0 %v10695_v42  ;;  %8215 = vmatprep.mubr.f32.mxu0 %v11321_v20 }
 0xa35   : > { %8155 = vmatprep.subr.mxu0 %v7913_v30 }
 0xa38   : > { %8156 = vmatpush1.msra.mxu0 %v7912_v29 }
 0xa39   : > { %8891 = vmatmul.mubr.msk.f32.vlgmr.msra.gmra.mrb[160].mxu0 %vm7915_vm6, %v8890_v18 }
 0xb00   : > { %v8061_v62 = vpop.f32.mrb[156].mxu0 }
 0xb01   : > { %v8063_v25 = vpop.f32.mrb[157].mxu0 }
 0xb02   : > { %v7985_v26 = vpop.f32.mrb[92].mxu1 }
 0xb03   : > { %v8066_v23 = vmax.f32 %v7985_v26, %v8061_v62  ;;  %v7987_v31 = vpop.f32.mrb[93].mxu1 }
 0xb04   : > { %v8067_v2 = vmax.f32 %v7987_v31, %v8063_v25 }
 0xb06   : > { %v8139_v33 = vpop.f32.mrb[158].mxu0 }
 0xb07   : > { %v8144_v51 = vmax.f32 %v8066_v23, %v8139_v33  ;;  %v8141_v21 = vpop.f32.mrb[159].mxu0 }
 0xb08   : > { %v8145_v45 = vmax.f32 %v8067_v2, %v8141_v21 }
 0xb0c   : > { %v8217_v20 = vpop.f32.mrb[160].mxu0 }
 0xb0d   : > { %v8222_v43 = vmax.f32 %v8144_v51, %v8217_v20  ;;  %v8219_v34 = vpop.f32.mrb[161].mxu0 }
 0xb0e   : > { %v8223_v53 = vmax.f32 %v8145_v45, %v8219_v34 }
 0xb10   : > { %v8226_v58 = vcombine.low %v8222_v43, %v8223_v53 }
 0xb12   : > { %8228 = vst [vmem:[%s359_s28] sm:$0xff] %v8226_v58 }
 0xb13 PF: > { %s20_s13 = sadd.s32 1, %s11317_s13  }
 0xb14   : > { %p17_p4 = scmp.ge.s32.totalorder %s20_s13, 4  }
 0xb16   :  { %19 = sbr.rel (!%p17_p4) target bundleno = 1 (0x1), region = 99 }

</bundles_post_ra>
